<compile_context>
chip_gen: v7x
topology: tpu7x:2x2x1
jax: 0.10.0
libtpu: 0.0.40
codegen_flags: <defaults>
</compile_context>

<pallas_src>
import functools
import math

import numpy as np
import jax
import jax.numpy as jnp
from jax.experimental import pallas as pl
from jax.experimental.pallas import tpu as pltpu

SQRT2 = math.sqrt(2.0)
LRELU_SLOPE = 0.2

# Fixed resample-filter buffer (upfirdn2d.setup_filter([1, 3, 3, 1])).
_F1D = np.array([1.0, 3.0, 3.0, 1.0], np.float64)
F2D_NP = np.outer(_F1D, _F1D)
F2D_NP = (F2D_NP / F2D_NP.sum()).astype(np.float32)   # (4, 4), sums to 1
G_NP = 4.0 * F2D_NP                                   # upfirdn gain = up**2 = 4


def _round_up(v, m):
    return (v + m - 1) // m * m


# --------------------------- Pallas matmul kernel ---------------------------- #
def _mm_bias_act_kernel(x_ref, w_ref, b_ref, o_ref, acc_ref, *, act, gain, slope):
    @pl.when(pl.program_id(2) == 0)
    def _init():
        acc_ref[...] = jnp.zeros_like(acc_ref)

    # Default precision (no Precision.HIGHEST); accumulate in f32.
    acc_ref[...] += jnp.dot(x_ref[...], w_ref[...],
                            preferred_element_type=jnp.float32)

    @pl.when(pl.program_id(2) == pl.num_programs(2) - 1)
    def _finalize():
        y = acc_ref[...] + b_ref[...]
        if act == "lrelu":
            y = jnp.where(y >= 0.0, y, slope * y)
        o_ref[...] = (y * gain).astype(o_ref.dtype)


def pallas_linear(x, w, b, act="linear", gain=1.0):
    """out = act(x @ w + b) * gain    x:(M,K), w:(K,N), b:(N,)  -> (M,N)"""
    M, K = x.shape
    Kw, N = w.shape
    assert K == Kw

    # ---- tiling: pad every dim to an aligned tile; never one unaligned slab ----
    tile_m = 512 if M >= 512 else _round_up(max(M, 8), 8)
    Mp = _round_up(M, tile_m)
    Np = _round_up(N, 128)                    # lane-dense stores
    tile_n = 256 if Np % 256 == 0 else 128
    Kp = _round_up(K, 8)
    if Kp > 512:                              # K-tiled accumulation (caps resident weight)
        tile_k = 512
        Kp = _round_up(K, tile_k)
    else:
        tile_k = Kp

    xp = jnp.pad(x, ((0, Mp - M), (0, Kp - K))) if (Mp != M or Kp != K) else x
    wp = jnp.pad(w, ((0, Kp - K), (0, Np - N))) if (Kp != K or Np != N) else w
    bp = (jnp.pad(b, (0, Np - N)) if Np != N else b).reshape(1, Np)

    grid = (Mp // tile_m, Np // tile_n, Kp // tile_k)
    kernel = functools.partial(_mm_bias_act_kernel, act=act, gain=float(gain),
                               slope=LRELU_SLOPE)
    out = pl.pallas_call(
        kernel,
        out_shape=jax.ShapeDtypeStruct((Mp, Np), x.dtype),
        grid=grid,
        in_specs=[
            pl.BlockSpec((tile_m, tile_k), lambda i, j, k: (i, k)),
            pl.BlockSpec((tile_k, tile_n), lambda i, j, k: (k, j)),
            pl.BlockSpec((1, tile_n), lambda i, j, k: (0, j)),
        ],
        out_specs=pl.BlockSpec((tile_m, tile_n), lambda i, j, k: (i, j)),
        scratch_shapes=[pltpu.VMEM((tile_m, tile_n), jnp.float32)],
        compiler_params=pltpu.CompilerParams(
            dimension_semantics=("parallel", "parallel", "arbitrary"),
            vmem_limit_bytes=32 * 1024 * 1024,
        ),
        cost_estimate=pl.CostEstimate(
            flops=2 * Mp * Np * Kp,
            transcendentals=0,
            bytes_accessed=4 * (Mp * Kp + Kp * Np + 2 * Mp * Np),
        ),
    )(xp, wp, bp)
    return out[:M, :N]


# ------------- Pallas depthwise 2x upsample (+ fused residual add) ------------ #
def _phase_taps():
    """Per output phase (r,s): nonzero taps (da, db, coef) of a 3x3 window on the
    1-padded low-res image, derived from the 4x4 upfirdn filter (gain 4 folded in)."""
    taps = []
    for r in (0, 1):
        for s in (0, 1):
            t = []
            for da in range(3):
                ey = 2 * da - r
                if not 0 <= ey <= 3:
                    continue
                for db in range(3):
                    ex = 2 * db - s
                    if not 0 <= ex <= 3:
                        continue
                    t.append((da, db, float(G_NP[ey, ex])))
            taps.append(tuple(t))
    return tuple(taps)


_UPSAMPLE_TAPS = _phase_taps()


def _upsample_add_kernel(imgp_ref, rgb_ref, o_ref, *, hi, wi, taps):
    # imgp_ref: (1, hi+2, wi+2, C);  rgb_ref / o_ref: (1, 4, hi, wi, C)  (phase-packed)
    for ph, tap_list in enumerate(taps):
        acc = None
        for (da, db, coef) in tap_list:
            term = imgp_ref[0, da:da + hi, db:db + wi, :] * coef
            acc = term if acc is None else acc + term
        o_ref[0, ph] = (acc + rgb_ref[0, ph]).astype(o_ref.dtype)


def pallas_upsample2x_add(img, rgb_ph):
    """upfirdn2d 2x upsample of img (sub-pixel depthwise taps on the VPU) with the
    torgb residual fused in.  img:(N,H,W,C), rgb_ph:(N,4,H,W,C) -> (N,4,H,W,C)."""
    N, H, W, C = img.shape
    imgp = jnp.pad(img, ((0, 0), (1, 1), (1, 1), (0, 0)))
    kernel = functools.partial(_upsample_add_kernel, hi=H, wi=W, taps=_UPSAMPLE_TAPS)
    return pl.pallas_call(
        kernel,
        out_shape=jax.ShapeDtypeStruct((N, 4, H, W, C), img.dtype),
        grid=(N,),
        in_specs=[
            pl.BlockSpec((1, H + 2, W + 2, C), lambda n: (n, 0, 0, 0)),
            pl.BlockSpec((1, 4, H, W, C), lambda n: (n, 0, 0, 0, 0)),
        ],
        out_specs=pl.BlockSpec((1, 4, H, W, C), lambda n: (n, 0, 0, 0, 0)),
        compiler_params=pltpu.CompilerParams(dimension_semantics=("parallel",)),
    )(imgp, rgb_ph)


# ------------------------------- JAX glue ------------------------------------ #
def im2col(xpad, kh, kw):
    """xpad: (N,H,W,C) already padded -> patches (N*OH*OW, kh*kw*C), tap-major."""
    N, H, W, C = xpad.shape
    OH, OW = H - kh + 1, W - kw + 1
    taps = [xpad[:, i:i + OH, j:j + OW, :] for i in range(kh) for j in range(kw)]
    p = jnp.stack(taps, axis=3)                      # (N, OH, OW, T, C)
    return p.reshape(N * OH * OW, kh * kw * C), (N, OH, OW)


def im2col_dw(xpad, kh, kw):
    """Depthwise ordering: patches (N*OH*OW, C*kh*kw), channel-major (reference only)."""
    N, H, W, C = xpad.shape
    OH, OW = H - kh + 1, W - kw + 1
    taps = [xpad[:, i:i + OH, j:j + OW, :] for i in range(kh) for j in range(kw)]
    p = jnp.stack(taps, axis=4)                      # (N, OH, OW, C, T)
    return p.reshape(N * OH * OW, C * kh * kw), (N, OH, OW)


def _conv0_phase_weight(w0, cin, cout):
    """Fold the stride-2 transposed-conv 3x3 weight and the 4x4 upfirdn filter into four
    per-phase 3x3 kernels; returns a (9*cin, 4*cout) matmul matrix (tap-major rows,
    phase-major columns ordered (r, s, out_ch))."""
    w0s = w0 * (1.0 / math.sqrt(cin * 9))
    # conv_transpose2d(stride=2) == cross-correlation of the zero-dilated input with the
    # flipped weight (in_ch becomes the contraction dim).
    wflip = jnp.transpose(w0s[:, :, ::-1, ::-1], (2, 3, 1, 0))        # (3,3,cin,cout)
    # Combined 6x6 kernel = full 2D convolution of the 4x4 FIR filter with the 3x3 weight.
    wc = jnp.zeros((6, 6, cin, cout), w0.dtype)
    for ey in range(4):
        for ex in range(4):
            wc = wc.at[ey:ey + 3, ex:ex + 3, :, :].add(float(G_NP[ey, ex]) * wflip)
    # Phase (r, s) reads combined-kernel rows 2*da+1-r and cols 2*db+1-s.
    wp = jnp.stack([jnp.stack([wc[(1 - r)::2, (1 - s)::2] for s in (0, 1)], 0)
                    for r in (0, 1)], 0)                              # (2,2,3,3,cin,cout)
    return jnp.transpose(wp, (2, 3, 4, 0, 1, 5)).reshape(9 * cin, 4 * cout)


def decoder_block_forward(x, img, params):
    """Optimized Pallas forward. x:(N,H,W,Cin), img:(N,H,W,img_ch) or None (NHWC)."""
    N, H, W, Cin = x.shape
    w0, b0 = params["w0"], params["b0"]
    w1, b1 = params["w1"], params["b1"]
    wr, br = params["wrgb"], params["brgb"]
    Cout = w0.shape[0]
    img_ch = wr.shape[0]

    # ------ conv0: up=2 3x3 + FIR folded, computed as 4 sub-pixel phases ------
    w0_mat = _conv0_phase_weight(w0, Cin, Cout)                       # (9*Cin, 4*Cout)
    b0_big = jnp.tile(b0, 4)
    xp = jnp.pad(x, ((0, 0), (1, 1), (1, 1), (0, 0)))
    p0, _ = im2col(xp, 3, 3)                                          # (N*H*W, 9*Cin)
    y0 = pallas_linear(p0, w0_mat, b0_big, act="lrelu", gain=SQRT2)   # (N*H*W, 4*Cout)
    x0 = (y0.reshape(N, H, W, 2, 2, Cout)
             .transpose(0, 1, 3, 2, 4, 5)
             .reshape(N, 2 * H, 2 * W, Cout))

    # ------ conv1: 3x3, lrelu ------
    # TODO(synk): fold the 9-tap gather into the matmul kernel (halo'd row tiles) to
    # avoid materializing the 9x im2col patch matrix in HBM.
    w1s = w1 * (1.0 / math.sqrt(Cout * 9))
    w1_mat = jnp.transpose(w1s, (2, 3, 1, 0)).reshape(9 * Cout, Cout)
    xp1 = jnp.pad(x0, ((0, 0), (1, 1), (1, 1), (0, 0)))
    p1, _ = im2col(xp1, 3, 3)
    y1 = pallas_linear(p1, w1_mat, b1, act="lrelu", gain=SQRT2)
    x1 = y1.reshape(N, 2 * H, 2 * W, Cout)

    # ------ torgb: 1x1, lrelu ------
    wrs = wr * (1.0 / math.sqrt(Cout))
    wr_mat = jnp.transpose(wrs, (2, 3, 1, 0)).reshape(Cout, img_ch)
    rgb = pallas_linear(x1.reshape(-1, Cout), wr_mat, br, act="lrelu", gain=SQRT2)
    rgb = rgb.reshape(N, 2 * H, 2 * W, img_ch)

    if img is None:
        return x1, rgb

    # ------ img upsample2d (VPU depthwise) + fused torgb residual add ------
    Ni, Hi, Wi, Ci = img.shape
    rgb_ph = (rgb.reshape(Ni, Hi, 2, Wi, 2, Ci)
                 .transpose(0, 2, 4, 1, 3, 5)
                 .reshape(Ni, 4, Hi, Wi, Ci))
    out_ph = pallas_upsample2x_add(img, rgb_ph)
    img_out = (out_ph.reshape(Ni, 2, 2, Hi, Wi, Ci)
                     .transpose(0, 3, 1, 4, 2, 5)
                     .reshape(Ni, 2 * Hi, 2 * Wi, Ci))
    return x1, img_out


# ------------------------ Pure-JAX reference path ---------------------------- #
def _ref_linear(x, w, b, act="linear", gain=1.0):
    y = jnp.dot(x, w) + b[None, :]
    if act == "lrelu":
        y = jnp.where(y >= 0.0, y, LRELU_SLOPE * y)
    return y * gain


def decoder_block_ref(x, img, params):
    """Reference using the original decomposition (zero-dilate -> conv_t -> upfirdn)."""
    N, H, W, Cin = x.shape
    w0, b0 = params["w0"], params["b0"]
    w1, b1 = params["w1"], params["b1"]
    wr, br = params["wrgb"], params["brgb"]
    f2d = jnp.asarray(F2D_NP, x.dtype)
    Cout = w0.shape[0]
    img_ch = wr.shape[0]
    dt = x.dtype

    # conv0
    w0s = w0 * (1.0 / math.sqrt(Cin * 9))
    w0_mat = jnp.transpose(w0s[:, :, ::-1, ::-1], (2, 3, 1, 0)).reshape(9 * Cin, Cout)
    xd = jnp.zeros((N, 2 * H - 1, 2 * W - 1, Cin), dt).at[:, ::2, ::2, :].set(x)
    xd = jnp.pad(xd, ((0, 0), (2, 2), (2, 2), (0, 0)))
    p, (_, OH, OW) = im2col(xd, 3, 3)
    y = _ref_linear(p, w0_mat, jnp.zeros((Cout,), dt)).reshape(N, OH, OW, Cout)
    yp = jnp.pad(y, ((0, 0), (1, 1), (1, 1), (0, 0)))
    pdw, (_, OH, OW) = im2col_dw(yp, 4, 4)
    wdw = jnp.kron(jnp.eye(Cout, dtype=dt), (f2d * 4.0).reshape(-1, 1))
    x0 = _ref_linear(pdw, wdw, b0, act="lrelu", gain=SQRT2).reshape(N, OH, OW, Cout)

    # conv1
    w1s = w1 * (1.0 / math.sqrt(Cout * 9))
    w1_mat = jnp.transpose(w1s, (2, 3, 1, 0)).reshape(9 * Cout, Cout)
    xp = jnp.pad(x0, ((0, 0), (1, 1), (1, 1), (0, 0)))
    p, (_, OH, OW) = im2col(xp, 3, 3)
    x1 = _ref_linear(p, w1_mat, b1, act="lrelu", gain=SQRT2).reshape(N, OH, OW, Cout)

    # img upsample2d
    img_up = None
    if img is not None:
        Ni, Hi, Wi, Ci = img.shape
        iu = jnp.zeros((Ni, 2 * Hi, 2 * Wi, Ci), img.dtype).at[:, ::2, ::2, :].set(img)
        iu = jnp.pad(iu, ((0, 0), (2, 1), (2, 1), (0, 0)))
        pdw, (_, OHi, OWi) = im2col_dw(iu, 4, 4)
        wdw_i = jnp.kron(jnp.eye(Ci, dtype=img.dtype), (f2d * 4.0).reshape(-1, 1))
        img_up = _ref_linear(pdw, wdw_i, jnp.zeros((Ci,), img.dtype)).reshape(Ni, OHi, OWi, Ci)

    # torgb
    wrs = wr * (1.0 / math.sqrt(Cout))
    wr_mat = jnp.transpose(wrs, (2, 3, 1, 0)).reshape(Cout, img_ch)
    rgb = _ref_linear(x1.reshape(-1, Cout), wr_mat, br, act="lrelu", gain=SQRT2)
    rgb = rgb.reshape(N, 2 * H, 2 * W, img_ch)
    img_out = rgb if img_up is None else img_up + rgb
    return x1, img_out


# --------------------------------- main --------------------------------------- #
if __name__ == "__main__":
    key = jax.random.PRNGKey(0)
    N, H, W = 2, 8, 8
    in_ch, out_ch, img_ch = 4, 8, 3
    k0, k1, k2, k3, k4, k5, k6, k7 = jax.random.split(key, 8)

    # Deterministic synthetic parameters (Conv2dLayer.__init__ shapes; small biases to
    # exercise the bias path).
    params = dict(
        w0=jax.random.normal(k0, (out_ch, in_ch, 3, 3), jnp.float32),
        b0=0.1 * jax.random.normal(k1, (out_ch,), jnp.float32),
        w1=jax.random.normal(k2, (out_ch, out_ch, 3, 3), jnp.float32),
        b1=0.1 * jax.random.normal(k3, (out_ch,), jnp.float32),
        wrgb=jax.random.normal(k4, (img_ch, out_ch, 1, 1), jnp.float32),
        brgb=0.1 * jax.random.normal(k5, (img_ch,), jnp.float32),
    )

    x = jax.random.normal(k6, (N, H, W, in_ch), jnp.float32)      # NHWC
    img = jax.random.normal(k7, (N, H, W, img_ch), jnp.float32)   # NHWC

    fwd = jax.jit(decoder_block_forward)
    x_out, img_out = fwd(x, img, params)
    jax.block_until_ready((x_out, img_out))

    # Independent pure-JAX reference (original decomposition).
    x_ref, img_ref = decoder_block_ref(x, img, params)

    assert x_out.shape == (N, 2 * H, 2 * W, out_ch), x_out.shape
    assert img_out.shape == (N, 2 * H, 2 * W, img_ch), img_out.shape
    err_x = float(jnp.max(jnp.abs(x_out - x_ref)))
    err_i = float(jnp.max(jnp.abs(img_out - img_ref)))
    assert jnp.allclose(x_out, x_ref, atol=2e-2, rtol=2e-2), ("x mismatch", err_x)
    assert jnp.allclose(img_out, img_ref, atol=2e-2, rtol=2e-2), ("img mismatch", err_i)

    print("KERNEL_OK")
</pallas_src>

<mosaic_0001>
module attributes {stable_mosaic.version = 11 : i64} {
  func.func @_mm_bias_act_kernel(%arg0: i32, %arg1: i32, %arg2: i32, %arg3: memref<128x40xf32, #tpu.memory_space<vmem>>, %arg4: memref<40x128xf32, #tpu.memory_space<vmem>>, %arg5: memref<1x128xf32, #tpu.memory_space<vmem>>, %arg6: memref<128x128xf32, #tpu.memory_space<vmem>>, %arg7: memref<128x128xf32, #tpu.memory_space<vmem>>) attributes {dimension_semantics = [#tpu.dimension_semantics<parallel>, #tpu.dimension_semantics<parallel>, #tpu.dimension_semantics<arbitrary>], iteration_bounds = array<i64: 1, 1, 1>, scalar_prefetch = 0 : i64, scratch_operands = 1 : i64, tpu.core_type = #tpu.core_type<tc>, window_params = [{transform_indices = @transform_0, window_bounds = array<i64: 128, 40>}, {transform_indices = @transform_1, window_bounds = array<i64: 40, 128>}, {transform_indices = @transform_2, window_bounds = array<i64: 1, 128>}, {transform_indices = @transform_3, window_bounds = array<i64: 128, 128>}]} {
    %c0_i32 = arith.constant 0 : i32
    %0 = arith.cmpi eq, %arg2, %c0_i32 : i32
    %1 = arith.extui %0 : i1 to i32
    %c0_i32_0 = arith.constant 0 : i32
    %2 = arith.cmpi ne, %1, %c0_i32_0 : i32
    scf.if %2 {
      %cst_10 = arith.constant 0.000000e+00 : f32
      %12 = vector.broadcast %cst_10 : f32 to vector<128x128xf32>
      %c0_11 = arith.constant 0 : index
      %c0_12 = arith.constant 0 : index
      %13 = vector.load %arg7[%c0_11, %c0_12] : memref<128x128xf32, #tpu.memory_space<vmem>>, vector<128x128xf32>
      tpu.vector_store %arg7[%c0_11, %c0_12], %12 {strides = array<i32>} : memref<128x128xf32, #tpu.memory_space<vmem>>, vector<128x128xf32>,
    } else {
    }
    %c0 = arith.constant 0 : index
    %c0_1 = arith.constant 0 : index
    %3 = vector.load %arg7[%c0, %c0_1] : memref<128x128xf32, #tpu.memory_space<vmem>>, vector<128x128xf32>
    %c0_2 = arith.constant 0 : index
    %c0_3 = arith.constant 0 : index
    %4 = vector.load %arg3[%c0_2, %c0_3] : memref<128x40xf32, #tpu.memory_space<vmem>>, vector<128x40xf32>
    %c0_4 = arith.constant 0 : index
    %c0_5 = arith.constant 0 : index
    %5 = vector.load %arg4[%c0_4, %c0_5] : memref<40x128xf32, #tpu.memory_space<vmem>>, vector<40x128xf32>
    %cst = arith.constant dense<0.000000e+00> : vector<128x128xf32>
    %6 = tpu.matmul %4, %5, %cst {dimension_numbers = #tpu.dot_dimension_numbers<[1], [0], [0], [1], [0, 0, 1, 1], [], []>} : vector<128x40xf32>, vector<40x128xf32>, vector<128x128xf32> -> vector<128x128xf32>
    %7 = arith.addf %3, %6 : vector<128x128xf32>
    %c0_6 = arith.constant 0 : index
    %c0_7 = arith.constant 0 : index
    %8 = vector.load %arg7[%c0_6, %c0_7] : memref<128x128xf32, #tpu.memory_space<vmem>>, vector<128x128xf32>
    tpu.vector_store %arg7[%c0_6, %c0_7], %7 {strides = array<i32>} : memref<128x128xf32, #tpu.memory_space<vmem>>, vector<128x128xf32>,
    %c0_i32_8 = arith.constant 0 : i32
    %9 = arith.cmpi eq, %arg2, %c0_i32_8 : i32
    %10 = arith.extui %9 : i1 to i32
    %c0_i32_9 = arith.constant 0 : i32
    %11 = arith.cmpi ne, %10, %c0_i32_9 : i32
    scf.if %11 {
      %c0_10 = arith.constant 0 : index
      %c0_11 = arith.constant 0 : index
      %12 = vector.load %arg7[%c0_10, %c0_11] : memref<128x128xf32, #tpu.memory_space<vmem>>, vector<128x128xf32>
      %c0_12 = arith.constant 0 : index
      %c0_13 = arith.constant 0 : index
      %13 = vector.load %arg5[%c0_12, %c0_13] : memref<1x128xf32, #tpu.memory_space<vmem>>, vector<1x128xf32>
      %14 = vector.broadcast %13 : vector<1x128xf32> to vector<128x128xf32>
      %15 = arith.addf %12, %14 : vector<128x128xf32>
      %cst_14 = arith.constant 0.000000e+00 : f32
      %16 = vector.broadcast %cst_14 : f32 to vector<128x128xf32>
      %17 = arith.cmpf oge, %15, %16 : vector<128x128xf32>
      %cst_15 = arith.constant 2.000000e-01 : f32
      %18 = vector.broadcast %cst_15 : f32 to vector<128x128xf32>
      %19 = arith.mulf %18, %15 : vector<128x128xf32>
      %20 = arith.select %17, %15, %19 : vector<128x128xi1>, vector<128x128xf32>
      %cst_16 = arith.constant 1.41421354 : f32
      %21 = vector.broadcast %cst_16 : f32 to vector<128x128xf32>
      %22 = arith.mulf %20, %21 : vector<128x128xf32>
      %c0_17 = arith.constant 0 : index
      %c0_18 = arith.constant 0 : index
      %23 = vector.load %arg6[%c0_17, %c0_18] : memref<128x128xf32, #tpu.memory_space<vmem>>, vector<128x128xf32>
      tpu.vector_store %arg6[%c0_17, %c0_18], %22 {strides = array<i32>} : memref<128x128xf32, #tpu.memory_space<vmem>>, vector<128x128xf32>,
    } else {
    }
    return
  }
  func.func @transform_0(%arg0: i32, %arg1: i32, %arg2: i32) -> (i32, i32) {
    %c0_i32 = arith.constant 0 : i32
    return %arg0, %arg2 : i32, i32
  }
  func.func @transform_1(%arg0: i32, %arg1: i32, %arg2: i32) -> (i32, i32) {
    %c0_i32 = arith.constant 0 : i32
    return %arg2, %arg1 : i32, i32
  }
  func.func @transform_2(%arg0: i32, %arg1: i32, %arg2: i32) -> (i32, i32) {
    %c0_i32 = arith.constant 0 : i32
    %c0_i32_0 = arith.constant 0 : i32
    return %c0_i32, %arg1 : i32, i32
  }
  func.func @transform_3(%arg0: i32, %arg1: i32, %arg2: i32) -> (i32, i32) {
    %c0_i32 = arith.constant 0 : i32
    return %arg0, %arg1 : i32, i32
  }
}

module attributes {stable_mosaic.version = 11 : i64} {
  func.func @_mm_bias_act_kernel(%arg0: i32, %arg1: i32, %arg2: i32, %arg3: memref<512x8xf32, #tpu.memory_space<vmem>>, %arg4: memref<8x128xf32, #tpu.memory_space<vmem>>, %arg5: memref<1x128xf32, #tpu.memory_space<vmem>>, %arg6: memref<512x128xf32, #tpu.memory_space<vmem>>, %arg7: memref<512x128xf32, #tpu.memory_space<vmem>>) attributes {dimension_semantics = [#tpu.dimension_semantics<parallel>, #tpu.dimension_semantics<parallel>, #tpu.dimension_semantics<arbitrary>], iteration_bounds = array<i64: 1, 1, 1>, scalar_prefetch = 0 : i64, scratch_operands = 1 : i64, tpu.core_type = #tpu.core_type<tc>, window_params = [{transform_indices = @transform_0, window_bounds = array<i64: 512, 8>}, {transform_indices = @transform_1, window_bounds = array<i64: 8, 128>}, {transform_indices = @transform_2, window_bounds = array<i64: 1, 128>}, {transform_indices = @transform_3, window_bounds = array<i64: 512, 128>}]} {
    %c0_i32 = arith.constant 0 : i32
    %0 = arith.cmpi eq, %arg2, %c0_i32 : i32
    %1 = arith.extui %0 : i1 to i32
    %c0_i32_0 = arith.constant 0 : i32
    %2 = arith.cmpi ne, %1, %c0_i32_0 : i32
    scf.if %2 {
      %cst_10 = arith.constant 0.000000e+00 : f32
      %12 = vector.broadcast %cst_10 : f32 to vector<512x128xf32>
      %c0_11 = arith.constant 0 : index
      %c0_12 = arith.constant 0 : index
      %13 = vector.load %arg7[%c0_11, %c0_12] : memref<512x128xf32, #tpu.memory_space<vmem>>, vector<512x128xf32>
      tpu.vector_store %arg7[%c0_11, %c0_12], %12 {strides = array<i32>} : memref<512x128xf32, #tpu.memory_space<vmem>>, vector<512x128xf32>,
    } else {
    }
    %c0 = arith.constant 0 : index
    %c0_1 = arith.constant 0 : index
    %3 = vector.load %arg7[%c0, %c0_1] : memref<512x128xf32, #tpu.memory_space<vmem>>, vector<512x128xf32>
    %c0_2 = arith.constant 0 : index
    %c0_3 = arith.constant 0 : index
    %4 = vector.load %arg3[%c0_2, %c0_3] : memref<512x8xf32, #tpu.memory_space<vmem>>, vector<512x8xf32>
    %c0_4 = arith.constant 0 : index
    %c0_5 = arith.constant 0 : index
    %5 = vector.load %arg4[%c0_4, %c0_5] : memref<8x128xf32, #tpu.memory_space<vmem>>, vector<8x128xf32>
    %cst = arith.constant dense<0.000000e+00> : vector<512x128xf32>
    %6 = tpu.matmul %4, %5, %cst {dimension_numbers = #tpu.dot_dimension_numbers<[1], [0], [0], [1], [0, 0, 1, 1], [], []>} : vector<512x8xf32>, vector<8x128xf32>, vector<512x128xf32> -> vector<512x128xf32>
    %7 = arith.addf %3, %6 : vector<512x128xf32>
    %c0_6 = arith.constant 0 : index
    %c0_7 = arith.constant 0 : index
    %8 = vector.load %arg7[%c0_6, %c0_7] : memref<512x128xf32, #tpu.memory_space<vmem>>, vector<512x128xf32>
    tpu.vector_store %arg7[%c0_6, %c0_7], %7 {strides = array<i32>} : memref<512x128xf32, #tpu.memory_space<vmem>>, vector<512x128xf32>,
    %c0_i32_8 = arith.constant 0 : i32
    %9 = arith.cmpi eq, %arg2, %c0_i32_8 : i32
    %10 = arith.extui %9 : i1 to i32
    %c0_i32_9 = arith.constant 0 : i32
    %11 = arith.cmpi ne, %10, %c0_i32_9 : i32
    scf.if %11 {
      %c0_10 = arith.constant 0 : index
      %c0_11 = arith.constant 0 : index
      %12 = vector.load %arg7[%c0_10, %c0_11] : memref<512x128xf32, #tpu.memory_space<vmem>>, vector<512x128xf32>
      %c0_12 = arith.constant 0 : index
      %c0_13 = arith.constant 0 : index
      %13 = vector.load %arg5[%c0_12, %c0_13] : memref<1x128xf32, #tpu.memory_space<vmem>>, vector<1x128xf32>
      %14 = vector.broadcast %13 : vector<1x128xf32> to vector<512x128xf32>
      %15 = arith.addf %12, %14 : vector<512x128xf32>
      %cst_14 = arith.constant 0.000000e+00 : f32
      %16 = vector.broadcast %cst_14 : f32 to vector<512x128xf32>
      %17 = arith.cmpf oge, %15, %16 : vector<512x128xf32>
      %cst_15 = arith.constant 2.000000e-01 : f32
      %18 = vector.broadcast %cst_15 : f32 to vector<512x128xf32>
      %19 = arith.mulf %18, %15 : vector<512x128xf32>
      %20 = arith.select %17, %15, %19 : vector<512x128xi1>, vector<512x128xf32>
      %cst_16 = arith.constant 1.41421354 : f32
      %21 = vector.broadcast %cst_16 : f32 to vector<512x128xf32>
      %22 = arith.mulf %20, %21 : vector<512x128xf32>
      %c0_17 = arith.constant 0 : index
      %c0_18 = arith.constant 0 : index
      %23 = vector.load %arg6[%c0_17, %c0_18] : memref<512x128xf32, #tpu.memory_space<vmem>>, vector<512x128xf32>
      tpu.vector_store %arg6[%c0_17, %c0_18], %22 {strides = array<i32>} : memref<512x128xf32, #tpu.memory_space<vmem>>, vector<512x128xf32>,
    } else {
    }
    return
  }
  func.func @transform_0(%arg0: i32, %arg1: i32, %arg2: i32) -> (i32, i32) {
    %c0_i32 = arith.constant 0 : i32
    return %arg0, %arg2 : i32, i32
  }
  func.func @transform_1(%arg0: i32, %arg1: i32, %arg2: i32) -> (i32, i32) {
    %c0_i32 = arith.constant 0 : i32
    return %arg2, %arg1 : i32, i32
  }
  func.func @transform_2(%arg0: i32, %arg1: i32, %arg2: i32) -> (i32, i32) {
    %c0_i32 = arith.constant 0 : i32
    %c0_i32_0 = arith.constant 0 : i32
    return %c0_i32, %arg1 : i32, i32
  }
  func.func @transform_3(%arg0: i32, %arg1: i32, %arg2: i32) -> (i32, i32) {
    %c0_i32 = arith.constant 0 : i32
    return %arg0, %arg1 : i32, i32
  }
}

module attributes {stable_mosaic.version = 11 : i64} {
  func.func @_mm_bias_act_kernel(%arg0: i32, %arg1: i32, %arg2: i32, %arg3: memref<512x72xf32, #tpu.memory_space<vmem>>, %arg4: memref<72x128xf32, #tpu.memory_space<vmem>>, %arg5: memref<1x128xf32, #tpu.memory_space<vmem>>, %arg6: memref<512x128xf32, #tpu.memory_space<vmem>>, %arg7: memref<512x128xf32, #tpu.memory_space<vmem>>) attributes {dimension_semantics = [#tpu.dimension_semantics<parallel>, #tpu.dimension_semantics<parallel>, #tpu.dimension_semantics<arbitrary>], iteration_bounds = array<i64: 1, 1, 1>, scalar_prefetch = 0 : i64, scratch_operands = 1 : i64, tpu.core_type = #tpu.core_type<tc>, window_params = [{transform_indices = @transform_0, window_bounds = array<i64: 512, 72>}, {transform_indices = @transform_1, window_bounds = array<i64: 72, 128>}, {transform_indices = @transform_2, window_bounds = array<i64: 1, 128>}, {transform_indices = @transform_3, window_bounds = array<i64: 512, 128>}]} {
    %c0_i32 = arith.constant 0 : i32
    %0 = arith.cmpi eq, %arg2, %c0_i32 : i32
    %1 = arith.extui %0 : i1 to i32
    %c0_i32_0 = arith.constant 0 : i32
    %2 = arith.cmpi ne, %1, %c0_i32_0 : i32
    scf.if %2 {
      %cst_10 = arith.constant 0.000000e+00 : f32
      %12 = vector.broadcast %cst_10 : f32 to vector<512x128xf32>
      %c0_11 = arith.constant 0 : index
      %c0_12 = arith.constant 0 : index
      %13 = vector.load %arg7[%c0_11, %c0_12] : memref<512x128xf32, #tpu.memory_space<vmem>>, vector<512x128xf32>
      tpu.vector_store %arg7[%c0_11, %c0_12], %12 {strides = array<i32>} : memref<512x128xf32, #tpu.memory_space<vmem>>, vector<512x128xf32>,
    } else {
    }
    %c0 = arith.constant 0 : index
    %c0_1 = arith.constant 0 : index
    %3 = vector.load %arg7[%c0, %c0_1] : memref<512x128xf32, #tpu.memory_space<vmem>>, vector<512x128xf32>
    %c0_2 = arith.constant 0 : index
    %c0_3 = arith.constant 0 : index
    %4 = vector.load %arg3[%c0_2, %c0_3] : memref<512x72xf32, #tpu.memory_space<vmem>>, vector<512x72xf32>
    %c0_4 = arith.constant 0 : index
    %c0_5 = arith.constant 0 : index
    %5 = vector.load %arg4[%c0_4, %c0_5] : memref<72x128xf32, #tpu.memory_space<vmem>>, vector<72x128xf32>
    %cst = arith.constant dense<0.000000e+00> : vector<512x128xf32>
    %6 = tpu.matmul %4, %5, %cst {dimension_numbers = #tpu.dot_dimension_numbers<[1], [0], [0], [1], [0, 0, 1, 1], [], []>} : vector<512x72xf32>, vector<72x128xf32>, vector<512x128xf32> -> vector<512x128xf32>
    %7 = arith.addf %3, %6 : vector<512x128xf32>
    %c0_6 = arith.constant 0 : index
    %c0_7 = arith.constant 0 : index
    %8 = vector.load %arg7[%c0_6, %c0_7] : memref<512x128xf32, #tpu.memory_space<vmem>>, vector<512x128xf32>
    tpu.vector_store %arg7[%c0_6, %c0_7], %7 {strides = array<i32>} : memref<512x128xf32, #tpu.memory_space<vmem>>, vector<512x128xf32>,
    %c0_i32_8 = arith.constant 0 : i32
    %9 = arith.cmpi eq, %arg2, %c0_i32_8 : i32
    %10 = arith.extui %9 : i1 to i32
    %c0_i32_9 = arith.constant 0 : i32
    %11 = arith.cmpi ne, %10, %c0_i32_9 : i32
    scf.if %11 {
      %c0_10 = arith.constant 0 : index
      %c0_11 = arith.constant 0 : index
      %12 = vector.load %arg7[%c0_10, %c0_11] : memref<512x128xf32, #tpu.memory_space<vmem>>, vector<512x128xf32>
      %c0_12 = arith.constant 0 : index
      %c0_13 = arith.constant 0 : index
      %13 = vector.load %arg5[%c0_12, %c0_13] : memref<1x128xf32, #tpu.memory_space<vmem>>, vector<1x128xf32>
      %14 = vector.broadcast %13 : vector<1x128xf32> to vector<512x128xf32>
      %15 = arith.addf %12, %14 : vector<512x128xf32>
      %cst_14 = arith.constant 0.000000e+00 : f32
      %16 = vector.broadcast %cst_14 : f32 to vector<512x128xf32>
      %17 = arith.cmpf oge, %15, %16 : vector<512x128xf32>
      %cst_15 = arith.constant 2.000000e-01 : f32
      %18 = vector.broadcast %cst_15 : f32 to vector<512x128xf32>
      %19 = arith.mulf %18, %15 : vector<512x128xf32>
      %20 = arith.select %17, %15, %19 : vector<512x128xi1>, vector<512x128xf32>
      %cst_16 = arith.constant 1.41421354 : f32
      %21 = vector.broadcast %cst_16 : f32 to vector<512x128xf32>
      %22 = arith.mulf %20, %21 : vector<512x128xf32>
      %c0_17 = arith.constant 0 : index
      %c0_18 = arith.constant 0 : index
      %23 = vector.load %arg6[%c0_17, %c0_18] : memref<512x128xf32, #tpu.memory_space<vmem>>, vector<512x128xf32>
      tpu.vector_store %arg6[%c0_17, %c0_18], %22 {strides = array<i32>} : memref<512x128xf32, #tpu.memory_space<vmem>>, vector<512x128xf32>,
    } else {
    }
    return
  }
  func.func @transform_0(%arg0: i32, %arg1: i32, %arg2: i32) -> (i32, i32) {
    %c0_i32 = arith.constant 0 : i32
    return %arg0, %arg2 : i32, i32
  }
  func.func @transform_1(%arg0: i32, %arg1: i32, %arg2: i32) -> (i32, i32) {
    %c0_i32 = arith.constant 0 : i32
    return %arg2, %arg1 : i32, i32
  }
  func.func @transform_2(%arg0: i32, %arg1: i32, %arg2: i32) -> (i32, i32) {
    %c0_i32 = arith.constant 0 : i32
    %c0_i32_0 = arith.constant 0 : i32
    return %c0_i32, %arg1 : i32, i32
  }
  func.func @transform_3(%arg0: i32, %arg1: i32, %arg2: i32) -> (i32, i32) {
    %c0_i32 = arith.constant 0 : i32
    return %arg0, %arg1 : i32, i32
  }
}

module attributes {stable_mosaic.version = 11 : i64} {
  func.func @_upsample_add_kernel(%arg0: i32, %arg1: memref<1x10x10x3xf32, #tpu.memory_space<vmem>>, %arg2: memref<1x4x8x8x3xf32, #tpu.memory_space<vmem>>, %arg3: memref<1x4x8x8x3xf32, #tpu.memory_space<vmem>>) attributes {dimension_semantics = [#tpu.dimension_semantics<parallel>], iteration_bounds = array<i64: 2>, scalar_prefetch = 0 : i64, scratch_operands = 0 : i64, tpu.core_type = #tpu.core_type<tc>, window_params = [{transform_indices = @transform_0, window_bounds = array<i64: 1, 10, 10, 3>}, {transform_indices = @transform_1, window_bounds = array<i64: 1, 4, 8, 8, 3>}, {transform_indices = @transform_2, window_bounds = array<i64: 1, 4, 8, 8, 3>}]} {
    %c0 = arith.constant 0 : index
    %c0_0 = arith.constant 0 : index
    %c0_1 = arith.constant 0 : index
    %c0_2 = arith.constant 0 : index
    %0 = vector.load %arg1[%c0, %c0_0, %c0_1, %c0_2] : memref<1x10x10x3xf32, #tpu.memory_space<vmem>>, vector<1x8x8x3xf32>
    %1 = vector.shape_cast %0 : vector<1x8x8x3xf32> to vector<8x8x3xf32>
    %cst = arith.constant 6.250000e-02 : f32
    %2 = vector.broadcast %cst : f32 to vector<8x8x3xf32>
    %3 = arith.mulf %1, %2 : vector<8x8x3xf32>
    %c0_3 = arith.constant 0 : index
    %c0_4 = arith.constant 0 : index
    %c1 = arith.constant 1 : index
    %c0_5 = arith.constant 0 : index
    %4 = vector.load %arg1[%c0_3, %c0_4, %c1, %c0_5] : memref<1x10x10x3xf32, #tpu.memory_space<vmem>>, vector<1x8x8x3xf32>
    %5 = vector.shape_cast %4 : vector<1x8x8x3xf32> to vector<8x8x3xf32>
    %cst_6 = arith.constant 1.875000e-01 : f32
    %6 = vector.broadcast %cst_6 : f32 to vector<8x8x3xf32>
    %7 = arith.mulf %5, %6 : vector<8x8x3xf32>
    %8 = arith.addf %3, %7 : vector<8x8x3xf32>
    %c0_7 = arith.constant 0 : index
    %c1_8 = arith.constant 1 : index
    %c0_9 = arith.constant 0 : index
    %c0_10 = arith.constant 0 : index
    %9 = vector.load %arg1[%c0_7, %c1_8, %c0_9, %c0_10] : memref<1x10x10x3xf32, #tpu.memory_space<vmem>>, vector<1x8x8x3xf32>
    %10 = vector.shape_cast %9 : vector<1x8x8x3xf32> to vector<8x8x3xf32>
    %cst_11 = arith.constant 1.875000e-01 : f32
    %11 = vector.broadcast %cst_11 : f32 to vector<8x8x3xf32>
    %12 = arith.mulf %10, %11 : vector<8x8x3xf32>
    %13 = arith.addf %8, %12 : vector<8x8x3xf32>
    %c0_12 = arith.constant 0 : index
    %c1_13 = arith.constant 1 : index
    %c1_14 = arith.constant 1 : index
    %c0_15 = arith.constant 0 : index
    %14 = vector.load %arg1[%c0_12, %c1_13, %c1_14, %c0_15] : memref<1x10x10x3xf32, #tpu.memory_space<vmem>>, vector<1x8x8x3xf32>
    %15 = vector.shape_cast %14 : vector<1x8x8x3xf32> to vector<8x8x3xf32>
    %cst_16 = arith.constant 5.625000e-01 : f32
    %16 = vector.broadcast %cst_16 : f32 to vector<8x8x3xf32>
    %17 = arith.mulf %15, %16 : vector<8x8x3xf32>
    %18 = arith.addf %13, %17 : vector<8x8x3xf32>
    %c0_17 = arith.constant 0 : index
    %c0_18 = arith.constant 0 : index
    %c0_19 = arith.constant 0 : index
    %c0_20 = arith.constant 0 : index
    %c0_21 = arith.constant 0 : index
    %19 = vector.load %arg2[%c0_17, %c0_18, %c0_19, %c0_20, %c0_21] : memref<1x4x8x8x3xf32, #tpu.memory_space<vmem>>, vector<1x1x8x8x3xf32>
    %20 = vector.shape_cast %19 : vector<1x1x8x8x3xf32> to vector<8x8x3xf32>
    %21 = arith.addf %18, %20 : vector<8x8x3xf32>
    %c0_22 = arith.constant 0 : index
    %c0_23 = arith.constant 0 : index
    %c0_24 = arith.constant 0 : index
    %c0_25 = arith.constant 0 : index
    %c0_26 = arith.constant 0 : index
    %22 = vector.load %arg3[%c0_22, %c0_23, %c0_24, %c0_25, %c0_26] : memref<1x4x8x8x3xf32, #tpu.memory_space<vmem>>, vector<1x1x8x8x3xf32>
    %23 = vector.shape_cast %22 : vector<1x1x8x8x3xf32> to vector<8x8x3xf32>
    %24 = vector.shape_cast %21 : vector<8x8x3xf32> to vector<1x1x8x8x3xf32>
    tpu.vector_store %arg3[%c0_22, %c0_23, %c0_24, %c0_25, %c0_26], %24 {strides = array<i32>} : memref<1x4x8x8x3xf32, #tpu.memory_space<vmem>>, vector<1x1x8x8x3xf32>,
    %c0_27 = arith.constant 0 : index
    %c0_28 = arith.constant 0 : index
    %c1_29 = arith.constant 1 : index
    %c0_30 = arith.constant 0 : index
    %25 = vector.load %arg1[%c0_27, %c0_28, %c1_29, %c0_30] : memref<1x10x10x3xf32, #tpu.memory_space<vmem>>, vector<1x8x8x3xf32>
    %26 = vector.shape_cast %25 : vector<1x8x8x3xf32> to vector<8x8x3xf32>
    %cst_31 = arith.constant 1.875000e-01 : f32
    %27 = vector.broadcast %cst_31 : f32 to vector<8x8x3xf32>
    %28 = arith.mulf %26, %27 : vector<8x8x3xf32>
    %c0_32 = arith.constant 0 : index
    %c0_33 = arith.constant 0 : index
    %c2 = arith.constant 2 : index
    %c0_34 = arith.constant 0 : index
    %29 = vector.load %arg1[%c0_32, %c0_33, %c2, %c0_34] : memref<1x10x10x3xf32, #tpu.memory_space<vmem>>, vector<1x8x8x3xf32>
    %30 = vector.shape_cast %29 : vector<1x8x8x3xf32> to vector<8x8x3xf32>
    %cst_35 = arith.constant 6.250000e-02 : f32
    %31 = vector.broadcast %cst_35 : f32 to vector<8x8x3xf32>
    %32 = arith.mulf %30, %31 : vector<8x8x3xf32>
    %33 = arith.addf %28, %32 : vector<8x8x3xf32>
    %c0_36 = arith.constant 0 : index
    %c1_37 = arith.constant 1 : index
    %c1_38 = arith.constant 1 : index
    %c0_39 = arith.constant 0 : index
    %34 = vector.load %arg1[%c0_36, %c1_37, %c1_38, %c0_39] : memref<1x10x10x3xf32, #tpu.memory_space<vmem>>, vector<1x8x8x3xf32>
    %35 = vector.shape_cast %34 : vector<1x8x8x3xf32> to vector<8x8x3xf32>
    %cst_40 = arith.constant 5.625000e-01 : f32
    %36 = vector.broadcast %cst_40 : f32 to vector<8x8x3xf32>
    %37 = arith.mulf %35, %36 : vector<8x8x3xf32>
    %38 = arith.addf %33, %37 : vector<8x8x3xf32>
    %c0_41 = arith.constant 0 : index
    %c1_42 = arith.constant 1 : index
    %c2_43 = arith.constant 2 : index
    %c0_44 = arith.constant 0 : index
    %39 = vector.load %arg1[%c0_41, %c1_42, %c2_43, %c0_44] : memref<1x10x10x3xf32, #tpu.memory_space<vmem>>, vector<1x8x8x3xf32>
    %40 = vector.shape_cast %39 : vector<1x8x8x3xf32> to vector<8x8x3xf32>
    %cst_45 = arith.constant 1.875000e-01 : f32
    %41 = vector.broadcast %cst_45 : f32 to vector<8x8x3xf32>
    %42 = arith.mulf %40, %41 : vector<8x8x3xf32>
    %43 = arith.addf %38, %42 : vector<8x8x3xf32>
    %c0_46 = arith.constant 0 : index
    %c1_47 = arith.constant 1 : index
    %c0_48 = arith.constant 0 : index
    %c0_49 = arith.constant 0 : index
    %c0_50 = arith.constant 0 : index
    %44 = vector.load %arg2[%c0_46, %c1_47, %c0_48, %c0_49, %c0_50] : memref<1x4x8x8x3xf32, #tpu.memory_space<vmem>>, vector<1x1x8x8x3xf32>
    %45 = vector.shape_cast %44 : vector<1x1x8x8x3xf32> to vector<8x8x3xf32>
    %46 = arith.addf %43, %45 : vector<8x8x3xf32>
    %c0_51 = arith.constant 0 : index
    %c1_52 = arith.constant 1 : index
    %c0_53 = arith.constant 0 : index
    %c0_54 = arith.constant 0 : index
    %c0_55 = arith.constant 0 : index
    %47 = vector.load %arg3[%c0_51, %c1_52, %c0_53, %c0_54, %c0_55] : memref<1x4x8x8x3xf32, #tpu.memory_space<vmem>>, vector<1x1x8x8x3xf32>
    %48 = vector.shape_cast %47 : vector<1x1x8x8x3xf32> to vector<8x8x3xf32>
    %49 = vector.shape_cast %46 : vector<8x8x3xf32> to vector<1x1x8x8x3xf32>
    tpu.vector_store %arg3[%c0_51, %c1_52, %c0_53, %c0_54, %c0_55], %49 {strides = array<i32>} : memref<1x4x8x8x3xf32, #tpu.memory_space<vmem>>, vector<1x1x8x8x3xf32>,
    %c0_56 = arith.constant 0 : index
    %c1_57 = arith.constant 1 : index
    %c0_58 = arith.constant 0 : index
    %c0_59 = arith.constant 0 : index
    %50 = vector.load %arg1[%c0_56, %c1_57, %c0_58, %c0_59] : memref<1x10x10x3xf32, #tpu.memory_space<vmem>>, vector<1x8x8x3xf32>
    %51 = vector.shape_cast %50 : vector<1x8x8x3xf32> to vector<8x8x3xf32>
    %cst_60 = arith.constant 1.875000e-01 : f32
    %52 = vector.broadcast %cst_60 : f32 to vector<8x8x3xf32>
    %53 = arith.mulf %51, %52 : vector<8x8x3xf32>
    %c0_61 = arith.constant 0 : index
    %c1_62 = arith.constant 1 : index
    %c1_63 = arith.constant 1 : index
    %c0_64 = arith.constant 0 : index
    %54 = vector.load %arg1[%c0_61, %c1_62, %c1_63, %c0_64] : memref<1x10x10x3xf32, #tpu.memory_space<vmem>>, vector<1x8x8x3xf32>
    %55 = vector.shape_cast %54 : vector<1x8x8x3xf32> to vector<8x8x3xf32>
    %cst_65 = arith.constant 5.625000e-01 : f32
    %56 = vector.broadcast %cst_65 : f32 to vector<8x8x3xf32>
    %57 = arith.mulf %55, %56 : vector<8x8x3xf32>
    %58 = arith.addf %53, %57 : vector<8x8x3xf32>
    %c0_66 = arith.constant 0 : index
    %c2_67 = arith.constant 2 : index
    %c0_68 = arith.constant 0 : index
    %c0_69 = arith.constant 0 : index
    %59 = vector.load %arg1[%c0_66, %c2_67, %c0_68, %c0_69] : memref<1x10x10x3xf32, #tpu.memory_space<vmem>>, vector<1x8x8x3xf32>
    %60 = vector.shape_cast %59 : vector<1x8x8x3xf32> to vector<8x8x3xf32>
    %cst_70 = arith.constant 6.250000e-02 : f32
    %61 = vector.broadcast %cst_70 : f32 to vector<8x8x3xf32>
    %62 = arith.mulf %60, %61 : vector<8x8x3xf32>
    %63 = arith.addf %58, %62 : vector<8x8x3xf32>
    %c0_71 = arith.constant 0 : index
    %c2_72 = arith.constant 2 : index
    %c1_73 = arith.constant 1 : index
    %c0_74 = arith.constant 0 : index
    %64 = vector.load %arg1[%c0_71, %c2_72, %c1_73, %c0_74] : memref<1x10x10x3xf32, #tpu.memory_space<vmem>>, vector<1x8x8x3xf32>
    %65 = vector.shape_cast %64 : vector<1x8x8x3xf32> to vector<8x8x3xf32>
    %cst_75 = arith.constant 1.875000e-01 : f32
    %66 = vector.broadcast %cst_75 : f32 to vector<8x8x3xf32>
    %67 = arith.mulf %65, %66 : vector<8x8x3xf32>
    %68 = arith.addf %63, %67 : vector<8x8x3xf32>
    %c0_76 = arith.constant 0 : index
    %c2_77 = arith.constant 2 : index
    %c0_78 = arith.constant 0 : index
    %c0_79 = arith.constant 0 : index
    %c0_80 = arith.constant 0 : index
    %69 = vector.load %arg2[%c0_76, %c2_77, %c0_78, %c0_79, %c0_80] : memref<1x4x8x8x3xf32, #tpu.memory_space<vmem>>, vector<1x1x8x8x3xf32>
    %70 = vector.shape_cast %69 : vector<1x1x8x8x3xf32> to vector<8x8x3xf32>
    %71 = arith.addf %68, %70 : vector<8x8x3xf32>
    %c0_81 = arith.constant 0 : index
    %c2_82 = arith.constant 2 : index
    %c0_83 = arith.constant 0 : index
    %c0_84 = arith.constant 0 : index
    %c0_85 = arith.constant 0 : index
    %72 = vector.load %arg3[%c0_81, %c2_82, %c0_83, %c0_84, %c0_85] : memref<1x4x8x8x3xf32, #tpu.memory_space<vmem>>, vector<1x1x8x8x3xf32>
    %73 = vector.shape_cast %72 : vector<1x1x8x8x3xf32> to vector<8x8x3xf32>
    %74 = vector.shape_cast %71 : vector<8x8x3xf32> to vector<1x1x8x8x3xf32>
    tpu.vector_store %arg3[%c0_81, %c2_82, %c0_83, %c0_84, %c0_85], %74 {strides = array<i32>} : memref<1x4x8x8x3xf32, #tpu.memory_space<vmem>>, vector<1x1x8x8x3xf32>,
    %c0_86 = arith.constant 0 : index
    %c1_87 = arith.constant 1 : index
    %c1_88 = arith.constant 1 : index
    %c0_89 = arith.constant 0 : index
    %75 = vector.load %arg1[%c0_86, %c1_87, %c1_88, %c0_89] : memref<1x10x10x3xf32, #tpu.memory_space<vmem>>, vector<1x8x8x3xf32>
    %76 = vector.shape_cast %75 : vector<1x8x8x3xf32> to vector<8x8x3xf32>
    %cst_90 = arith.constant 5.625000e-01 : f32
    %77 = vector.broadcast %cst_90 : f32 to vector<8x8x3xf32>
    %78 = arith.mulf %76, %77 : vector<8x8x3xf32>
    %c0_91 = arith.constant 0 : index
    %c1_92 = arith.constant 1 : index
    %c2_93 = arith.constant 2 : index
    %c0_94 = arith.constant 0 : index
    %79 = vector.load %arg1[%c0_91, %c1_92, %c2_93, %c0_94] : memref<1x10x10x3xf32, #tpu.memory_space<vmem>>, vector<1x8x8x3xf32>
    %80 = vector.shape_cast %79 : vector<1x8x8x3xf32> to vector<8x8x3xf32>
    %cst_95 = arith.constant 1.875000e-01 : f32
    %81 = vector.broadcast %cst_95 : f32 to vector<8x8x3xf32>
    %82 = arith.mulf %80, %81 : vector<8x8x3xf32>
    %83 = arith.addf %78, %82 : vector<8x8x3xf32>
    %c0_96 = arith.constant 0 : index
    %c2_97 = arith.constant 2 : index
    %c1_98 = arith.constant 1 : index
    %c0_99 = arith.constant 0 : index
    %84 = vector.load %arg1[%c0_96, %c2_97, %c1_98, %c0_99] : memref<1x10x10x3xf32, #tpu.memory_space<vmem>>, vector<1x8x8x3xf32>
    %85 = vector.shape_cast %84 : vector<1x8x8x3xf32> to vector<8x8x3xf32>
    %cst_100 = arith.constant 1.875000e-01 : f32
    %86 = vector.broadcast %cst_100 : f32 to vector<8x8x3xf32>
    %87 = arith.mulf %85, %86 : vector<8x8x3xf32>
    %88 = arith.addf %83, %87 : vector<8x8x3xf32>
    %c0_101 = arith.constant 0 : index
    %c2_102 = arith.constant 2 : index
    %c2_103 = arith.constant 2 : index
    %c0_104 = arith.constant 0 : index
    %89 = vector.load %arg1[%c0_101, %c2_102, %c2_103, %c0_104] : memref<1x10x10x3xf32, #tpu.memory_space<vmem>>, vector<1x8x8x3xf32>
    %90 = vector.shape_cast %89 : vector<1x8x8x3xf32> to vector<8x8x3xf32>
    %cst_105 = arith.constant 6.250000e-02 : f32
    %91 = vector.broadcast %cst_105 : f32 to vector<8x8x3xf32>
    %92 = arith.mulf %90, %91 : vector<8x8x3xf32>
    %93 = arith.addf %88, %92 : vector<8x8x3xf32>
    %c0_106 = arith.constant 0 : index
    %c3 = arith.constant 3 : index
    %c0_107 = arith.constant 0 : index
    %c0_108 = arith.constant 0 : index
    %c0_109 = arith.constant 0 : index
    %94 = vector.load %arg2[%c0_106, %c3, %c0_107, %c0_108, %c0_109] : memref<1x4x8x8x3xf32, #tpu.memory_space<vmem>>, vector<1x1x8x8x3xf32>
    %95 = vector.shape_cast %94 : vector<1x1x8x8x3xf32> to vector<8x8x3xf32>
    %96 = arith.addf %93, %95 : vector<8x8x3xf32>
    %c0_110 = arith.constant 0 : index
    %c3_111 = arith.constant 3 : index
    %c0_112 = arith.constant 0 : index
    %c0_113 = arith.constant 0 : index
    %c0_114 = arith.constant 0 : index
    %97 = vector.load %arg3[%c0_110, %c3_111, %c0_112, %c0_113, %c0_114] : memref<1x4x8x8x3xf32, #tpu.memory_space<vmem>>, vector<1x1x8x8x3xf32>
    %98 = vector.shape_cast %97 : vector<1x1x8x8x3xf32> to vector<8x8x3xf32>
    %99 = vector.shape_cast %96 : vector<8x8x3xf32> to vector<1x1x8x8x3xf32>
    tpu.vector_store %arg3[%c0_110, %c3_111, %c0_112, %c0_113, %c0_114], %99 {strides = array<i32>} : memref<1x4x8x8x3xf32, #tpu.memory_space<vmem>>, vector<1x1x8x8x3xf32>,
    return
  }
  func.func @transform_0(%arg0: i32) -> (i32, i32, i32, i32) {
    %c0_i32 = arith.constant 0 : i32
    %c0_i32_0 = arith.constant 0 : i32
    %c0_i32_1 = arith.constant 0 : i32
    %c0_i32_2 = arith.constant 0 : i32
    return %arg0, %c0_i32, %c0_i32_0, %c0_i32_1 : i32, i32, i32, i32
  }
  func.func @transform_1(%arg0: i32) -> (i32, i32, i32, i32, i32) {
    %c0_i32 = arith.constant 0 : i32
    %c0_i32_0 = arith.constant 0 : i32
    %c0_i32_1 = arith.constant 0 : i32
    %c0_i32_2 = arith.constant 0 : i32
    %c0_i32_3 = arith.constant 0 : i32
    return %arg0, %c0_i32, %c0_i32_0, %c0_i32_1, %c0_i32_2 : i32, i32, i32, i32, i32
  }
  func.func @transform_2(%arg0: i32) -> (i32, i32, i32, i32, i32) {
    %c0_i32 = arith.constant 0 : i32
    %c0_i32_0 = arith.constant 0 : i32
    %c0_i32_1 = arith.constant 0 : i32
    %c0_i32_2 = arith.constant 0 : i32
    %c0_i32_3 = arith.constant 0 : i32
    return %arg0, %c0_i32, %c0_i32_0, %c0_i32_1, %c0_i32_2 : i32, i32, i32, i32, i32
  }
}

</mosaic_0001>

<bundles_post_ra>
// kernel: tile.8
= control target key start
LH: loop header
LB: loop body
LE: loop exit
PB: predicated region body
PF: predicated region fallthrough
CT: control target
= control target key end

     0   :  { %s22_s0 = inlined_call_operand.vmem [shape: f32[8], index: 0, kind: input, shape index: {}]   ;;  %s23_s1 = inlined_call_operand.vmem [shape: f32[4,8], index: 1, kind: output, shape index: {}]  }
   0x1   :  { %v4_v0 = vld [vmem:[%s22_s0] ss:$0 sm:$0xff] }
   0x2   :  { %5 = vst [vmem:[%s23_s1] sm:$0xf] %v4_v0 }

// kernel: tile.9
= control target key start
LH: loop header
LB: loop body
LE: loop exit
PB: predicated region body
PF: predicated region fallthrough
CT: control target
= control target key end

     0   :  { %vm7_vm0 = vcmask 64512   ;;  %s37_s8 = smov 8   ;;  %s38_s9 = smov 16   ;;  %vm13_vm1 = vcmask 261312   ;;  %vm19_vm2 = vcmask 195712   ;;  %vm25_vm3 = vcmask 130112   ;;  %s55_s0 = inlined_call_operand.vmem [shape: f32[4,8], index: 0, kind: input, shape index: {}]   ;;  %s56_s1 = inlined_call_operand.vmem [shape: f32[32], index: 1, kind: output, shape index: {}]  }
   0x1   :  { %v4_v0 = vld [vmem:[%s55_s0] sm:$0xf]  ;;  %s36_s0 = smov 24  }
   0x2   :  { %5 = vst [vmem:[#allocation1] sm:$0xf] %v4_v0 }
   0x9   :  { %v10_v1 = vld [vmem:[#allocation1 + $0x3] sm:$0x1]   ;;  %v22_v2 = vld [vmem:[#allocation1 + $0x1] sm:$0x1]   ;;  %v6_v3 = vld [vmem:[#allocation1] sm:$0x1]  }
   0xa   :  { %11 = vrot.lane.b32.xlu0 %v10_v1, %s36_s0  ;;  %23 = vrot.lane.b32.xlu1 %v22_v2, %s37_s8  ;;  %v16_v4 = vld [vmem:[#allocation1 + $0x2] sm:$0x1]   ;;  %8 = vst.msk [vmem:[#allocation0] sm:$0x1] %vm7_vm0, %v6_v3  }
   0xe   :  { %17 = vrot.lane.b32.xlu0 %v16_v4, %s38_s9 }
  0x7c   :  { %v12_v5 = vpop.permute.xlu0 %11   ;;  %v24_v6 = vpop.permute.xlu1 %23  }
  0x7d   :  { %14 = vst.msk [vmem:[#allocation0] sm:$0x1] %vm13_vm1, %v12_v5  }
  0x80   :  { %v18_v7 = vpop.permute.xlu0 %17  }
  0x81   :  { %20 = vst.msk [vmem:[#allocation0] sm:$0x1] %vm19_vm2, %v18_v7  }
  0x82   :  { %26 = vst.msk [vmem:[#allocation0] sm:$0x1] %vm25_vm3, %v24_v6  }
  0x89   :  { %v30_v8 = vld [vmem:[#allocation0] sm:$0x1] }
  0x8a   :  { %32 = vst [vmem:[%s56_s1] sm:$0x1] %v30_v8 }

// kernel: decoder_block_forward.4
= control target key start
LH: loop header
LB: loop body
LE: loop exit
PB: predicated region body
PF: predicated region fallthrough
CT: control target
= control target key end

     0   :  { %vm71_vm0 = vcmask 326656   ;;  %s679_s1 = inlined_call_operand.vmem [shape: f32[40,128], index: 1, kind: input, shape index: {}]   ;;  %s680_s0 = inlined_call_operand.vmem [shape: f32[128,40], index: 0, kind: input, shape index: {}]   ;;  %s681_s2 = inlined_call_operand.vmem [shape: f32[1,128], index: 2, kind: input, shape index: {}]   ;;  %s682_s3 = inlined_call_operand.vmem [shape: f32[128,128], index: 3, kind: output, shape index: {}]  }
   0x1   :  { %v66_v0 = vld [vmem:[%s679_s1] sm:$0xff]  ;;  %v67_v1 = vld [vmem:[%s679_s1 + $0x8] sm:$0xff]  ;;  %v68_v2 = vld [vmem:[%s679_s1 + $0x10] sm:$0xff] }
   0x2   :  { %v495_v3 = vpack.c.bf16 %v67_v1, %v66_v0  ;;  %v69_v4 = vld [vmem:[%s679_s1 + $0x18] sm:$0xff]  ;;  %v50_v5 = vld [vmem:[%s680_s0] sm:$0xff]  ;;  %v51_v9 = vld [vmem:[%s680_s0 + $0x8] sm:$0xff] }
   0x3   :  { %v499_v6 = vpack.c.bf16 %v69_v4, %v68_v2  ;;  %471 = vmatprep.mubr.msk.f32.mxu0 %vm71_vm0, %v50_v5  ;;  %v58_v7 = vld [vmem:[%s680_s0 + $0x40] sm:$0xff]  ;;  %v59_v10 = vld [vmem:[%s680_s0 + $0x48] sm:$0xff]  ;;  %v52_v11 = vld [vmem:[%s680_s0 + $0x10] sm:$0xff] }
   0x4   :  { %496 = vmatprep.subr.bf16.mxu0 %v495_v3  ;;  %503 = vmatprep.subr.bf16.mxu1 %v495_v3  ;;  %v70_v8 = vld [vmem:[%s679_s1 + $0x20] sm:$0xff]  ;;  %v60_v12 = vld [vmem:[%s680_s0 + $0x50] sm:$0xff]  ;;  %v53_v13 = vld [vmem:[%s680_s0 + $0x18] sm:$0xff] }
   0x5   :  { %498 = vmatpush3.bf16.msra.mxu0 %v495_v3  ;;  %506 = vmatpush3.bf16.msra.mxu1 %v495_v3  ;;  %v61_v14 = vld [vmem:[%s680_s0 + $0x58] sm:$0xff]  ;;  %v54_v15 = vld [vmem:[%s680_s0 + $0x20] sm:$0xff]  ;;  %v55_v17 = vld [vmem:[%s680_s0 + $0x28] sm:$0xff] }
   0x6   :  { %500 = vmatprep.subr.bf16.mxu0 %v499_v6  ;;  %504 = vmatprep.subr.bf16.mxu1 %v499_v6  ;;  %v62_v16 = vld [vmem:[%s680_s0 + $0x60] sm:$0xff]  ;;  %v63_v18 = vld [vmem:[%s680_s0 + $0x68] sm:$0xff]  ;;  %v56_v19 = vld [vmem:[%s680_s0 + $0x30] sm:$0xff] }
   0x7   :  { %483 = vmatprep.mubr.msk.f32.mxu1 %vm71_vm0, %v58_v7  ;;  %v64_v20 = vld [vmem:[%s680_s0 + $0x70] sm:$0xff]  ;;  %v57_v21 = vld [vmem:[%s680_s0 + $0x38] sm:$0xff]  ;;  %v611_v23 = vld [vmem:[%s681_s2] ss:$0 sm:$0xff] }
   0x8   :  { %v65_v22 = vld [vmem:[%s680_s0 + $0x78] sm:$0xff] }
   0x9   :  { %502 = vmatpush3.bf16.msra.mxu0 %v499_v6  ;;  %507 = vmatpush3.bf16.msra.mxu1 %v499_v6 }
   0xa   :  { %469 = vmatprep.subr.mxu0 %v70_v8  ;;  %505 = vmatprep.subr.mxu1 %v70_v8 }
   0xd   :  { %470 = vmatpush3.msra.mxu0 %v70_v8  ;;  %508 = vmatpush3.msra.mxu1 %v70_v8 }
   0xe   :  { %472 = vmatmul.mubr.msk.f32.vlgmr.msra.gmra.mrb[0].mxu0 %vm71_vm0, %v51_v9  ;;  %484 = vmatmul.mubr.msk.f32.vlgmr.msra.gmra.mrb[0].mxu1 %vm71_vm0, %v59_v10 }
   0xf   :  { %474 = vmatprep.mubr.msk.f32.mxu0 %vm71_vm0, %v52_v11  ;;  %486 = vmatprep.mubr.msk.f32.mxu1 %vm71_vm0, %v60_v12 }
  0x12   :  { %475 = vmatmul.mubr.msk.f32.gmra.mrb[2].mxu0 %vm71_vm0, %v53_v13  ;;  %487 = vmatmul.mubr.msk.f32.gmra.mrb[2].mxu1 %vm71_vm0, %v61_v14 }
  0x13   :  { %477 = vmatprep.mubr.msk.f32.mxu0 %vm71_vm0, %v54_v15  ;;  %489 = vmatprep.mubr.msk.f32.mxu1 %vm71_vm0, %v62_v16 }
  0x16   :  { %478 = vmatmul.mubr.msk.f32.gmra.mrb[4].mxu0 %vm71_vm0, %v55_v17  ;;  %490 = vmatmul.mubr.msk.f32.gmra.mrb[4].mxu1 %vm71_vm0, %v63_v18 }
  0x17   :  { %480 = vmatprep.mubr.msk.f32.mxu0 %vm71_vm0, %v56_v19  ;;  %492 = vmatprep.mubr.msk.f32.mxu1 %vm71_vm0, %v64_v20 }
  0x1a   :  { %481 = vmatmul.mubr.msk.f32.gmra.mrb[6].mxu0 %vm71_vm0, %v57_v21  ;;  %493 = vmatmul.mubr.msk.f32.gmra.mrb[6].mxu1 %vm71_vm0, %v65_v22 }
  0xe1   :  { %v473_v24 = vpop.f32.mrb[0].mxu0  ;;  %v485_v25 = vpop.f32.mrb[0].mxu1 }
  0xe2   :  { %v324_v26 = vadd.f32 %v473_v24, %v611_v23  ;;  %v332_v27 = vadd.f32 %v485_v25, %v611_v23  ;;  %v186_v28 = vpop.f32.mrb[1].mxu0  ;;  %v226_v29 = vpop.f32.mrb[1].mxu1 }
  0xe3   :  { %v323_v30 = vadd.f32 %v611_v23, %v186_v28  ;;  %v331_v31 = vadd.f32 %v611_v23, %v226_v29 }
  0xe4   :  { %vm340_vm1 = vcmp.ge.f32.partialorder %v324_v26, 0.0  ;;  %v356_v32 = vmul.f32 0.2, %v324_v26  ;;  %vm348_vm2 = vcmp.ge.f32.partialorder %v332_v27, 0.0  ;;  %v364_v33 = vmul.f32 0.2, %v332_v27 }
  0xe5   :  { %vm339_vm3 = vcmp.ge.f32.partialorder %v323_v30, 0.0  ;;  %v355_v34 = vmul.f32 0.2, %v323_v30  ;;  %vm347_vm4 = vcmp.ge.f32.partialorder %v331_v31, 0.0  ;;  %v363_v35 = vmul.f32 0.2, %v331_v31 }
  0xe6   :  { %v372_v36 = vsel %vm340_vm1, %v324_v26, %v356_v32  ;;  %v380_v37 = vsel %vm348_vm2, %v332_v27, %v364_v33  ;;  %v476_v38 = vpop.f32.mrb[2].mxu0  ;;  %v488_v39 = vpop.f32.mrb[2].mxu1 }
  0xe7   :  { %v388_v40 = vmul.f32 1.4142135, %v372_v36  ;;  %v396_v41 = vmul.f32 1.4142135, %v380_v37  ;;  %v371_v42 = vsel %vm339_vm3, %v323_v30, %v355_v34  ;;  %v379_v43 = vsel %vm347_vm4, %v331_v31, %v363_v35  ;;  %v196_v44 = vpop.f32.mrb[3].mxu0  ;;  %v236_v45 = vpop.f32.mrb[3].mxu1 }
  0xe8   :  { %v387_v46 = vmul.f32 1.4142135, %v371_v42  ;;  %v395_v47 = vmul.f32 1.4142135, %v379_v43  ;;  %v326_v48 = vadd.f32 %v476_v38, %v611_v23  ;;  %v334_v49 = vadd.f32 %v488_v39, %v611_v23 }
  0xe9   :  { %404 = vst [vmem:[%s682_s3 + $0x8] sm:$0xff] %v388_v40  ;;  %412 = vst [vmem:[%s682_s3 + $0x48] sm:$0xff] %v396_v41  ;;  %v325_v50 = vadd.f32 %v611_v23, %v196_v44  ;;  %v333_v51 = vadd.f32 %v611_v23, %v236_v45  ;;  %v479_v52 = vpop.f32.mrb[4].mxu0  ;;  %v491_v53 = vpop.f32.mrb[4].mxu1 }
  0xea   :  { %403 = vst [vmem:[%s682_s3] sm:$0xff] %v387_v46  ;;  %411 = vst [vmem:[%s682_s3 + $0x40] sm:$0xff] %v395_v47  ;;  %vm342_vm5 = vcmp.ge.f32.partialorder %v326_v48, 0.0  ;;  %v358_v54 = vmul.f32 0.2, %v326_v48  ;;  %vm350_vm6 = vcmp.ge.f32.partialorder %v334_v49, 0.0  ;;  %v328_v60 = vadd.f32 %v479_v52, %v611_v23  ;;  %v206_v62 = vpop.f32.mrb[5].mxu0 }
  0xeb   :  { %v366_v55 = vmul.f32 0.2, %v334_v49  ;;  %vm341_vm7 = vcmp.ge.f32.partialorder %v325_v50, 0.0  ;;  %v357_v56 = vmul.f32 0.2, %v325_v50  ;;  %vm349_vm8 = vcmp.ge.f32.partialorder %v333_v51, 0.0 }
  0xec   :  { %v365_v57 = vmul.f32 0.2, %v333_v51  ;;  %v374_v58 = vsel %vm342_vm5, %v326_v48, %v358_v54  ;;  %v336_v61 = vadd.f32 %v491_v53, %v611_v23  ;;  %v246_v63 = vpop.f32.mrb[5].mxu1  ;;  %vm344_vm9 = vcmp.ge.f32.partialorder %v328_v60, 0.0 }
  0xed   :  { %v382_v59 = vsel %vm350_vm6, %v334_v49, %v366_v55  ;;  %v390_v0 = vmul.f32 1.4142135, %v374_v58  ;;  %v373_v2 = vsel %vm341_vm7, %v325_v50, %v357_v56  ;;  %v482_v4 = vpop.f32.mrb[6].mxu0  ;;  %v494_v5 = vpop.f32.mrb[6].mxu1  ;;  %v360_v8 = vmul.f32 0.2, %v328_v60 }
  0xee   :  { %v398_v1 = vmul.f32 1.4142135, %v382_v59  ;;  %v381_v3 = vsel %vm349_vm8, %v333_v51, %v365_v57  ;;  %v389_v6 = vmul.f32 1.4142135, %v373_v2  ;;  %vm352_vm10 = vcmp.ge.f32.partialorder %v336_v61, 0.0  ;;  %v216_v12 = vpop.f32.mrb[7].mxu0 }
  0xef   :  { %v397_v7 = vmul.f32 1.4142135, %v381_v3  ;;  %406 = vst [vmem:[%s682_s3 + $0x18] sm:$0xff] %v390_v0  ;;  %v368_v9 = vmul.f32 0.2, %v336_v61  ;;  %v327_v10 = vadd.f32 %v611_v23, %v206_v62  ;;  %v335_v11 = vadd.f32 %v611_v23, %v246_v63  ;;  %v256_v13 = vpop.f32.mrb[7].mxu1 }
  0xf0   :  { %414 = vst [vmem:[%s682_s3 + $0x58] sm:$0xff] %v398_v1  ;;  %405 = vst [vmem:[%s682_s3 + $0x10] sm:$0xff] %v389_v6  ;;  %v330_v14 = vadd.f32 %v482_v4, %v611_v23  ;;  %v338_v15 = vadd.f32 %v494_v5, %v611_v23  ;;  %v329_v16 = vadd.f32 %v611_v23, %v216_v12 }
  0xf1   :  { %413 = vst [vmem:[%s682_s3 + $0x50] sm:$0xff] %v397_v7  ;;  %v337_v17 = vadd.f32 %v611_v23, %v256_v13  ;;  %v376_v18 = vsel %vm344_vm9, %v328_v60, %v360_v8  ;;  %v384_v19 = vsel %vm352_vm10, %v336_v61, %v368_v9  ;;  %vm343_vm11 = vcmp.ge.f32.partialorder %v327_v10, 0.0 }
  0xf2   :  { %v359_v20 = vmul.f32 0.2, %v327_v10  ;;  %v392_v21 = vmul.f32 1.4142135, %v376_v18  ;;  %v400_v22 = vmul.f32 1.4142135, %v384_v19 }
  0xf3   :  { %vm351_vm12 = vcmp.ge.f32.partialorder %v335_v11, 0.0  ;;  %vm346_vm13 = vcmp.ge.f32.partialorder %v330_v14, 0.0  ;;  %v367_v25 = vmul.f32 0.2, %v335_v11  ;;  %v362_v26 = vmul.f32 0.2, %v330_v14 }
  0xf4   :  { %v375_v24 = vsel %vm343_vm11, %v327_v10, %v359_v20  ;;  %vm354_vm14 = vcmp.ge.f32.partialorder %v338_v15, 0.0  ;;  %408 = vst [vmem:[%s682_s3 + $0x28] sm:$0xff] %v392_v21  ;;  %416 = vst [vmem:[%s682_s3 + $0x68] sm:$0xff] %v400_v22  ;;  %v370_v27 = vmul.f32 0.2, %v338_v15  ;;  %vm345_vm15 = vcmp.ge.f32.partialorder %v329_v16, 0.0 }
  0xf5   :  { %v391_v23 = vmul.f32 1.4142135, %v375_v24  ;;  %vm353_vm0 = vcmp.ge.f32.partialorder %v337_v17, 0.0  ;;  %v383_v28 = vsel %vm351_vm12, %v335_v11, %v367_v25  ;;  %v378_v29 = vsel %vm346_vm13, %v330_v14, %v362_v26 }
  0xf6   :  { %v361_v30 = vmul.f32 0.2, %v329_v16  ;;  %v369_v31 = vmul.f32 0.2, %v337_v17  ;;  %v399_v32 = vmul.f32 1.4142135, %v383_v28  ;;  %v386_v34 = vsel %vm354_vm14, %v338_v15, %v370_v27 }
  0xf7   :  { %407 = vst [vmem:[%s682_s3 + $0x20] sm:$0xff] %v391_v23  ;;  %v394_v33 = vmul.f32 1.4142135, %v378_v29  ;;  %v402_v35 = vmul.f32 1.4142135, %v386_v34 }
  0xf8   :  { %v377_v36 = vsel %vm345_vm15, %v329_v16, %v361_v30  ;;  %v385_v37 = vsel %vm353_vm0, %v337_v17, %v369_v31  ;;  %415 = vst [vmem:[%s682_s3 + $0x60] sm:$0xff] %v399_v32 }
  0xf9   :  { %410 = vst [vmem:[%s682_s3 + $0x38] sm:$0xff] %v394_v33  ;;  %v393_v38 = vmul.f32 1.4142135, %v377_v36  ;;  %v401_v39 = vmul.f32 1.4142135, %v385_v37  ;;  %418 = vst [vmem:[%s682_s3 + $0x78] sm:$0xff] %v402_v35 }
  0xfb   :  { %409 = vst [vmem:[%s682_s3 + $0x30] sm:$0xff] %v393_v38  ;;  %417 = vst [vmem:[%s682_s3 + $0x70] sm:$0xff] %v401_v39 }

// kernel: decoder_block_forward.6
= control target key start
LH: loop header
LB: loop body
LE: loop exit
PB: predicated region body
PF: predicated region fallthrough
CT: control target
= control target key end

     0   :  { %vm211_vm0 = vcmask 64512   ;;  %s2213_s1 = inlined_call_operand.vmem [shape: f32[8,128], index: 1, kind: input, shape index: {}]   ;;  %s2214_s0 = inlined_call_operand.vmem [shape: f32[512,8], index: 0, kind: input, shape index: {}]   ;;  %s2215_s2 = inlined_call_operand.vmem [shape: f32[1,128], index: 2, kind: input, shape index: {}]   ;;  %s2216_s3 = inlined_call_operand.vmem [shape: f32[512,128], index: 3, kind: output, shape index: {}]  }
   0x1   :  { %v210_v0 = vld [vmem:[%s2213_s1] sm:$0xff]  ;;  %v147_v3 = vld [vmem:[%s2214_s0 + $0x8] sm:$0xff]  ;;  %v148_v5 = vld [vmem:[%s2214_s0 + $0x10] sm:$0xff] }
   0x2   :  { %v146_v1 = vld [vmem:[%s2214_s0] sm:$0xff]  ;;  %1509 = vmatprep.subr.mxu0 %v210_v0  ;;  %1607 = vmatprep.subr.mxu1 %v210_v0  ;;  %v179_v4 = vld [vmem:[%s2214_s0 + $0x108] sm:$0xff]  ;;  %v180_v6 = vld [vmem:[%s2214_s0 + $0x110] sm:$0xff] }
   0x3   :  { %v178_v2 = vld [vmem:[%s2214_s0 + $0x100] sm:$0xff]  ;;  %1510 = vmatpush3.msra.mxu0 %v210_v0  ;;  %1608 = vmatpush3.msra.mxu1 %v210_v0  ;;  %v149_v7 = vld [vmem:[%s2214_s0 + $0x18] sm:$0xff]  ;;  %v151_v11 = vld [vmem:[%s2214_s0 + $0x28] sm:$0xff] }
   0x4   :  { %1511 = vmatprep.mubr.msk.f32.mxu0 %vm211_vm0, %v146_v1  ;;  %1559 = vmatprep.mubr.msk.f32.mxu1 %vm211_vm0, %v178_v2  ;;  %v181_v8 = vld [vmem:[%s2214_s0 + $0x118] sm:$0xff]  ;;  %v150_v9 = vld [vmem:[%s2214_s0 + $0x20] sm:$0xff]  ;;  %v183_v12 = vld [vmem:[%s2214_s0 + $0x128] sm:$0xff] }
   0x5   :  { %1512 = vmatmul.mubr.msk.f32.vlgmr.msra.gmra.mrb[0].mxu0 %vm211_vm0, %v147_v3  ;;  %1560 = vmatmul.mubr.msk.f32.vlgmr.msra.gmra.mrb[0].mxu1 %vm211_vm0, %v179_v4  ;;  %v182_v10 = vld [vmem:[%s2214_s0 + $0x120] sm:$0xff]  ;;  %v152_v13 = vld [vmem:[%s2214_s0 + $0x30] sm:$0xff]  ;;  %v153_v15 = vld [vmem:[%s2214_s0 + $0x38] sm:$0xff] }
   0x6   :  { %1514 = vmatprep.mubr.msk.f32.mxu0 %vm211_vm0, %v148_v5  ;;  %1562 = vmatprep.mubr.msk.f32.mxu1 %vm211_vm0, %v180_v6  ;;  %v184_v14 = vld [vmem:[%s2214_s0 + $0x130] sm:$0xff]  ;;  %v185_v16 = vld [vmem:[%s2214_s0 + $0x138] sm:$0xff]  ;;  %v154_v17 = vld [vmem:[%s2214_s0 + $0x40] sm:$0xff] }
   0x7   :  { %v186_v18 = vld [vmem:[%s2214_s0 + $0x140] sm:$0xff]  ;;  %v155_v19 = vld [vmem:[%s2214_s0 + $0x48] sm:$0xff]  ;;  %v156_v21 = vld [vmem:[%s2214_s0 + $0x50] sm:$0xff] }
   0x8   :  { %v187_v20 = vld [vmem:[%s2214_s0 + $0x148] sm:$0xff]  ;;  %v188_v22 = vld [vmem:[%s2214_s0 + $0x150] sm:$0xff]  ;;  %v157_v23 = vld [vmem:[%s2214_s0 + $0x58] sm:$0xff] }
   0x9   :  { %1515 = vmatmul.mubr.msk.f32.gmra.mrb[2].mxu0 %vm211_vm0, %v149_v7  ;;  %1563 = vmatmul.mubr.msk.f32.gmra.mrb[2].mxu1 %vm211_vm0, %v181_v8  ;;  %v189_v24 = vld [vmem:[%s2214_s0 + $0x158] sm:$0xff]  ;;  %v158_v25 = vld [vmem:[%s2214_s0 + $0x60] sm:$0xff]  ;;  %v159_v27 = vld [vmem:[%s2214_s0 + $0x68] sm:$0xff] }
   0xa   :  { %1517 = vmatprep.mubr.msk.f32.mxu0 %vm211_vm0, %v150_v9  ;;  %1565 = vmatprep.mubr.msk.f32.mxu1 %vm211_vm0, %v182_v10  ;;  %v190_v26 = vld [vmem:[%s2214_s0 + $0x160] sm:$0xff]  ;;  %v191_v28 = vld [vmem:[%s2214_s0 + $0x168] sm:$0xff]  ;;  %v160_v29 = vld [vmem:[%s2214_s0 + $0x70] sm:$0xff] }
   0xb   :  { %v192_v30 = vld [vmem:[%s2214_s0 + $0x170] sm:$0xff]  ;;  %v161_v31 = vld [vmem:[%s2214_s0 + $0x78] sm:$0xff]  ;;  %v162_v33 = vld [vmem:[%s2214_s0 + $0x80] sm:$0xff] }
   0xc   :  { %v193_v32 = vld [vmem:[%s2214_s0 + $0x178] sm:$0xff]  ;;  %v194_v34 = vld [vmem:[%s2214_s0 + $0x180] sm:$0xff]  ;;  %v163_v35 = vld [vmem:[%s2214_s0 + $0x88] sm:$0xff] }
   0xd   :  { %1518 = vmatmul.mubr.msk.f32.gmra.mrb[4].mxu0 %vm211_vm0, %v151_v11  ;;  %1566 = vmatmul.mubr.msk.f32.gmra.mrb[4].mxu1 %vm211_vm0, %v183_v12  ;;  %v195_v36 = vld [vmem:[%s2214_s0 + $0x188] sm:$0xff]  ;;  %v164_v37 = vld [vmem:[%s2214_s0 + $0x90] sm:$0xff]  ;;  %v165_v39 = vld [vmem:[%s2214_s0 + $0x98] sm:$0xff] }
   0xe   :  { %1520 = vmatprep.mubr.msk.f32.mxu0 %vm211_vm0, %v152_v13  ;;  %1568 = vmatprep.mubr.msk.f32.mxu1 %vm211_vm0, %v184_v14  ;;  %v196_v38 = vld [vmem:[%s2214_s0 + $0x190] sm:$0xff]  ;;  %v197_v40 = vld [vmem:[%s2214_s0 + $0x198] sm:$0xff]  ;;  %v166_v41 = vld [vmem:[%s2214_s0 + $0xa0] sm:$0xff] }
   0xf   :  { %v198_v42 = vld [vmem:[%s2214_s0 + $0x1a0] sm:$0xff]  ;;  %v167_v43 = vld [vmem:[%s2214_s0 + $0xa8] sm:$0xff]  ;;  %v168_v45 = vld [vmem:[%s2214_s0 + $0xb0] sm:$0xff] }
  0x10   :  { %v199_v44 = vld [vmem:[%s2214_s0 + $0x1a8] sm:$0xff]  ;;  %v200_v46 = vld [vmem:[%s2214_s0 + $0x1b0] sm:$0xff]  ;;  %v169_v47 = vld [vmem:[%s2214_s0 + $0xb8] sm:$0xff] }
  0x11   :  { %1521 = vmatmul.mubr.msk.f32.gmra.mrb[6].mxu0 %vm211_vm0, %v153_v15  ;;  %1569 = vmatmul.mubr.msk.f32.gmra.mrb[6].mxu1 %vm211_vm0, %v185_v16  ;;  %v201_v48 = vld [vmem:[%s2214_s0 + $0x1b8] sm:$0xff]  ;;  %v170_v49 = vld [vmem:[%s2214_s0 + $0xc0] sm:$0xff]  ;;  %v171_v51 = vld [vmem:[%s2214_s0 + $0xc8] sm:$0xff] }
  0x12   :  { %1523 = vmatprep.mubr.msk.f32.mxu0 %vm211_vm0, %v154_v17  ;;  %1571 = vmatprep.mubr.msk.f32.mxu1 %vm211_vm0, %v186_v18  ;;  %v202_v50 = vld [vmem:[%s2214_s0 + $0x1c0] sm:$0xff]  ;;  %v203_v52 = vld [vmem:[%s2214_s0 + $0x1c8] sm:$0xff]  ;;  %v172_v53 = vld [vmem:[%s2214_s0 + $0xd0] sm:$0xff] }
  0x13   :  { %v204_v54 = vld [vmem:[%s2214_s0 + $0x1d0] sm:$0xff]  ;;  %v173_v55 = vld [vmem:[%s2214_s0 + $0xd8] sm:$0xff]  ;;  %v174_v57 = vld [vmem:[%s2214_s0 + $0xe0] sm:$0xff] }
  0x14   :  { %v205_v56 = vld [vmem:[%s2214_s0 + $0x1d8] sm:$0xff]  ;;  %v206_v58 = vld [vmem:[%s2214_s0 + $0x1e0] sm:$0xff]  ;;  %v175_v59 = vld [vmem:[%s2214_s0 + $0xe8] sm:$0xff] }
  0x15   :  { %1524 = vmatmul.mubr.msk.f32.gmra.mrb[8].mxu0 %vm211_vm0, %v155_v19  ;;  %1572 = vmatmul.mubr.msk.f32.gmra.mrb[8].mxu1 %vm211_vm0, %v187_v20  ;;  %v207_v60 = vld [vmem:[%s2214_s0 + $0x1e8] sm:$0xff]  ;;  %v176_v61 = vld [vmem:[%s2214_s0 + $0xf0] sm:$0xff]  ;;  %v177_v63 = vld [vmem:[%s2214_s0 + $0xf8] sm:$0xff] }
  0x16   :  { %1526 = vmatprep.mubr.msk.f32.mxu0 %vm211_vm0, %v156_v21  ;;  %1574 = vmatprep.mubr.msk.f32.mxu1 %vm211_vm0, %v188_v22  ;;  %v208_v62 = vld [vmem:[%s2214_s0 + $0x1f0] sm:$0xff]  ;;  %v209_v0 = vld [vmem:[%s2214_s0 + $0x1f8] sm:$0xff]  ;;  %v1891_v1 = vld [vmem:[%s2215_s2] ss:$0 sm:$0xff] }
  0x19   :  { %1527 = vmatmul.mubr.msk.f32.gmra.mrb[10].mxu0 %vm211_vm0, %v157_v23  ;;  %1575 = vmatmul.mubr.msk.f32.gmra.mrb[10].mxu1 %vm211_vm0, %v189_v24 }
  0x1a   :  { %1529 = vmatprep.mubr.msk.f32.mxu0 %vm211_vm0, %v158_v25  ;;  %1577 = vmatprep.mubr.msk.f32.mxu1 %vm211_vm0, %v190_v26 }
  0x1d   :  { %1530 = vmatmul.mubr.msk.f32.gmra.mrb[12].mxu0 %vm211_vm0, %v159_v27  ;;  %1578 = vmatmul.mubr.msk.f32.gmra.mrb[12].mxu1 %vm211_vm0, %v191_v28 }
  0x1e   :  { %1532 = vmatprep.mubr.msk.f32.mxu0 %vm211_vm0, %v160_v29  ;;  %1580 = vmatprep.mubr.msk.f32.mxu1 %vm211_vm0, %v192_v30 }
  0x21   :  { %1533 = vmatmul.mubr.msk.f32.gmra.mrb[14].mxu0 %vm211_vm0, %v161_v31  ;;  %1581 = vmatmul.mubr.msk.f32.gmra.mrb[14].mxu1 %vm211_vm0, %v193_v32 }
  0x22   :  { %1535 = vmatprep.mubr.msk.f32.mxu0 %vm211_vm0, %v162_v33  ;;  %1583 = vmatprep.mubr.msk.f32.mxu1 %vm211_vm0, %v194_v34 }
  0x25   :  { %1536 = vmatmul.mubr.msk.f32.gmra.mrb[16].mxu0 %vm211_vm0, %v163_v35  ;;  %1584 = vmatmul.mubr.msk.f32.gmra.mrb[16].mxu1 %vm211_vm0, %v195_v36 }
  0x26   :  { %1538 = vmatprep.mubr.msk.f32.mxu0 %vm211_vm0, %v164_v37  ;;  %1586 = vmatprep.mubr.msk.f32.mxu1 %vm211_vm0, %v196_v38 }
  0x29   :  { %1539 = vmatmul.mubr.msk.f32.gmra.mrb[18].mxu0 %vm211_vm0, %v165_v39  ;;  %1587 = vmatmul.mubr.msk.f32.gmra.mrb[18].mxu1 %vm211_vm0, %v197_v40 }
  0x2a   :  { %1541 = vmatprep.mubr.msk.f32.mxu0 %vm211_vm0, %v166_v41  ;;  %1589 = vmatprep.mubr.msk.f32.mxu1 %vm211_vm0, %v198_v42 }
  0x2d   :  { %1542 = vmatmul.mubr.msk.f32.gmra.mrb[20].mxu0 %vm211_vm0, %v167_v43  ;;  %1590 = vmatmul.mubr.msk.f32.gmra.mrb[20].mxu1 %vm211_vm0, %v199_v44 }
  0x2e   :  { %1544 = vmatprep.mubr.msk.f32.mxu0 %vm211_vm0, %v168_v45  ;;  %1592 = vmatprep.mubr.msk.f32.mxu1 %vm211_vm0, %v200_v46 }
  0x31   :  { %1545 = vmatmul.mubr.msk.f32.gmra.mrb[22].mxu0 %vm211_vm0, %v169_v47  ;;  %1593 = vmatmul.mubr.msk.f32.gmra.mrb[22].mxu1 %vm211_vm0, %v201_v48 }
  0x32   :  { %1547 = vmatprep.mubr.msk.f32.mxu0 %vm211_vm0, %v170_v49  ;;  %1595 = vmatprep.mubr.msk.f32.mxu1 %vm211_vm0, %v202_v50 }
  0x35   :  { %1548 = vmatmul.mubr.msk.f32.gmra.mrb[24].mxu0 %vm211_vm0, %v171_v51  ;;  %1596 = vmatmul.mubr.msk.f32.gmra.mrb[24].mxu1 %vm211_vm0, %v203_v52 }
  0x36   :  { %1550 = vmatprep.mubr.msk.f32.mxu0 %vm211_vm0, %v172_v53  ;;  %1598 = vmatprep.mubr.msk.f32.mxu1 %vm211_vm0, %v204_v54 }
  0x39   :  { %1551 = vmatmul.mubr.msk.f32.gmra.mrb[26].mxu0 %vm211_vm0, %v173_v55  ;;  %1599 = vmatmul.mubr.msk.f32.gmra.mrb[26].mxu1 %vm211_vm0, %v205_v56 }
  0x3a   :  { %1553 = vmatprep.mubr.msk.f32.mxu0 %vm211_vm0, %v174_v57  ;;  %1601 = vmatprep.mubr.msk.f32.mxu1 %vm211_vm0, %v206_v58 }
  0x3d   :  { %1554 = vmatmul.mubr.msk.f32.gmra.mrb[28].mxu0 %vm211_vm0, %v175_v59  ;;  %1602 = vmatmul.mubr.msk.f32.gmra.mrb[28].mxu1 %vm211_vm0, %v207_v60 }
  0x3e   :  { %1556 = vmatprep.mubr.msk.f32.mxu0 %vm211_vm0, %v176_v61  ;;  %1604 = vmatprep.mubr.msk.f32.mxu1 %vm211_vm0, %v208_v62 }
  0x41   :  { %1557 = vmatmul.mubr.msk.f32.gmra.mrb[30].mxu0 %vm211_vm0, %v177_v63  ;;  %1605 = vmatmul.mubr.msk.f32.gmra.mrb[30].mxu1 %vm211_vm0, %v209_v0 }
  0xd8   :  { %v1513_v2 = vpop.f32.mrb[0].mxu0  ;;  %v1561_v3 = vpop.f32.mrb[0].mxu1 }
  0xd9   :  { %v992_v4 = vadd.f32 %v1513_v2, %v1891_v1  ;;  %v1024_v5 = vadd.f32 %v1561_v3, %v1891_v1  ;;  %v470_v6 = vpop.f32.mrb[1].mxu0  ;;  %v630_v7 = vpop.f32.mrb[1].mxu1 }
  0xda   :  { %v991_v8 = vadd.f32 %v1891_v1, %v470_v6  ;;  %v1023_v9 = vadd.f32 %v1891_v1, %v630_v7 }
  0xdb   :  { %vm1056_vm1 = vcmp.ge.f32.partialorder %v992_v4, 0.0  ;;  %v1120_v10 = vmul.f32 0.2, %v992_v4  ;;  %vm1088_vm2 = vcmp.ge.f32.partialorder %v1024_v5, 0.0  ;;  %v1152_v11 = vmul.f32 0.2, %v1024_v5 }
  0xdc   :  { %vm1055_vm3 = vcmp.ge.f32.partialorder %v991_v8, 0.0  ;;  %v1119_v12 = vmul.f32 0.2, %v991_v8  ;;  %vm1087_vm4 = vcmp.ge.f32.partialorder %v1023_v9, 0.0  ;;  %v1151_v13 = vmul.f32 0.2, %v1023_v9 }
  0xdd   :  { %v1184_v14 = vsel %vm1056_vm1, %v992_v4, %v1120_v10  ;;  %v1216_v15 = vsel %vm1088_vm2, %v1024_v5, %v1152_v11  ;;  %v1516_v16 = vpop.f32.mrb[2].mxu0  ;;  %v1564_v17 = vpop.f32.mrb[2].mxu1 }
  0xde   :  { %v1248_v18 = vmul.f32 1.4142135, %v1184_v14  ;;  %v1280_v19 = vmul.f32 1.4142135, %v1216_v15  ;;  %v1183_v20 = vsel %vm1055_vm3, %v991_v8, %v1119_v12  ;;  %v1215_v21 = vsel %vm1087_vm4, %v1023_v9, %v1151_v13  ;;  %v480_v22 = vpop.f32.mrb[3].mxu0  ;;  %v640_v23 = vpop.f32.mrb[3].mxu1 }
  0xdf   :  { %v1247_v24 = vmul.f32 1.4142135, %v1183_v20  ;;  %v1279_v25 = vmul.f32 1.4142135, %v1215_v21  ;;  %v994_v26 = vadd.f32 %v1516_v16, %v1891_v1  ;;  %v1026_v27 = vadd.f32 %v1564_v17, %v1891_v1 }
  0xe0   :  { %1312 = vst [vmem:[%s2216_s3 + $0x8] sm:$0xff] %v1248_v18  ;;  %1344 = vst [vmem:[%s2216_s3 + $0x108] sm:$0xff] %v1280_v19  ;;  %v993_v28 = vadd.f32 %v1891_v1, %v480_v22  ;;  %v1025_v29 = vadd.f32 %v1891_v1, %v640_v23  ;;  %v1519_v30 = vpop.f32.mrb[4].mxu0  ;;  %v1567_v31 = vpop.f32.mrb[4].mxu1 }
  0xe1   :  { %1311 = vst [vmem:[%s2216_s3] sm:$0xff] %v1247_v24  ;;  %1343 = vst [vmem:[%s2216_s3 + $0x100] sm:$0xff] %v1279_v25  ;;  %vm1058_vm5 = vcmp.ge.f32.partialorder %v994_v26, 0.0  ;;  %v1122_v32 = vmul.f32 0.2, %v994_v26  ;;  %vm1090_vm6 = vcmp.ge.f32.partialorder %v1026_v27, 0.0  ;;  %v996_v38 = vadd.f32 %v1519_v30, %v1891_v1  ;;  %v490_v40 = vpop.f32.mrb[5].mxu0 }
  0xe2   :  { %v1154_v33 = vmul.f32 0.2, %v1026_v27  ;;  %vm1057_vm7 = vcmp.ge.f32.partialorder %v993_v28, 0.0  ;;  %v1121_v34 = vmul.f32 0.2, %v993_v28  ;;  %vm1089_vm8 = vcmp.ge.f32.partialorder %v1025_v29, 0.0 }
  0xe3   :  { %v1153_v35 = vmul.f32 0.2, %v1025_v29  ;;  %v1186_v36 = vsel %vm1058_vm5, %v994_v26, %v1122_v32  ;;  %v1028_v39 = vadd.f32 %v1567_v31, %v1891_v1  ;;  %v650_v41 = vpop.f32.mrb[5].mxu1  ;;  %vm1060_vm9 = vcmp.ge.f32.partialorder %v996_v38, 0.0 }
  0xe4   :  { %v1218_v37 = vsel %vm1090_vm6, %v1026_v27, %v1154_v33  ;;  %v1250_v42 = vmul.f32 1.4142135, %v1186_v36  ;;  %v1185_v44 = vsel %vm1057_vm7, %v993_v28, %v1121_v34  ;;  %v1522_v46 = vpop.f32.mrb[6].mxu0  ;;  %v1570_v47 = vpop.f32.mrb[6].mxu1  ;;  %v1124_v50 = vmul.f32 0.2, %v996_v38 }
  0xe5   :  { %v1282_v43 = vmul.f32 1.4142135, %v1218_v37  ;;  %v1217_v45 = vsel %vm1089_vm8, %v1025_v29, %v1153_v35  ;;  %v1249_v48 = vmul.f32 1.4142135, %v1185_v44  ;;  %vm1092_vm10 = vcmp.ge.f32.partialorder %v1028_v39, 0.0  ;;  %v500_v54 = vpop.f32.mrb[7].mxu0 }
  0xe6   :  { %v1281_v49 = vmul.f32 1.4142135, %v1217_v45  ;;  %1314 = vst [vmem:[%s2216_s3 + $0x18] sm:$0xff] %v1250_v42  ;;  %v1156_v51 = vmul.f32 0.2, %v1028_v39  ;;  %v995_v52 = vadd.f32 %v1891_v1, %v490_v40  ;;  %v1027_v53 = vadd.f32 %v1891_v1, %v650_v41  ;;  %v660_v55 = vpop.f32.mrb[7].mxu1 }
  0xe7   :  { %1346 = vst [vmem:[%s2216_s3 + $0x118] sm:$0xff] %v1282_v43  ;;  %1313 = vst [vmem:[%s2216_s3 + $0x10] sm:$0xff] %v1249_v48  ;;  %v998_v56 = vadd.f32 %v1522_v46, %v1891_v1  ;;  %v1030_v57 = vadd.f32 %v1570_v47, %v1891_v1  ;;  %v997_v58 = vadd.f32 %v1891_v1, %v500_v54 }
  0xe8   :  { %1345 = vst [vmem:[%s2216_s3 + $0x110] sm:$0xff] %v1281_v49  ;;  %v1029_v59 = vadd.f32 %v1891_v1, %v660_v55  ;;  %v1188_v60 = vsel %vm1060_vm9, %v996_v38, %v1124_v50  ;;  %v1220_v61 = vsel %vm1092_vm10, %v1028_v39, %v1156_v51  ;;  %vm1059_vm11 = vcmp.ge.f32.partialorder %v995_v52, 0.0  ;;  %v1525_v63 = vpop.f32.mrb[8].mxu0  ;;  %v1573_v0 = vpop.f32.mrb[8].mxu1 }
  0xe9   :  { %v1123_v62 = vmul.f32 0.2, %v995_v52  ;;  %v1252_v2 = vmul.f32 1.4142135, %v1188_v60  ;;  %v1284_v3 = vmul.f32 1.4142135, %v1220_v61  ;;  %v1000_v19 = vadd.f32 %v1525_v63, %v1891_v1 }
  0xea   :  { %vm1091_vm12 = vcmp.ge.f32.partialorder %v1027_v53, 0.0  ;;  %vm1062_vm13 = vcmp.ge.f32.partialorder %v998_v56, 0.0  ;;  %v1155_v5 = vmul.f32 0.2, %v1027_v53  ;;  %v1126_v6 = vmul.f32 0.2, %v998_v56 }
  0xeb   :  { %v1187_v4 = vsel %vm1059_vm11, %v995_v52, %v1123_v62  ;;  %vm1094_vm14 = vcmp.ge.f32.partialorder %v1030_v57, 0.0  ;;  %v510_v7 = vpop.f32.mrb[9].mxu0  ;;  %1316 = vst [vmem:[%s2216_s3 + $0x28] sm:$0xff] %v1252_v2  ;;  %1348 = vst [vmem:[%s2216_s3 + $0x128] sm:$0xff] %v1284_v3  ;;  %v1158_v9 = vmul.f32 0.2, %v1030_v57  ;;  %v1032_v25 = vadd.f32 %v1573_v0, %v1891_v1 }
  0xec   :  { %v1251_v8 = vmul.f32 1.4142135, %v1187_v4  ;;  %vm1061_vm15 = vcmp.ge.f32.partialorder %v997_v58, 0.0  ;;  %vm1093_vm0 = vcmp.ge.f32.partialorder %v1029_v59, 0.0  ;;  %v1219_v10 = vsel %vm1091_vm12, %v1027_v53, %v1155_v5  ;;  %v670_v14 = vpop.f32.mrb[9].mxu1  ;;  %v1528_v15 = vpop.f32.mrb[10].mxu0 }
  0xed   :  { %v1190_v11 = vsel %vm1062_vm13, %v998_v56, %v1126_v6  ;;  %v1125_v12 = vmul.f32 0.2, %v997_v58  ;;  %v1157_v13 = vmul.f32 0.2, %v1029_v59  ;;  %v1283_v16 = vmul.f32 1.4142135, %v1219_v10 }
  0xee   :  { %1315 = vst [vmem:[%s2216_s3 + $0x20] sm:$0xff] %v1251_v8  ;;  %v1254_v17 = vmul.f32 1.4142135, %v1190_v11  ;;  %v1222_v18 = vsel %vm1094_vm14, %v1030_v57, %v1158_v9  ;;  %v1576_v20 = vpop.f32.mrb[10].mxu1  ;;  %v520_v21 = vpop.f32.mrb[11].mxu0  ;;  %vm1064_vm1 = vcmp.ge.f32.partialorder %v1000_v19, 0.0  ;;  %v999_v29 = vadd.f32 %v1891_v1, %v510_v7 }
  0xef   :  { %v1286_v22 = vmul.f32 1.4142135, %v1222_v18  ;;  %v1189_v23 = vsel %vm1061_vm15, %v997_v58, %v1125_v12  ;;  %v1221_v24 = vsel %vm1093_vm0, %v1029_v59, %v1157_v13  ;;  %v680_v26 = vpop.f32.mrb[11].mxu1  ;;  %1347 = vst [vmem:[%s2216_s3 + $0x120] sm:$0xff] %v1283_v16  ;;  %v1128_v30 = vmul.f32 0.2, %v1000_v19 }
  0xf0   :  { %1318 = vst [vmem:[%s2216_s3 + $0x38] sm:$0xff] %v1254_v17  ;;  %v1253_v27 = vmul.f32 1.4142135, %v1189_v23  ;;  %v1285_v28 = vmul.f32 1.4142135, %v1221_v24  ;;  %vm1096_vm2 = vcmp.ge.f32.partialorder %v1032_v25, 0.0  ;;  %v1031_v32 = vadd.f32 %v1891_v1, %v670_v14 }
  0xf1   :  { %1350 = vst [vmem:[%s2216_s3 + $0x138] sm:$0xff] %v1286_v22  ;;  %v1160_v31 = vmul.f32 0.2, %v1032_v25  ;;  %v1531_v33 = vpop.f32.mrb[12].mxu0  ;;  %vm1063_vm3 = vcmp.ge.f32.partialorder %v999_v29, 0.0  ;;  %v1002_v35 = vadd.f32 %v1528_v15, %v1891_v1  ;;  %v1034_v36 = vadd.f32 %v1576_v20, %v1891_v1  ;;  %v1579_v37 = vpop.f32.mrb[12].mxu1 }
  0xf2   :  { %1317 = vst [vmem:[%s2216_s3 + $0x30] sm:$0xff] %v1253_v27  ;;  %1349 = vst [vmem:[%s2216_s3 + $0x130] sm:$0xff] %v1285_v28  ;;  %v1127_v34 = vmul.f32 0.2, %v999_v29  ;;  %v530_v38 = vpop.f32.mrb[13].mxu0  ;;  %v1192_v39 = vsel %vm1064_vm1, %v1000_v19, %v1128_v30  ;;  %vm1095_vm4 = vcmp.ge.f32.partialorder %v1031_v32, 0.0  ;;  %v1001_v52 = vadd.f32 %v1891_v1, %v520_v21 }
  0xf3   :  { %v1224_v40 = vsel %vm1096_vm2, %v1032_v25, %v1160_v31  ;;  %v1159_v41 = vmul.f32 0.2, %v1031_v32  ;;  %v690_v42 = vpop.f32.mrb[13].mxu1  ;;  %v1256_v43 = vmul.f32 1.4142135, %v1192_v39  ;;  %vm1066_vm5 = vcmp.ge.f32.partialorder %v1002_v35, 0.0 }
  0xf4   :  { %v1288_v44 = vmul.f32 1.4142135, %v1224_v40  ;;  %v1191_v45 = vsel %vm1063_vm3, %v999_v29, %v1127_v34  ;;  %v1130_v48 = vmul.f32 0.2, %v1002_v35  ;;  %vm1098_vm6 = vcmp.ge.f32.partialorder %v1034_v36, 0.0  ;;  %v1534_v49 = vpop.f32.mrb[14].mxu0 }
  0xf5   :  { %v1255_v46 = vmul.f32 1.4142135, %v1191_v45  ;;  %v1223_v47 = vsel %vm1095_vm4, %v1031_v32, %v1159_v41  ;;  %1320 = vst [vmem:[%s2216_s3 + $0x48] sm:$0xff] %v1256_v43  ;;  %v1162_v51 = vmul.f32 0.2, %v1034_v36  ;;  %v1033_v53 = vadd.f32 %v1891_v1, %v680_v26  ;;  %v1582_v54 = vpop.f32.mrb[14].mxu1 }
  0xf6   :  { %1352 = vst [vmem:[%s2216_s3 + $0x148] sm:$0xff] %v1288_v44  ;;  %v1287_v50 = vmul.f32 1.4142135, %v1223_v47  ;;  %v540_v55 = vpop.f32.mrb[15].mxu0  ;;  %v1194_v56 = vsel %vm1066_vm5, %v1002_v35, %v1130_v48  ;;  %v1004_v57 = vadd.f32 %v1531_v33, %v1891_v1  ;;  %v1036_v58 = vadd.f32 %v1579_v37, %v1891_v1  ;;  %v700_v60 = vpop.f32.mrb[15].mxu1 }
  0xf7   :  { %1319 = vst [vmem:[%s2216_s3 + $0x40] sm:$0xff] %v1255_v46  ;;  %v1003_v59 = vadd.f32 %v1891_v1, %v530_v38  ;;  %v1258_v61 = vmul.f32 1.4142135, %v1194_v56  ;;  %v1226_v62 = vsel %vm1098_vm6, %v1034_v36, %v1162_v51  ;;  %vm1065_vm7 = vcmp.ge.f32.partialorder %v1001_v52, 0.0 }
  0xf8   :  { %1351 = vst [vmem:[%s2216_s3 + $0x140] sm:$0xff] %v1287_v50  ;;  %v1129_v63 = vmul.f32 0.2, %v1001_v52  ;;  %v1290_v0 = vmul.f32 1.4142135, %v1226_v62  ;;  %vm1097_vm8 = vcmp.ge.f32.partialorder %v1033_v53, 0.0  ;;  %v1035_v14 = vadd.f32 %v1891_v1, %v690_v42 }
  0xf9   :  { %v1161_v2 = vmul.f32 0.2, %v1033_v53  ;;  %vm1068_vm9 = vcmp.ge.f32.partialorder %v1004_v57, 0.0  ;;  %1322 = vst [vmem:[%s2216_s3 + $0x58] sm:$0xff] %v1258_v61  ;;  %v1132_v4 = vmul.f32 0.2, %v1004_v57  ;;  %v1006_v20 = vadd.f32 %v1534_v49, %v1891_v1 }
  0xfa   :  { %v1193_v3 = vsel %vm1065_vm7, %v1001_v52, %v1129_v63  ;;  %vm1100_vm10 = vcmp.ge.f32.partialorder %v1036_v58, 0.0  ;;  %v1164_v5 = vmul.f32 0.2, %v1036_v58  ;;  %v1537_v6 = vpop.f32.mrb[16].mxu0  ;;  %1354 = vst [vmem:[%s2216_s3 + $0x158] sm:$0xff] %v1290_v0  ;;  %vm1067_vm11 = vcmp.ge.f32.partialorder %v1003_v59, 0.0 }
  0xfb   :  { %v1257_v7 = vmul.f32 1.4142135, %v1193_v3  ;;  %v1225_v8 = vsel %vm1097_vm8, %v1033_v53, %v1161_v2  ;;  %v1131_v9 = vmul.f32 0.2, %v1003_v59  ;;  %v1585_v10 = vpop.f32.mrb[16].mxu1  ;;  %v1196_v12 = vsel %vm1068_vm9, %v1004_v57, %v1132_v4  ;;  %v550_v15 = vpop.f32.mrb[17].mxu0 }
  0xfc   :  { %v1289_v11 = vmul.f32 1.4142135, %v1225_v8  ;;  %v1228_v13 = vsel %vm1100_vm10, %v1036_v58, %v1164_v5  ;;  %v710_v16 = vpop.f32.mrb[17].mxu1  ;;  %v1260_v17 = vmul.f32 1.4142135, %v1196_v12  ;;  %v1540_v21 = vpop.f32.mrb[18].mxu0  ;;  %v1038_v25 = vadd.f32 %v1582_v54, %v1891_v1 }
  0xfd   :  { %1321 = vst [vmem:[%s2216_s3 + $0x50] sm:$0xff] %v1257_v7  ;;  %v1292_v18 = vmul.f32 1.4142135, %v1228_v13  ;;  %v1195_v19 = vsel %vm1067_vm11, %v1003_v59, %v1131_v9  ;;  %v1588_v22 = vpop.f32.mrb[18].mxu1  ;;  %vm1099_vm12 = vcmp.ge.f32.partialorder %v1035_v14, 0.0  ;;  %v560_v26 = vpop.f32.mrb[19].mxu0  ;;  %v1005_v28 = vadd.f32 %v1891_v1, %v540_v55 }
  0xfe   :  { %1353 = vst [vmem:[%s2216_s3 + $0x150] sm:$0xff] %v1289_v11  ;;  %v1259_v23 = vmul.f32 1.4142135, %v1195_v19  ;;  %v1163_v24 = vmul.f32 0.2, %v1035_v14  ;;  %1324 = vst [vmem:[%s2216_s3 + $0x68] sm:$0xff] %v1260_v17  ;;  %v1037_v29 = vadd.f32 %v1891_v1, %v700_v60  ;;  %v1008_v33 = vadd.f32 %v1537_v6, %v1891_v1 }
  0xff   :  { %1356 = vst [vmem:[%s2216_s3 + $0x168] sm:$0xff] %v1292_v18  ;;  %vm1070_vm13 = vcmp.ge.f32.partialorder %v1006_v20, 0.0  ;;  %v1134_v27 = vmul.f32 0.2, %v1006_v20  ;;  %v720_v30 = vpop.f32.mrb[19].mxu1  ;;  %vm1102_vm14 = vcmp.ge.f32.partialorder %v1038_v25, 0.0  ;;  %v1040_v48 = vadd.f32 %v1585_v10, %v1891_v1 }
 0x100   :  { %1323 = vst [vmem:[%s2216_s3 + $0x60] sm:$0xff] %v1259_v23  ;;  %v1227_v31 = vsel %vm1099_vm12, %v1035_v14, %v1163_v24  ;;  %v1166_v32 = vmul.f32 0.2, %v1038_v25  ;;  %vm1069_vm15 = vcmp.ge.f32.partialorder %v1005_v28, 0.0  ;;  %v1133_v36 = vmul.f32 0.2, %v1005_v28 }
 0x101   :  { %v1291_v34 = vmul.f32 1.4142135, %v1227_v31  ;;  %v1198_v35 = vsel %vm1070_vm13, %v1006_v20, %v1134_v27  ;;  %v1543_v37 = vpop.f32.mrb[20].mxu0  ;;  %vm1101_vm0 = vcmp.ge.f32.partialorder %v1037_v29, 0.0  ;;  %v1165_v40 = vmul.f32 0.2, %v1037_v29 }
 0x102   :  { %v1262_v38 = vmul.f32 1.4142135, %v1198_v35  ;;  %v1230_v39 = vsel %vm1102_vm14, %v1038_v25, %v1166_v32  ;;  %v1591_v41 = vpop.f32.mrb[20].mxu1  ;;  %v1197_v43 = vsel %vm1069_vm15, %v1005_v28, %v1133_v36  ;;  %vm1072_vm1 = vcmp.ge.f32.partialorder %v1008_v33, 0.0  ;;  %v570_v45 = vpop.f32.mrb[21].mxu0 }
 0x103   :  { %1355 = vst [vmem:[%s2216_s3 + $0x160] sm:$0xff] %v1291_v34  ;;  %v1294_v42 = vmul.f32 1.4142135, %v1230_v39  ;;  %v1136_v44 = vmul.f32 0.2, %v1008_v33  ;;  %v1229_v47 = vsel %vm1101_vm0, %v1037_v29, %v1165_v40  ;;  %v1007_v49 = vadd.f32 %v1891_v1, %v550_v15  ;;  %v730_v50 = vpop.f32.mrb[21].mxu1 }
 0x104   :  { %1326 = vst [vmem:[%s2216_s3 + $0x78] sm:$0xff] %v1262_v38  ;;  %v1261_v46 = vmul.f32 1.4142135, %v1197_v43  ;;  %v1293_v51 = vmul.f32 1.4142135, %v1229_v47  ;;  %v1039_v53 = vadd.f32 %v1891_v1, %v710_v16  ;;  %v1010_v54 = vadd.f32 %v1540_v21, %v1891_v1  ;;  %v1546_v55 = vpop.f32.mrb[22].mxu0 }
 0x105   :  { %1358 = vst [vmem:[%s2216_s3 + $0x178] sm:$0xff] %v1294_v42  ;;  %v1200_v52 = vsel %vm1072_vm1, %v1008_v33, %v1136_v44  ;;  %v1594_v56 = vpop.f32.mrb[22].mxu1  ;;  %vm1104_vm2 = vcmp.ge.f32.partialorder %v1040_v48, 0.0  ;;  %v1168_v58 = vmul.f32 0.2, %v1040_v48  ;;  %vm1071_vm3 = vcmp.ge.f32.partialorder %v1007_v49, 0.0 }
 0x106   :  { %1325 = vst [vmem:[%s2216_s3 + $0x70] sm:$0xff] %v1261_v46  ;;  %v1264_v57 = vmul.f32 1.4142135, %v1200_v52  ;;  %1357 = vst [vmem:[%s2216_s3 + $0x170] sm:$0xff] %v1293_v51  ;;  %v1135_v59 = vmul.f32 0.2, %v1007_v49  ;;  %v1042_v63 = vadd.f32 %v1588_v22, %v1891_v1  ;;  %v1009_v0 = vadd.f32 %v1891_v1, %v560_v26 }
 0x107   :  { %vm1103_vm4 = vcmp.ge.f32.partialorder %v1039_v53, 0.0  ;;  %v1167_v60 = vmul.f32 0.2, %v1039_v53  ;;  %vm1074_vm5 = vcmp.ge.f32.partialorder %v1010_v54, 0.0  ;;  %v1232_v61 = vsel %vm1104_vm2, %v1040_v48, %v1168_v58  ;;  %v2038_v2 = vpop.f32.mrb[23].mxu0  ;;  %v2040_v3 = vpop.f32.mrb[23].mxu1 }
 0x108   :  { %1328 = vst [vmem:[%s2216_s3 + $0x88] sm:$0xff] %v1264_v57  ;;  %v1138_v62 = vmul.f32 0.2, %v1010_v54  ;;  %v1296_v4 = vmul.f32 1.4142135, %v1232_v61  ;;  %v1199_v5 = vsel %vm1071_vm3, %v1007_v49, %v1135_v59  ;;  %v1041_v7 = vadd.f32 %v1891_v1, %v720_v30  ;;  %v2043_v8 = vpop.f32.mrb[24].mxu0 }
 0x109   :  { %v1231_v6 = vsel %vm1103_vm4, %v1039_v53, %v1167_v60  ;;  %v2045_v9 = vpop.f32.mrb[24].mxu1  ;;  %v1263_v10 = vmul.f32 1.4142135, %v1199_v5  ;;  %vm1106_vm6 = vcmp.ge.f32.partialorder %v1042_v63, 0.0  ;;  %v2048_v13 = vpop.f32.mrb[25].mxu0  ;;  %vm1073_vm7 = vcmp.ge.f32.partialorder %v1009_v0, 0.0 }
 0x10a   :  { %v1295_v11 = vmul.f32 1.4142135, %v1231_v6  ;;  %v1202_v12 = vsel %vm1074_vm5, %v1010_v54, %v1138_v62  ;;  %1360 = vst [vmem:[%s2216_s3 + $0x188] sm:$0xff] %v1296_v4  ;;  %v1170_v15 = vmul.f32 0.2, %v1042_v63  ;;  %vm1105_vm8 = vcmp.ge.f32.partialorder %v1041_v7, 0.0 }
 0x10b   :  { %v1266_v14 = vmul.f32 1.4142135, %v1202_v12  ;;  %1327 = vst [vmem:[%s2216_s3 + $0x80] sm:$0xff] %v1263_v10  ;;  %v1137_v16 = vmul.f32 0.2, %v1009_v0  ;;  %v1012_v18 = vadd.f32 %v1543_v37, %v1891_v1  ;;  %v1044_v19 = vadd.f32 %v1591_v41, %v1891_v1  ;;  %v2061_v20 = vpop.f32.mrb[25].mxu1 }
 0x10c   :  { %1359 = vst [vmem:[%s2216_s3 + $0x180] sm:$0xff] %v1295_v11  ;;  %v1169_v17 = vmul.f32 0.2, %v1041_v7  ;;  %v1234_v21 = vsel %vm1106_vm6, %v1042_v63, %v1170_v15  ;;  %v1011_v22 = vadd.f32 %v1891_v1, %v570_v45  ;;  %v1043_v23 = vadd.f32 %v1891_v1, %v730_v50  ;;  %v2069_v25 = vpop.f32.mrb[26].mxu0  ;;  %v2071_v26 = vpop.f32.mrb[26].mxu1 }
 0x10d   :  { %1330 = vst [vmem:[%s2216_s3 + $0x98] sm:$0xff] %v1266_v14  ;;  %v1014_v24 = vadd.f32 %v1546_v55, %v1891_v1  ;;  %v1298_v27 = vmul.f32 1.4142135, %v1234_v21  ;;  %v1201_v28 = vsel %vm1073_vm7, %v1009_v0, %v1137_v16  ;;  %vm1076_vm9 = vcmp.ge.f32.partialorder %v1012_v18, 0.0  ;;  %v2075_v30 = vpop.f32.mrb[27].mxu0  ;;  %v2077_v31 = vpop.f32.mrb[27].mxu1 }
 0x10e   :  { %v1233_v29 = vsel %vm1105_vm8, %v1041_v7, %v1169_v17  ;;  %v1265_v32 = vmul.f32 1.4142135, %v1201_v28  ;;  %v1140_v34 = vmul.f32 0.2, %v1012_v18  ;;  %v1046_v35 = vadd.f32 %v1594_v56, %v1891_v1 }
 0x10f   :  { %v1297_v33 = vmul.f32 1.4142135, %v1233_v29  ;;  %1362 = vst [vmem:[%s2216_s3 + $0x198] sm:$0xff] %v1298_v27  ;;  %vm1108_vm10 = vcmp.ge.f32.partialorder %v1044_v19, 0.0  ;;  %v1172_v36 = vmul.f32 0.2, %v1044_v19  ;;  %v1013_v54 = vadd.f32 %v1891_v1, %v2038_v2 }
 0x110   :  { %vm1075_vm11 = vcmp.ge.f32.partialorder %v1011_v22, 0.0  ;;  %v1139_v37 = vmul.f32 0.2, %v1011_v22  ;;  %1329 = vst [vmem:[%s2216_s3 + $0x90] sm:$0xff] %v1265_v32  ;;  %v1204_v38 = vsel %vm1076_vm9, %v1012_v18, %v1140_v34  ;;  %vm1107_vm12 = vcmp.ge.f32.partialorder %v1043_v23, 0.0  ;;  %v2089_v40 = vpop.f32.mrb[28].mxu0 }
 0x111   :  { %1361 = vst [vmem:[%s2216_s3 + $0x190] sm:$0xff] %v1297_v33  ;;  %v1171_v39 = vmul.f32 0.2, %v1043_v23  ;;  %vm1078_vm13 = vcmp.ge.f32.partialorder %v1014_v24, 0.0  ;;  %v2091_v41 = vpop.f32.mrb[28].mxu1  ;;  %v1236_v43 = vsel %vm1108_vm10, %v1044_v19, %v1172_v36  ;;  %v2093_v46 = vpop.f32.mrb[29].mxu0  ;;  %v1045_v56 = vadd.f32 %v1891_v1, %v2040_v3 }
 0x112   :  { %v1268_v42 = vmul.f32 1.4142135, %v1204_v38  ;;  %v1203_v44 = vsel %vm1075_vm11, %v1011_v22, %v1139_v37  ;;  %v1142_v45 = vmul.f32 0.2, %v1014_v24  ;;  %v2095_v47 = vpop.f32.mrb[29].mxu1  ;;  %vm1110_vm14 = vcmp.ge.f32.partialorder %v1046_v35, 0.0 }
 0x113   :  { %v1300_v48 = vmul.f32 1.4142135, %v1236_v43  ;;  %v1267_v49 = vmul.f32 1.4142135, %v1203_v44  ;;  %v1235_v50 = vsel %vm1107_vm12, %v1043_v23, %v1171_v39  ;;  %v1174_v53 = vmul.f32 0.2, %v1046_v35 }
 0x114   :  { %1332 = vst [vmem:[%s2216_s3 + $0xa8] sm:$0xff] %v1268_v42  ;;  %v1299_v51 = vmul.f32 1.4142135, %v1235_v50  ;;  %v1206_v52 = vsel %vm1078_vm13, %v1014_v24, %v1142_v45  ;;  %v1016_v57 = vadd.f32 %v2043_v8, %v1891_v1  ;;  %v1048_v58 = vadd.f32 %v2045_v9, %v1891_v1  ;;  %v2114_v59 = vpop.f32.mrb[30].mxu0  ;;  %v2116_v60 = vpop.f32.mrb[30].mxu1 }
 0x115   :  { %1364 = vst [vmem:[%s2216_s3 + $0x1a8] sm:$0xff] %v1300_v48  ;;  %1331 = vst [vmem:[%s2216_s3 + $0xa0] sm:$0xff] %v1267_v49  ;;  %v1270_v55 = vmul.f32 1.4142135, %v1206_v52  ;;  %v1238_v61 = vsel %vm1110_vm14, %v1046_v35, %v1174_v53  ;;  %vm1077_vm15 = vcmp.ge.f32.partialorder %v1013_v54, 0.0  ;;  %v1015_v63 = vadd.f32 %v1891_v1, %v2048_v13  ;;  %v2123_v0 = vpop.f32.mrb[31].mxu0 }
 0x116   :  { %1363 = vst [vmem:[%s2216_s3 + $0x1a0] sm:$0xff] %v1299_v51  ;;  %v1141_v62 = vmul.f32 0.2, %v1013_v54  ;;  %v2125_v2 = vpop.f32.mrb[31].mxu1  ;;  %v1302_v3 = vmul.f32 1.4142135, %v1238_v61  ;;  %v1047_v14 = vadd.f32 %v1891_v1, %v2061_v20  ;;  %v1018_v18 = vadd.f32 %v2069_v25, %v1891_v1 }
 0x117   :  { %1334 = vst [vmem:[%s2216_s3 + $0xb8] sm:$0xff] %v1270_v55  ;;  %vm1109_vm0 = vcmp.ge.f32.partialorder %v1045_v56, 0.0  ;;  %v1173_v4 = vmul.f32 0.2, %v1045_v56  ;;  %vm1080_vm1 = vcmp.ge.f32.partialorder %v1016_v57, 0.0  ;;  %vm1112_vm2 = vcmp.ge.f32.partialorder %v1048_v58, 0.0 }
 0x118   :  { %v1205_v5 = vsel %vm1077_vm15, %v1013_v54, %v1141_v62  ;;  %v1144_v6 = vmul.f32 0.2, %v1016_v57  ;;  %v1176_v7 = vmul.f32 0.2, %v1048_v58  ;;  %1366 = vst [vmem:[%s2216_s3 + $0x1b8] sm:$0xff] %v1302_v3  ;;  %vm1079_vm3 = vcmp.ge.f32.partialorder %v1015_v63, 0.0 }
 0x119   :  { %v1269_v8 = vmul.f32 1.4142135, %v1205_v5  ;;  %v1237_v9 = vsel %vm1109_vm0, %v1045_v56, %v1173_v4  ;;  %v1143_v10 = vmul.f32 0.2, %v1015_v63  ;;  %vm1111_vm4 = vcmp.ge.f32.partialorder %v1047_v14, 0.0 }
 0x11a   :  { %v1301_v11 = vmul.f32 1.4142135, %v1237_v9  ;;  %v1208_v12 = vsel %vm1080_vm1, %v1016_v57, %v1144_v6  ;;  %v1240_v13 = vsel %vm1112_vm2, %v1048_v58, %v1176_v7  ;;  %v1175_v21 = vmul.f32 0.2, %v1047_v14 }
 0x11b   :  { %1333 = vst [vmem:[%s2216_s3 + $0xb0] sm:$0xff] %v1269_v8  ;;  %v1272_v15 = vmul.f32 1.4142135, %v1208_v12  ;;  %v1304_v16 = vmul.f32 1.4142135, %v1240_v13  ;;  %v1207_v17 = vsel %vm1079_vm3, %v1015_v63, %v1143_v10  ;;  %v1050_v20 = vadd.f32 %v2071_v26, %v1891_v1 }
 0x11c   :  { %1365 = vst [vmem:[%s2216_s3 + $0x1b0] sm:$0xff] %v1301_v11  ;;  %v1271_v19 = vmul.f32 1.4142135, %v1207_v17  ;;  %vm1082_vm5 = vcmp.ge.f32.partialorder %v1018_v18, 0.0  ;;  %v1146_v22 = vmul.f32 0.2, %v1018_v18  ;;  %v1017_v23 = vadd.f32 %v1891_v1, %v2075_v30 }
 0x11d   :  { %1336 = vst [vmem:[%s2216_s3 + $0xc8] sm:$0xff] %v1272_v15  ;;  %1368 = vst [vmem:[%s2216_s3 + $0x1c8] sm:$0xff] %v1304_v16  ;;  %v1049_v24 = vadd.f32 %v1891_v1, %v2077_v31  ;;  %v1239_v25 = vsel %vm1111_vm4, %v1047_v14, %v1175_v21  ;;  %vm1114_vm6 = vcmp.ge.f32.partialorder %v1050_v20, 0.0  ;;  %v1178_v26 = vmul.f32 0.2, %v1050_v20 }
 0x11e   :  { %1335 = vst [vmem:[%s2216_s3 + $0xc0] sm:$0xff] %v1271_v19  ;;  %v1020_v27 = vadd.f32 %v2089_v40, %v1891_v1  ;;  %v1303_v28 = vmul.f32 1.4142135, %v1239_v25  ;;  %v1210_v29 = vsel %vm1082_vm5, %v1018_v18, %v1146_v22  ;;  %vm1081_vm7 = vcmp.ge.f32.partialorder %v1017_v23, 0.0 }
 0x11f   :  { %v1145_v32 = vmul.f32 0.2, %v1017_v23  ;;  %v1274_v33 = vmul.f32 1.4142135, %v1210_v29  ;;  %v1242_v34 = vsel %vm1114_vm6, %v1050_v20, %v1178_v26  ;;  %vm1113_vm8 = vcmp.ge.f32.partialorder %v1049_v24, 0.0 }
 0x120   :  { %v1177_v30 = vmul.f32 0.2, %v1049_v24  ;;  %1367 = vst [vmem:[%s2216_s3 + $0x1c0] sm:$0xff] %v1303_v28  ;;  %v1306_v31 = vmul.f32 1.4142135, %v1242_v34  ;;  %vm1084_vm9 = vcmp.ge.f32.partialorder %v1020_v27, 0.0  ;;  %v1052_v39 = vadd.f32 %v2091_v41, %v1891_v1 }
 0x121   :  { %v1209_v35 = vsel %vm1081_vm7, %v1017_v23, %v1145_v32  ;;  %v1148_v36 = vmul.f32 0.2, %v1020_v27  ;;  %1338 = vst [vmem:[%s2216_s3 + $0xd8] sm:$0xff] %v1274_v33  ;;  %v1019_v40 = vadd.f32 %v1891_v1, %v2093_v46  ;;  %v1051_v44 = vadd.f32 %v1891_v1, %v2095_v47 }
 0x122   :  { %v1273_v37 = vmul.f32 1.4142135, %v1209_v35  ;;  %v1241_v38 = vsel %vm1113_vm8, %v1049_v24, %v1177_v30  ;;  %1370 = vst [vmem:[%s2216_s3 + $0x1d8] sm:$0xff] %v1306_v31  ;;  %v1022_v45 = vadd.f32 %v2114_v59, %v1891_v1  ;;  %vm1116_vm10 = vcmp.ge.f32.partialorder %v1052_v39, 0.0 }
 0x123   :  { %v1305_v42 = vmul.f32 1.4142135, %v1241_v38  ;;  %v1212_v43 = vsel %vm1084_vm9, %v1020_v27, %v1148_v36  ;;  %v1180_v48 = vmul.f32 0.2, %v1052_v39  ;;  %vm1083_vm11 = vcmp.ge.f32.partialorder %v1019_v40, 0.0 }
 0x124   :  { %1337 = vst [vmem:[%s2216_s3 + $0xd0] sm:$0xff] %v1273_v37  ;;  %v1276_v41 = vmul.f32 1.4142135, %v1212_v43  ;;  %v1147_v46 = vmul.f32 0.2, %v1019_v40  ;;  %vm1115_vm12 = vcmp.ge.f32.partialorder %v1051_v44, 0.0  ;;  %v1054_v51 = vadd.f32 %v2116_v60, %v1891_v1 }
 0x125   :  { %1369 = vst [vmem:[%s2216_s3 + $0x1d0] sm:$0xff] %v1305_v42  ;;  %v1179_v49 = vmul.f32 0.2, %v1051_v44  ;;  %vm1086_vm13 = vcmp.ge.f32.partialorder %v1022_v45, 0.0  ;;  %v1244_v47 = vsel %vm1116_vm10, %v1052_v39, %v1180_v48  ;;  %v1150_v50 = vmul.f32 0.2, %v1022_v45 }
 0x126   :  { %1340 = vst [vmem:[%s2216_s3 + $0xe8] sm:$0xff] %v1276_v41  ;;  %v1021_v52 = vadd.f32 %v1891_v1, %v2123_v0  ;;  %v1308_v53 = vmul.f32 1.4142135, %v1244_v47  ;;  %v1211_v54 = vsel %vm1083_vm11, %v1019_v40, %v1147_v46  ;;  %v1053_v56 = vadd.f32 %v1891_v1, %v2125_v2 }
 0x127   :  { %v1243_v55 = vsel %vm1115_vm12, %v1051_v44, %v1179_v49  ;;  %v1275_v57 = vmul.f32 1.4142135, %v1211_v54  ;;  %v1214_v59 = vsel %vm1086_vm13, %v1022_v45, %v1150_v50  ;;  %vm1118_vm14 = vcmp.ge.f32.partialorder %v1054_v51, 0.0 }
 0x128   :  { %v1307_v58 = vmul.f32 1.4142135, %v1243_v55  ;;  %1372 = vst [vmem:[%s2216_s3 + $0x1e8] sm:$0xff] %v1308_v53  ;;  %v1278_v61 = vmul.f32 1.4142135, %v1214_v59  ;;  %vm1085_vm15 = vcmp.ge.f32.partialorder %v1021_v52, 0.0 }
 0x129   :  { %v1182_v62 = vmul.f32 0.2, %v1054_v51  ;;  %vm1117_vm0 = vcmp.ge.f32.partialorder %v1053_v56, 0.0  ;;  %1339 = vst [vmem:[%s2216_s3 + $0xe0] sm:$0xff] %v1275_v57  ;;  %v1149_v1 = vmul.f32 0.2, %v1021_v52 }
 0x12a   :  { %1371 = vst [vmem:[%s2216_s3 + $0x1e0] sm:$0xff] %v1307_v58  ;;  %v1181_v60 = vmul.f32 0.2, %v1053_v56  ;;  %1342 = vst [vmem:[%s2216_s3 + $0xf8] sm:$0xff] %v1278_v61 }
 0x12b   :  { %v1246_v63 = vsel %vm1118_vm14, %v1054_v51, %v1182_v62  ;;  %v1213_v2 = vsel %vm1085_vm15, %v1021_v52, %v1149_v1 }
 0x12c   :  { %v1310_v0 = vmul.f32 1.4142135, %v1246_v63  ;;  %v1245_v3 = vsel %vm1117_vm0, %v1053_v56, %v1181_v60  ;;  %v1277_v4 = vmul.f32 1.4142135, %v1213_v2 }
 0x12d   :  { %v1309_v5 = vmul.f32 1.4142135, %v1245_v3 }
 0x12e   :  { %1374 = vst [vmem:[%s2216_s3 + $0x1f8] sm:$0xff] %v1310_v0  ;;  %1341 = vst [vmem:[%s2216_s3 + $0xf0] sm:$0xff] %v1277_v4 }
 0x12f   :  { %1373 = vst [vmem:[%s2216_s3 + $0x1f0] sm:$0xff] %v1309_v5 }

// kernel: decoder_block_forward.5
= control target key start
LH: loop header
LB: loop body
LE: loop exit
PB: predicated region body
PF: predicated region fallthrough
CT: control target
= control target key end

     0   :  { %vm219_vm0 = vcmask 588800   ;;  %s2293_s1 = inlined_call_operand.vmem [shape: f32[72,128], index: 1, kind: input, shape index: {}]   ;;  %s2294_s0 = inlined_call_operand.vmem [shape: f32[512,72], index: 0, kind: input, shape index: {}]   ;;  %s2295_s2 = inlined_call_operand.vmem [shape: f32[1,128], index: 2, kind: input, shape index: {}]   ;;  %s2296_s3 = inlined_call_operand.vmem [shape: f32[512,128], index: 3, kind: output, shape index: {}]  }
   0x1   :  { %v210_v0 = vld [vmem:[%s2293_s1] sm:$0xff]  ;;  %v211_v1 = vld [vmem:[%s2293_s1 + $0x8] sm:$0xff]  ;;  %v212_v2 = vld [vmem:[%s2293_s1 + $0x10] sm:$0xff] }
   0x2   :  { %v1639_v3 = vpack.c.bf16 %v211_v1, %v210_v0  ;;  %v213_v4 = vld [vmem:[%s2293_s1 + $0x18] sm:$0xff]  ;;  %v214_v6 = vld [vmem:[%s2293_s1 + $0x20] sm:$0xff]  ;;  %v215_v7 = vld [vmem:[%s2293_s1 + $0x28] sm:$0xff] }
   0x3   :  { %v1643_v5 = vpack.c.bf16 %v213_v4, %v212_v2  ;;  %v146_v8 = vld [vmem:[%s2294_s0] sm:$0xff]  ;;  %v1647_v10 = vpack.c.bf16 %v215_v7, %v214_v6  ;;  %v216_v11 = vld [vmem:[%s2293_s1 + $0x30] sm:$0xff]  ;;  %v217_v12 = vld [vmem:[%s2293_s1 + $0x38] sm:$0xff] }
   0x4   :  { %1640 = vmatprep.subr.bf16.mxu0 %v1639_v3  ;;  %1655 = vmatprep.subr.bf16.mxu1 %v1639_v3  ;;  %v178_v9 = vld [vmem:[%s2294_s0 + $0x100] sm:$0xff]  ;;  %v1651_v13 = vpack.c.bf16 %v217_v12, %v216_v11  ;;  %v147_v15 = vld [vmem:[%s2294_s0 + $0x8] sm:$0xff]  ;;  %v148_v17 = vld [vmem:[%s2294_s0 + $0x10] sm:$0xff] }
   0x5   :  { %1642 = vmatpush3.bf16.msra.mxu0 %v1639_v3  ;;  %1660 = vmatpush3.bf16.msra.mxu1 %v1639_v3  ;;  %v218_v14 = vld [vmem:[%s2293_s1 + $0x40] sm:$0xff]  ;;  %v179_v16 = vld [vmem:[%s2294_s0 + $0x108] sm:$0xff]  ;;  %v180_v18 = vld [vmem:[%s2294_s0 + $0x110] sm:$0xff] }
   0x6   :  { %1644 = vmatprep.subr.bf16.mxu0 %v1643_v5  ;;  %1656 = vmatprep.subr.bf16.mxu1 %v1643_v5  ;;  %v149_v19 = vld [vmem:[%s2294_s0 + $0x18] sm:$0xff]  ;;  %v150_v21 = vld [vmem:[%s2294_s0 + $0x20] sm:$0xff]  ;;  %v151_v23 = vld [vmem:[%s2294_s0 + $0x28] sm:$0xff] }
   0x7   :  { %1543 = vmatprep.mubr.msk.f32.mxu0 %vm219_vm0, %v146_v8  ;;  %1591 = vmatprep.mubr.msk.f32.mxu1 %vm219_vm0, %v178_v9  ;;  %v181_v20 = vld [vmem:[%s2294_s0 + $0x118] sm:$0xff]  ;;  %v182_v22 = vld [vmem:[%s2294_s0 + $0x120] sm:$0xff]  ;;  %v183_v24 = vld [vmem:[%s2294_s0 + $0x128] sm:$0xff] }
   0x8   :  { %v152_v25 = vld [vmem:[%s2294_s0 + $0x30] sm:$0xff]  ;;  %v153_v27 = vld [vmem:[%s2294_s0 + $0x38] sm:$0xff]  ;;  %v154_v29 = vld [vmem:[%s2294_s0 + $0x40] sm:$0xff] }
   0x9   :  { %1646 = vmatpush3.bf16.msra.mxu0 %v1643_v5  ;;  %1661 = vmatpush3.bf16.msra.mxu1 %v1643_v5  ;;  %v184_v26 = vld [vmem:[%s2294_s0 + $0x130] sm:$0xff]  ;;  %v185_v28 = vld [vmem:[%s2294_s0 + $0x138] sm:$0xff]  ;;  %v186_v30 = vld [vmem:[%s2294_s0 + $0x140] sm:$0xff] }
   0xa   :  { %1648 = vmatprep.subr.bf16.mxu0 %v1647_v10  ;;  %1657 = vmatprep.subr.bf16.mxu1 %v1647_v10  ;;  %v155_v31 = vld [vmem:[%s2294_s0 + $0x48] sm:$0xff]  ;;  %v156_v33 = vld [vmem:[%s2294_s0 + $0x50] sm:$0xff]  ;;  %v157_v35 = vld [vmem:[%s2294_s0 + $0x58] sm:$0xff] }
   0xb   :  { %v187_v32 = vld [vmem:[%s2294_s0 + $0x148] sm:$0xff]  ;;  %v188_v34 = vld [vmem:[%s2294_s0 + $0x150] sm:$0xff]  ;;  %v189_v36 = vld [vmem:[%s2294_s0 + $0x158] sm:$0xff] }
   0xc   :  { %v158_v37 = vld [vmem:[%s2294_s0 + $0x60] sm:$0xff]  ;;  %v159_v39 = vld [vmem:[%s2294_s0 + $0x68] sm:$0xff]  ;;  %v160_v41 = vld [vmem:[%s2294_s0 + $0x70] sm:$0xff] }
   0xd   :  { %1650 = vmatpush3.bf16.msra.mxu0 %v1647_v10  ;;  %1662 = vmatpush3.bf16.msra.mxu1 %v1647_v10  ;;  %v190_v38 = vld [vmem:[%s2294_s0 + $0x160] sm:$0xff]  ;;  %v191_v40 = vld [vmem:[%s2294_s0 + $0x168] sm:$0xff]  ;;  %v192_v42 = vld [vmem:[%s2294_s0 + $0x170] sm:$0xff] }
   0xe   :  { %1652 = vmatprep.subr.bf16.mxu0 %v1651_v13  ;;  %1658 = vmatprep.subr.bf16.mxu1 %v1651_v13  ;;  %v161_v43 = vld [vmem:[%s2294_s0 + $0x78] sm:$0xff]  ;;  %v162_v45 = vld [vmem:[%s2294_s0 + $0x80] sm:$0xff]  ;;  %v163_v47 = vld [vmem:[%s2294_s0 + $0x88] sm:$0xff] }
   0xf   :  { %v193_v44 = vld [vmem:[%s2294_s0 + $0x178] sm:$0xff]  ;;  %v194_v46 = vld [vmem:[%s2294_s0 + $0x180] sm:$0xff]  ;;  %v195_v48 = vld [vmem:[%s2294_s0 + $0x188] sm:$0xff] }
  0x10   :  { %v164_v49 = vld [vmem:[%s2294_s0 + $0x90] sm:$0xff]  ;;  %v165_v51 = vld [vmem:[%s2294_s0 + $0x98] sm:$0xff]  ;;  %v166_v53 = vld [vmem:[%s2294_s0 + $0xa0] sm:$0xff] }
  0x11   :  { %1654 = vmatpush3.bf16.msra.mxu0 %v1651_v13  ;;  %1663 = vmatpush3.bf16.msra.mxu1 %v1651_v13  ;;  %v196_v50 = vld [vmem:[%s2294_s0 + $0x190] sm:$0xff]  ;;  %v197_v52 = vld [vmem:[%s2294_s0 + $0x198] sm:$0xff]  ;;  %v198_v54 = vld [vmem:[%s2294_s0 + $0x1a0] sm:$0xff] }
  0x12   :  { %1541 = vmatprep.subr.mxu0 %v218_v14  ;;  %1659 = vmatprep.subr.mxu1 %v218_v14  ;;  %v167_v55 = vld [vmem:[%s2294_s0 + $0xa8] sm:$0xff]  ;;  %v168_v57 = vld [vmem:[%s2294_s0 + $0xb0] sm:$0xff]  ;;  %v169_v59 = vld [vmem:[%s2294_s0 + $0xb8] sm:$0xff] }
  0x13   :  { %v199_v56 = vld [vmem:[%s2294_s0 + $0x1a8] sm:$0xff]  ;;  %v200_v58 = vld [vmem:[%s2294_s0 + $0x1b0] sm:$0xff]  ;;  %v201_v60 = vld [vmem:[%s2294_s0 + $0x1b8] sm:$0xff] }
  0x14   :  { %v170_v61 = vld [vmem:[%s2294_s0 + $0xc0] sm:$0xff]  ;;  %v171_v63 = vld [vmem:[%s2294_s0 + $0xc8] sm:$0xff]  ;;  %v172_v1 = vld [vmem:[%s2294_s0 + $0xd0] sm:$0xff] }
  0x15   :  { %1542 = vmatpush3.msra.mxu0 %v218_v14  ;;  %1664 = vmatpush3.msra.mxu1 %v218_v14  ;;  %v202_v62 = vld [vmem:[%s2294_s0 + $0x1c0] sm:$0xff]  ;;  %v203_v0 = vld [vmem:[%s2294_s0 + $0x1c8] sm:$0xff]  ;;  %v204_v2 = vld [vmem:[%s2294_s0 + $0x1d0] sm:$0xff] }
  0x16   :  { %1544 = vmatmul.mubr.msk.f32.vlgmr.msra.gmra.mrb[0].mxu0 %vm219_vm0, %v147_v15  ;;  %1592 = vmatmul.mubr.msk.f32.vlgmr.msra.gmra.mrb[0].mxu1 %vm219_vm0, %v179_v16  ;;  %v173_v3 = vld [vmem:[%s2294_s0 + $0xd8] sm:$0xff]  ;;  %v174_v5 = vld [vmem:[%s2294_s0 + $0xe0] sm:$0xff]  ;;  %v175_v7 = vld [vmem:[%s2294_s0 + $0xe8] sm:$0xff] }
  0x17   :  { %1546 = vmatprep.mubr.msk.f32.mxu0 %vm219_vm0, %v148_v17  ;;  %1594 = vmatprep.mubr.msk.f32.mxu1 %vm219_vm0, %v180_v18  ;;  %v205_v4 = vld [vmem:[%s2294_s0 + $0x1d8] sm:$0xff]  ;;  %v206_v6 = vld [vmem:[%s2294_s0 + $0x1e0] sm:$0xff]  ;;  %v207_v8 = vld [vmem:[%s2294_s0 + $0x1e8] sm:$0xff] }
  0x18   :  { %v176_v9 = vld [vmem:[%s2294_s0 + $0xf0] sm:$0xff]  ;;  %v177_v11 = vld [vmem:[%s2294_s0 + $0xf8] sm:$0xff]  ;;  %v1971_v13 = vld [vmem:[%s2295_s2] ss:$0 sm:$0xff] }
  0x19   :  { %v208_v10 = vld [vmem:[%s2294_s0 + $0x1f0] sm:$0xff]  ;;  %v209_v12 = vld [vmem:[%s2294_s0 + $0x1f8] sm:$0xff] }
  0x1a   :  { %1547 = vmatmul.mubr.msk.f32.gmra.mrb[2].mxu0 %vm219_vm0, %v149_v19  ;;  %1595 = vmatmul.mubr.msk.f32.gmra.mrb[2].mxu1 %vm219_vm0, %v181_v20 }
  0x1b   :  { %1549 = vmatprep.mubr.msk.f32.mxu0 %vm219_vm0, %v150_v21  ;;  %1597 = vmatprep.mubr.msk.f32.mxu1 %vm219_vm0, %v182_v22 }
  0x1e   :  { %1550 = vmatmul.mubr.msk.f32.gmra.mrb[4].mxu0 %vm219_vm0, %v151_v23  ;;  %1598 = vmatmul.mubr.msk.f32.gmra.mrb[4].mxu1 %vm219_vm0, %v183_v24 }
  0x1f   :  { %1552 = vmatprep.mubr.msk.f32.mxu0 %vm219_vm0, %v152_v25  ;;  %1600 = vmatprep.mubr.msk.f32.mxu1 %vm219_vm0, %v184_v26 }
  0x22   :  { %1553 = vmatmul.mubr.msk.f32.gmra.mrb[6].mxu0 %vm219_vm0, %v153_v27  ;;  %1601 = vmatmul.mubr.msk.f32.gmra.mrb[6].mxu1 %vm219_vm0, %v185_v28 }
  0x23   :  { %1555 = vmatprep.mubr.msk.f32.mxu0 %vm219_vm0, %v154_v29  ;;  %1603 = vmatprep.mubr.msk.f32.mxu1 %vm219_vm0, %v186_v30 }
  0x26   :  { %1556 = vmatmul.mubr.msk.f32.gmra.mrb[8].mxu0 %vm219_vm0, %v155_v31  ;;  %1604 = vmatmul.mubr.msk.f32.gmra.mrb[8].mxu1 %vm219_vm0, %v187_v32 }
  0x27   :  { %1558 = vmatprep.mubr.msk.f32.mxu0 %vm219_vm0, %v156_v33  ;;  %1606 = vmatprep.mubr.msk.f32.mxu1 %vm219_vm0, %v188_v34 }
  0x2a   :  { %1559 = vmatmul.mubr.msk.f32.gmra.mrb[10].mxu0 %vm219_vm0, %v157_v35  ;;  %1607 = vmatmul.mubr.msk.f32.gmra.mrb[10].mxu1 %vm219_vm0, %v189_v36 }
  0x2b   :  { %1561 = vmatprep.mubr.msk.f32.mxu0 %vm219_vm0, %v158_v37  ;;  %1609 = vmatprep.mubr.msk.f32.mxu1 %vm219_vm0, %v190_v38 }
  0x2e   :  { %1562 = vmatmul.mubr.msk.f32.gmra.mrb[12].mxu0 %vm219_vm0, %v159_v39  ;;  %1610 = vmatmul.mubr.msk.f32.gmra.mrb[12].mxu1 %vm219_vm0, %v191_v40 }
  0x2f   :  { %1564 = vmatprep.mubr.msk.f32.mxu0 %vm219_vm0, %v160_v41  ;;  %1612 = vmatprep.mubr.msk.f32.mxu1 %vm219_vm0, %v192_v42 }
  0x32   :  { %1565 = vmatmul.mubr.msk.f32.gmra.mrb[14].mxu0 %vm219_vm0, %v161_v43  ;;  %1613 = vmatmul.mubr.msk.f32.gmra.mrb[14].mxu1 %vm219_vm0, %v193_v44 }
  0x33   :  { %1567 = vmatprep.mubr.msk.f32.mxu0 %vm219_vm0, %v162_v45  ;;  %1615 = vmatprep.mubr.msk.f32.mxu1 %vm219_vm0, %v194_v46 }
  0x36   :  { %1568 = vmatmul.mubr.msk.f32.gmra.mrb[16].mxu0 %vm219_vm0, %v163_v47  ;;  %1616 = vmatmul.mubr.msk.f32.gmra.mrb[16].mxu1 %vm219_vm0, %v195_v48 }
  0x37   :  { %1570 = vmatprep.mubr.msk.f32.mxu0 %vm219_vm0, %v164_v49  ;;  %1618 = vmatprep.mubr.msk.f32.mxu1 %vm219_vm0, %v196_v50 }
  0x3a   :  { %1571 = vmatmul.mubr.msk.f32.gmra.mrb[18].mxu0 %vm219_vm0, %v165_v51  ;;  %1619 = vmatmul.mubr.msk.f32.gmra.mrb[18].mxu1 %vm219_vm0, %v197_v52 }
  0x3b   :  { %1573 = vmatprep.mubr.msk.f32.mxu0 %vm219_vm0, %v166_v53  ;;  %1621 = vmatprep.mubr.msk.f32.mxu1 %vm219_vm0, %v198_v54 }
  0x3e   :  { %1574 = vmatmul.mubr.msk.f32.gmra.mrb[20].mxu0 %vm219_vm0, %v167_v55  ;;  %1622 = vmatmul.mubr.msk.f32.gmra.mrb[20].mxu1 %vm219_vm0, %v199_v56 }
  0x3f   :  { %1576 = vmatprep.mubr.msk.f32.mxu0 %vm219_vm0, %v168_v57  ;;  %1624 = vmatprep.mubr.msk.f32.mxu1 %vm219_vm0, %v200_v58 }
  0x42   :  { %1577 = vmatmul.mubr.msk.f32.gmra.mrb[22].mxu0 %vm219_vm0, %v169_v59  ;;  %1625 = vmatmul.mubr.msk.f32.gmra.mrb[22].mxu1 %vm219_vm0, %v201_v60 }
  0x43   :  { %1579 = vmatprep.mubr.msk.f32.mxu0 %vm219_vm0, %v170_v61  ;;  %1627 = vmatprep.mubr.msk.f32.mxu1 %vm219_vm0, %v202_v62 }
  0x46   :  { %1580 = vmatmul.mubr.msk.f32.gmra.mrb[24].mxu0 %vm219_vm0, %v171_v63  ;;  %1628 = vmatmul.mubr.msk.f32.gmra.mrb[24].mxu1 %vm219_vm0, %v203_v0 }
  0x47   :  { %1582 = vmatprep.mubr.msk.f32.mxu0 %vm219_vm0, %v172_v1  ;;  %1630 = vmatprep.mubr.msk.f32.mxu1 %vm219_vm0, %v204_v2 }
  0x4a   :  { %1583 = vmatmul.mubr.msk.f32.gmra.mrb[26].mxu0 %vm219_vm0, %v173_v3  ;;  %1631 = vmatmul.mubr.msk.f32.gmra.mrb[26].mxu1 %vm219_vm0, %v205_v4 }
  0x4b   :  { %1585 = vmatprep.mubr.msk.f32.mxu0 %vm219_vm0, %v174_v5  ;;  %1633 = vmatprep.mubr.msk.f32.mxu1 %vm219_vm0, %v206_v6 }
  0x4e   :  { %1586 = vmatmul.mubr.msk.f32.gmra.mrb[28].mxu0 %vm219_vm0, %v175_v7  ;;  %1634 = vmatmul.mubr.msk.f32.gmra.mrb[28].mxu1 %vm219_vm0, %v207_v8 }
  0x4f   :  { %1588 = vmatprep.mubr.msk.f32.mxu0 %vm219_vm0, %v176_v9  ;;  %1636 = vmatprep.mubr.msk.f32.mxu1 %vm219_vm0, %v208_v10 }
  0x52   :  { %1589 = vmatmul.mubr.msk.f32.gmra.mrb[30].mxu0 %vm219_vm0, %v177_v11  ;;  %1637 = vmatmul.mubr.msk.f32.gmra.mrb[30].mxu1 %vm219_vm0, %v209_v12 }
  0xe9   :  { %v1545_v14 = vpop.f32.mrb[0].mxu0  ;;  %v1593_v15 = vpop.f32.mrb[0].mxu1 }
  0xea   :  { %v1000_v16 = vadd.f32 %v1545_v14, %v1971_v13  ;;  %v1032_v17 = vadd.f32 %v1593_v15, %v1971_v13  ;;  %v478_v18 = vpop.f32.mrb[1].mxu0  ;;  %v638_v19 = vpop.f32.mrb[1].mxu1 }
  0xeb   :  { %v999_v20 = vadd.f32 %v1971_v13, %v478_v18  ;;  %v1031_v21 = vadd.f32 %v1971_v13, %v638_v19 }
  0xec   :  { %vm1064_vm1 = vcmp.ge.f32.partialorder %v1000_v16, 0.0  ;;  %v1128_v22 = vmul.f32 0.2, %v1000_v16  ;;  %vm1096_vm2 = vcmp.ge.f32.partialorder %v1032_v17, 0.0  ;;  %v1160_v23 = vmul.f32 0.2, %v1032_v17 }
  0xed   :  { %vm1063_vm3 = vcmp.ge.f32.partialorder %v999_v20, 0.0  ;;  %v1127_v24 = vmul.f32 0.2, %v999_v20  ;;  %vm1095_vm4 = vcmp.ge.f32.partialorder %v1031_v21, 0.0  ;;  %v1159_v25 = vmul.f32 0.2, %v1031_v21 }
  0xee   :  { %v1192_v26 = vsel %vm1064_vm1, %v1000_v16, %v1128_v22  ;;  %v1224_v27 = vsel %vm1096_vm2, %v1032_v17, %v1160_v23  ;;  %v1548_v28 = vpop.f32.mrb[2].mxu0  ;;  %v1596_v29 = vpop.f32.mrb[2].mxu1 }
  0xef   :  { %v1256_v30 = vmul.f32 1.4142135, %v1192_v26  ;;  %v1288_v31 = vmul.f32 1.4142135, %v1224_v27  ;;  %v1191_v32 = vsel %vm1063_vm3, %v999_v20, %v1127_v24  ;;  %v1223_v33 = vsel %vm1095_vm4, %v1031_v21, %v1159_v25  ;;  %v488_v34 = vpop.f32.mrb[3].mxu0  ;;  %v648_v35 = vpop.f32.mrb[3].mxu1 }
  0xf0   :  { %v1255_v36 = vmul.f32 1.4142135, %v1191_v32  ;;  %v1287_v37 = vmul.f32 1.4142135, %v1223_v33  ;;  %v1002_v38 = vadd.f32 %v1548_v28, %v1971_v13  ;;  %v1034_v39 = vadd.f32 %v1596_v29, %v1971_v13 }
  0xf1   :  { %1320 = vst [vmem:[%s2296_s3 + $0x8] sm:$0xff] %v1256_v30  ;;  %1352 = vst [vmem:[%s2296_s3 + $0x108] sm:$0xff] %v1288_v31  ;;  %v1001_v40 = vadd.f32 %v1971_v13, %v488_v34  ;;  %v1033_v41 = vadd.f32 %v1971_v13, %v648_v35  ;;  %v1551_v42 = vpop.f32.mrb[4].mxu0  ;;  %v1599_v43 = vpop.f32.mrb[4].mxu1 }
  0xf2   :  { %1319 = vst [vmem:[%s2296_s3] sm:$0xff] %v1255_v36  ;;  %1351 = vst [vmem:[%s2296_s3 + $0x100] sm:$0xff] %v1287_v37  ;;  %vm1066_vm5 = vcmp.ge.f32.partialorder %v1002_v38, 0.0  ;;  %v1130_v44 = vmul.f32 0.2, %v1002_v38  ;;  %vm1098_vm6 = vcmp.ge.f32.partialorder %v1034_v39, 0.0  ;;  %v1004_v50 = vadd.f32 %v1551_v42, %v1971_v13  ;;  %v498_v52 = vpop.f32.mrb[5].mxu0 }
  0xf3   :  { %v1162_v45 = vmul.f32 0.2, %v1034_v39  ;;  %vm1065_vm7 = vcmp.ge.f32.partialorder %v1001_v40, 0.0  ;;  %v1129_v46 = vmul.f32 0.2, %v1001_v40  ;;  %vm1097_vm8 = vcmp.ge.f32.partialorder %v1033_v41, 0.0 }
  0xf4   :  { %v1161_v47 = vmul.f32 0.2, %v1033_v41  ;;  %v1194_v48 = vsel %vm1066_vm5, %v1002_v38, %v1130_v44  ;;  %v1036_v51 = vadd.f32 %v1599_v43, %v1971_v13  ;;  %v658_v53 = vpop.f32.mrb[5].mxu1  ;;  %vm1068_vm9 = vcmp.ge.f32.partialorder %v1004_v50, 0.0 }
  0xf5   :  { %v1226_v49 = vsel %vm1098_vm6, %v1034_v39, %v1162_v45  ;;  %v1258_v54 = vmul.f32 1.4142135, %v1194_v48  ;;  %v1193_v56 = vsel %vm1065_vm7, %v1001_v40, %v1129_v46  ;;  %v1554_v58 = vpop.f32.mrb[6].mxu0  ;;  %v1602_v59 = vpop.f32.mrb[6].mxu1  ;;  %v1132_v62 = vmul.f32 0.2, %v1004_v50 }
  0xf6   :  { %v1290_v55 = vmul.f32 1.4142135, %v1226_v49  ;;  %v1225_v57 = vsel %vm1097_vm8, %v1033_v41, %v1161_v47  ;;  %v1257_v60 = vmul.f32 1.4142135, %v1193_v56  ;;  %vm1100_vm10 = vcmp.ge.f32.partialorder %v1036_v51, 0.0  ;;  %v508_v2 = vpop.f32.mrb[7].mxu0 }
  0xf7   :  { %v1289_v61 = vmul.f32 1.4142135, %v1225_v57  ;;  %1322 = vst [vmem:[%s2296_s3 + $0x18] sm:$0xff] %v1258_v54  ;;  %v1164_v63 = vmul.f32 0.2, %v1036_v51  ;;  %v1003_v0 = vadd.f32 %v1971_v13, %v498_v52  ;;  %v1035_v1 = vadd.f32 %v1971_v13, %v658_v53  ;;  %v668_v3 = vpop.f32.mrb[7].mxu1 }
  0xf8   :  { %1354 = vst [vmem:[%s2296_s3 + $0x118] sm:$0xff] %v1290_v55  ;;  %1321 = vst [vmem:[%s2296_s3 + $0x10] sm:$0xff] %v1257_v60  ;;  %v1006_v4 = vadd.f32 %v1554_v58, %v1971_v13  ;;  %v1038_v5 = vadd.f32 %v1602_v59, %v1971_v13  ;;  %v1005_v6 = vadd.f32 %v1971_v13, %v508_v2 }
  0xf9   :  { %1353 = vst [vmem:[%s2296_s3 + $0x110] sm:$0xff] %v1289_v61  ;;  %v1037_v7 = vadd.f32 %v1971_v13, %v668_v3  ;;  %v1196_v8 = vsel %vm1068_vm9, %v1004_v50, %v1132_v62  ;;  %v1228_v9 = vsel %vm1100_vm10, %v1036_v51, %v1164_v63  ;;  %vm1067_vm11 = vcmp.ge.f32.partialorder %v1003_v0, 0.0  ;;  %v1557_v11 = vpop.f32.mrb[8].mxu0  ;;  %v1605_v12 = vpop.f32.mrb[8].mxu1 }
  0xfa   :  { %v1131_v10 = vmul.f32 0.2, %v1003_v0  ;;  %v1260_v14 = vmul.f32 1.4142135, %v1196_v8  ;;  %v1292_v15 = vmul.f32 1.4142135, %v1228_v9  ;;  %v1008_v31 = vadd.f32 %v1557_v11, %v1971_v13 }
  0xfb   :  { %vm1099_vm12 = vcmp.ge.f32.partialorder %v1035_v1, 0.0  ;;  %vm1070_vm13 = vcmp.ge.f32.partialorder %v1006_v4, 0.0  ;;  %v1163_v17 = vmul.f32 0.2, %v1035_v1  ;;  %v1134_v18 = vmul.f32 0.2, %v1006_v4 }
  0xfc   :  { %v1195_v16 = vsel %vm1067_vm11, %v1003_v0, %v1131_v10  ;;  %vm1102_vm14 = vcmp.ge.f32.partialorder %v1038_v5, 0.0  ;;  %v518_v19 = vpop.f32.mrb[9].mxu0  ;;  %1324 = vst [vmem:[%s2296_s3 + $0x28] sm:$0xff] %v1260_v14  ;;  %1356 = vst [vmem:[%s2296_s3 + $0x128] sm:$0xff] %v1292_v15  ;;  %v1166_v21 = vmul.f32 0.2, %v1038_v5  ;;  %v1040_v37 = vadd.f32 %v1605_v12, %v1971_v13 }
  0xfd   :  { %v1259_v20 = vmul.f32 1.4142135, %v1195_v16  ;;  %vm1069_vm15 = vcmp.ge.f32.partialorder %v1005_v6, 0.0  ;;  %vm1101_vm0 = vcmp.ge.f32.partialorder %v1037_v7, 0.0  ;;  %v1227_v22 = vsel %vm1099_vm12, %v1035_v1, %v1163_v17  ;;  %v678_v26 = vpop.f32.mrb[9].mxu1  ;;  %v1560_v27 = vpop.f32.mrb[10].mxu0 }
  0xfe   :  { %v1198_v23 = vsel %vm1070_vm13, %v1006_v4, %v1134_v18  ;;  %v1133_v24 = vmul.f32 0.2, %v1005_v6  ;;  %v1165_v25 = vmul.f32 0.2, %v1037_v7  ;;  %v1291_v28 = vmul.f32 1.4142135, %v1227_v22 }
  0xff   :  { %1323 = vst [vmem:[%s2296_s3 + $0x20] sm:$0xff] %v1259_v20  ;;  %v1262_v29 = vmul.f32 1.4142135, %v1198_v23  ;;  %v1230_v30 = vsel %vm1102_vm14, %v1038_v5, %v1166_v21  ;;  %v1608_v32 = vpop.f32.mrb[10].mxu1  ;;  %v528_v33 = vpop.f32.mrb[11].mxu0  ;;  %vm1072_vm1 = vcmp.ge.f32.partialorder %v1008_v31, 0.0  ;;  %v1007_v41 = vadd.f32 %v1971_v13, %v518_v19 }
 0x100   :  { %v1294_v34 = vmul.f32 1.4142135, %v1230_v30  ;;  %v1197_v35 = vsel %vm1069_vm15, %v1005_v6, %v1133_v24  ;;  %v1229_v36 = vsel %vm1101_vm0, %v1037_v7, %v1165_v25  ;;  %v688_v38 = vpop.f32.mrb[11].mxu1  ;;  %1355 = vst [vmem:[%s2296_s3 + $0x120] sm:$0xff] %v1291_v28  ;;  %v1136_v42 = vmul.f32 0.2, %v1008_v31 }
 0x101   :  { %1326 = vst [vmem:[%s2296_s3 + $0x38] sm:$0xff] %v1262_v29  ;;  %v1261_v39 = vmul.f32 1.4142135, %v1197_v35  ;;  %v1293_v40 = vmul.f32 1.4142135, %v1229_v36  ;;  %vm1104_vm2 = vcmp.ge.f32.partialorder %v1040_v37, 0.0  ;;  %v1039_v44 = vadd.f32 %v1971_v13, %v678_v26 }
 0x102   :  { %1358 = vst [vmem:[%s2296_s3 + $0x138] sm:$0xff] %v1294_v34  ;;  %v1168_v43 = vmul.f32 0.2, %v1040_v37  ;;  %v1563_v45 = vpop.f32.mrb[12].mxu0  ;;  %vm1071_vm3 = vcmp.ge.f32.partialorder %v1007_v41, 0.0  ;;  %v1010_v47 = vadd.f32 %v1560_v27, %v1971_v13  ;;  %v1042_v48 = vadd.f32 %v1608_v32, %v1971_v13  ;;  %v1611_v49 = vpop.f32.mrb[12].mxu1 }
 0x103   :  { %1325 = vst [vmem:[%s2296_s3 + $0x30] sm:$0xff] %v1261_v39  ;;  %1357 = vst [vmem:[%s2296_s3 + $0x130] sm:$0xff] %v1293_v40  ;;  %v1135_v46 = vmul.f32 0.2, %v1007_v41  ;;  %v538_v50 = vpop.f32.mrb[13].mxu0  ;;  %v1200_v51 = vsel %vm1072_vm1, %v1008_v31, %v1136_v42  ;;  %vm1103_vm4 = vcmp.ge.f32.partialorder %v1039_v44, 0.0  ;;  %v1009_v0 = vadd.f32 %v1971_v13, %v528_v33 }
 0x104   :  { %v1232_v52 = vsel %vm1104_vm2, %v1040_v37, %v1168_v43  ;;  %v1167_v53 = vmul.f32 0.2, %v1039_v44  ;;  %v698_v54 = vpop.f32.mrb[13].mxu1  ;;  %v1264_v55 = vmul.f32 1.4142135, %v1200_v51  ;;  %vm1074_vm5 = vcmp.ge.f32.partialorder %v1010_v47, 0.0 }
 0x105   :  { %v1296_v56 = vmul.f32 1.4142135, %v1232_v52  ;;  %v1199_v57 = vsel %vm1071_vm3, %v1007_v41, %v1135_v46  ;;  %v1138_v60 = vmul.f32 0.2, %v1010_v47  ;;  %vm1106_vm6 = vcmp.ge.f32.partialorder %v1042_v48, 0.0  ;;  %v1566_v61 = vpop.f32.mrb[14].mxu0 }
 0x106   :  { %v1263_v58 = vmul.f32 1.4142135, %v1199_v57  ;;  %v1231_v59 = vsel %vm1103_vm4, %v1039_v44, %v1167_v53  ;;  %1328 = vst [vmem:[%s2296_s3 + $0x48] sm:$0xff] %v1264_v55  ;;  %v1170_v63 = vmul.f32 0.2, %v1042_v48  ;;  %v1041_v1 = vadd.f32 %v1971_v13, %v688_v38  ;;  %v1614_v2 = vpop.f32.mrb[14].mxu1 }
 0x107   :  { %1360 = vst [vmem:[%s2296_s3 + $0x148] sm:$0xff] %v1296_v56  ;;  %v1295_v62 = vmul.f32 1.4142135, %v1231_v59  ;;  %v548_v3 = vpop.f32.mrb[15].mxu0  ;;  %v1202_v4 = vsel %vm1074_vm5, %v1010_v47, %v1138_v60  ;;  %v1012_v5 = vadd.f32 %v1563_v45, %v1971_v13  ;;  %v1044_v6 = vadd.f32 %v1611_v49, %v1971_v13  ;;  %v708_v8 = vpop.f32.mrb[15].mxu1 }
 0x108   :  { %1327 = vst [vmem:[%s2296_s3 + $0x40] sm:$0xff] %v1263_v58  ;;  %v1011_v7 = vadd.f32 %v1971_v13, %v538_v50  ;;  %v1266_v9 = vmul.f32 1.4142135, %v1202_v4  ;;  %v1234_v10 = vsel %vm1106_vm6, %v1042_v48, %v1170_v63  ;;  %vm1073_vm7 = vcmp.ge.f32.partialorder %v1009_v0, 0.0 }
 0x109   :  { %1359 = vst [vmem:[%s2296_s3 + $0x140] sm:$0xff] %v1295_v62  ;;  %v1137_v11 = vmul.f32 0.2, %v1009_v0  ;;  %v1298_v12 = vmul.f32 1.4142135, %v1234_v10  ;;  %vm1105_vm8 = vcmp.ge.f32.partialorder %v1041_v1, 0.0  ;;  %v1043_v26 = vadd.f32 %v1971_v13, %v698_v54 }
 0x10a   :  { %v1169_v14 = vmul.f32 0.2, %v1041_v1  ;;  %vm1076_vm9 = vcmp.ge.f32.partialorder %v1012_v5, 0.0  ;;  %1330 = vst [vmem:[%s2296_s3 + $0x58] sm:$0xff] %v1266_v9  ;;  %v1140_v16 = vmul.f32 0.2, %v1012_v5  ;;  %v1014_v32 = vadd.f32 %v1566_v61, %v1971_v13 }
 0x10b   :  { %v1201_v15 = vsel %vm1073_vm7, %v1009_v0, %v1137_v11  ;;  %vm1108_vm10 = vcmp.ge.f32.partialorder %v1044_v6, 0.0  ;;  %v1172_v17 = vmul.f32 0.2, %v1044_v6  ;;  %v1569_v18 = vpop.f32.mrb[16].mxu0  ;;  %1362 = vst [vmem:[%s2296_s3 + $0x158] sm:$0xff] %v1298_v12  ;;  %vm1075_vm11 = vcmp.ge.f32.partialorder %v1011_v7, 0.0 }
 0x10c   :  { %v1265_v19 = vmul.f32 1.4142135, %v1201_v15  ;;  %v1233_v20 = vsel %vm1105_vm8, %v1041_v1, %v1169_v14  ;;  %v1139_v21 = vmul.f32 0.2, %v1011_v7  ;;  %v1617_v22 = vpop.f32.mrb[16].mxu1  ;;  %v1204_v24 = vsel %vm1076_vm9, %v1012_v5, %v1140_v16  ;;  %v558_v27 = vpop.f32.mrb[17].mxu0 }
 0x10d   :  { %v1297_v23 = vmul.f32 1.4142135, %v1233_v20  ;;  %v1236_v25 = vsel %vm1108_vm10, %v1044_v6, %v1172_v17  ;;  %v718_v28 = vpop.f32.mrb[17].mxu1  ;;  %v1268_v29 = vmul.f32 1.4142135, %v1204_v24  ;;  %v1572_v33 = vpop.f32.mrb[18].mxu0  ;;  %v1046_v37 = vadd.f32 %v1614_v2, %v1971_v13 }
 0x10e   :  { %1329 = vst [vmem:[%s2296_s3 + $0x50] sm:$0xff] %v1265_v19  ;;  %v1300_v30 = vmul.f32 1.4142135, %v1236_v25  ;;  %v1203_v31 = vsel %vm1075_vm11, %v1011_v7, %v1139_v21  ;;  %v1620_v34 = vpop.f32.mrb[18].mxu1  ;;  %vm1107_vm12 = vcmp.ge.f32.partialorder %v1043_v26, 0.0  ;;  %v568_v38 = vpop.f32.mrb[19].mxu0  ;;  %v1013_v40 = vadd.f32 %v1971_v13, %v548_v3 }
 0x10f   :  { %1361 = vst [vmem:[%s2296_s3 + $0x150] sm:$0xff] %v1297_v23  ;;  %v1267_v35 = vmul.f32 1.4142135, %v1203_v31  ;;  %v1171_v36 = vmul.f32 0.2, %v1043_v26  ;;  %1332 = vst [vmem:[%s2296_s3 + $0x68] sm:$0xff] %v1268_v29  ;;  %v1045_v41 = vadd.f32 %v1971_v13, %v708_v8  ;;  %v1016_v45 = vadd.f32 %v1569_v18, %v1971_v13 }
 0x110   :  { %1364 = vst [vmem:[%s2296_s3 + $0x168] sm:$0xff] %v1300_v30  ;;  %vm1078_vm13 = vcmp.ge.f32.partialorder %v1014_v32, 0.0  ;;  %v1142_v39 = vmul.f32 0.2, %v1014_v32  ;;  %v728_v42 = vpop.f32.mrb[19].mxu1  ;;  %vm1110_vm14 = vcmp.ge.f32.partialorder %v1046_v37, 0.0  ;;  %v1048_v60 = vadd.f32 %v1617_v22, %v1971_v13 }
 0x111   :  { %1331 = vst [vmem:[%s2296_s3 + $0x60] sm:$0xff] %v1267_v35  ;;  %v1235_v43 = vsel %vm1107_vm12, %v1043_v26, %v1171_v36  ;;  %v1174_v44 = vmul.f32 0.2, %v1046_v37  ;;  %vm1077_vm15 = vcmp.ge.f32.partialorder %v1013_v40, 0.0  ;;  %v1141_v48 = vmul.f32 0.2, %v1013_v40 }
 0x112   :  { %v1299_v46 = vmul.f32 1.4142135, %v1235_v43  ;;  %v1206_v47 = vsel %vm1078_vm13, %v1014_v32, %v1142_v39  ;;  %v1575_v49 = vpop.f32.mrb[20].mxu0  ;;  %vm1109_vm0 = vcmp.ge.f32.partialorder %v1045_v41, 0.0  ;;  %v1173_v52 = vmul.f32 0.2, %v1045_v41 }
 0x113   :  { %v1270_v50 = vmul.f32 1.4142135, %v1206_v47  ;;  %v1238_v51 = vsel %vm1110_vm14, %v1046_v37, %v1174_v44  ;;  %v1623_v53 = vpop.f32.mrb[20].mxu1  ;;  %v1205_v55 = vsel %vm1077_vm15, %v1013_v40, %v1141_v48  ;;  %vm1080_vm1 = vcmp.ge.f32.partialorder %v1016_v45, 0.0  ;;  %v578_v57 = vpop.f32.mrb[21].mxu0 }
 0x114   :  { %1363 = vst [vmem:[%s2296_s3 + $0x160] sm:$0xff] %v1299_v46  ;;  %v1302_v54 = vmul.f32 1.4142135, %v1238_v51  ;;  %v1144_v56 = vmul.f32 0.2, %v1016_v45  ;;  %v1237_v59 = vsel %vm1109_vm0, %v1045_v41, %v1173_v52  ;;  %v1015_v61 = vadd.f32 %v1971_v13, %v558_v27  ;;  %v738_v62 = vpop.f32.mrb[21].mxu1 }
 0x115   :  { %1334 = vst [vmem:[%s2296_s3 + $0x78] sm:$0xff] %v1270_v50  ;;  %v1269_v58 = vmul.f32 1.4142135, %v1205_v55  ;;  %v1301_v63 = vmul.f32 1.4142135, %v1237_v59  ;;  %v1047_v1 = vadd.f32 %v1971_v13, %v718_v28  ;;  %v1018_v2 = vadd.f32 %v1572_v33, %v1971_v13  ;;  %v1578_v3 = vpop.f32.mrb[22].mxu0 }
 0x116   :  { %1366 = vst [vmem:[%s2296_s3 + $0x178] sm:$0xff] %v1302_v54  ;;  %v1208_v0 = vsel %vm1080_vm1, %v1016_v45, %v1144_v56  ;;  %v1626_v4 = vpop.f32.mrb[22].mxu1  ;;  %vm1112_vm2 = vcmp.ge.f32.partialorder %v1048_v60, 0.0  ;;  %v1176_v6 = vmul.f32 0.2, %v1048_v60  ;;  %vm1079_vm3 = vcmp.ge.f32.partialorder %v1015_v61, 0.0 }
 0x117   :  { %1333 = vst [vmem:[%s2296_s3 + $0x70] sm:$0xff] %v1269_v58  ;;  %v1272_v5 = vmul.f32 1.4142135, %v1208_v0  ;;  %1365 = vst [vmem:[%s2296_s3 + $0x170] sm:$0xff] %v1301_v63  ;;  %v1143_v7 = vmul.f32 0.2, %v1015_v61  ;;  %v1050_v11 = vadd.f32 %v1620_v34, %v1971_v13  ;;  %v1017_v12 = vadd.f32 %v1971_v13, %v568_v38 }
 0x118   :  { %vm1111_vm4 = vcmp.ge.f32.partialorder %v1047_v1, 0.0  ;;  %v1175_v8 = vmul.f32 0.2, %v1047_v1  ;;  %vm1082_vm5 = vcmp.ge.f32.partialorder %v1018_v2, 0.0  ;;  %v1240_v9 = vsel %vm1112_vm2, %v1048_v60, %v1176_v6  ;;  %v2118_v14 = vpop.f32.mrb[23].mxu0  ;;  %v2120_v15 = vpop.f32.mrb[23].mxu1 }
 0x119   :  { %1336 = vst [vmem:[%s2296_s3 + $0x88] sm:$0xff] %v1272_v5  ;;  %v1146_v10 = vmul.f32 0.2, %v1018_v2  ;;  %v1304_v16 = vmul.f32 1.4142135, %v1240_v9  ;;  %v1207_v17 = vsel %vm1079_vm3, %v1015_v61, %v1143_v7  ;;  %v1049_v19 = vadd.f32 %v1971_v13, %v728_v42  ;;  %v2123_v20 = vpop.f32.mrb[24].mxu0 }
 0x11a   :  { %v1239_v18 = vsel %vm1111_vm4, %v1047_v1, %v1175_v8  ;;  %v2125_v21 = vpop.f32.mrb[24].mxu1  ;;  %v1271_v22 = vmul.f32 1.4142135, %v1207_v17  ;;  %vm1114_vm6 = vcmp.ge.f32.partialorder %v1050_v11, 0.0  ;;  %v2128_v25 = vpop.f32.mrb[25].mxu0  ;;  %vm1081_vm7 = vcmp.ge.f32.partialorder %v1017_v12, 0.0 }
 0x11b   :  { %v1303_v23 = vmul.f32 1.4142135, %v1239_v18  ;;  %v1210_v24 = vsel %vm1082_vm5, %v1018_v2, %v1146_v10  ;;  %1368 = vst [vmem:[%s2296_s3 + $0x188] sm:$0xff] %v1304_v16  ;;  %v1178_v27 = vmul.f32 0.2, %v1050_v11  ;;  %vm1113_vm8 = vcmp.ge.f32.partialorder %v1049_v19, 0.0 }
 0x11c   :  { %v1274_v26 = vmul.f32 1.4142135, %v1210_v24  ;;  %1335 = vst [vmem:[%s2296_s3 + $0x80] sm:$0xff] %v1271_v22  ;;  %v1145_v28 = vmul.f32 0.2, %v1017_v12  ;;  %v1020_v30 = vadd.f32 %v1575_v49, %v1971_v13  ;;  %v1052_v31 = vadd.f32 %v1623_v53, %v1971_v13  ;;  %v2141_v32 = vpop.f32.mrb[25].mxu1 }
 0x11d   :  { %1367 = vst [vmem:[%s2296_s3 + $0x180] sm:$0xff] %v1303_v23  ;;  %v1177_v29 = vmul.f32 0.2, %v1049_v19  ;;  %v1242_v33 = vsel %vm1114_vm6, %v1050_v11, %v1178_v27  ;;  %v1019_v34 = vadd.f32 %v1971_v13, %v578_v57  ;;  %v1051_v35 = vadd.f32 %v1971_v13, %v738_v62  ;;  %v2149_v37 = vpop.f32.mrb[26].mxu0  ;;  %v2151_v38 = vpop.f32.mrb[26].mxu1 }
 0x11e   :  { %1338 = vst [vmem:[%s2296_s3 + $0x98] sm:$0xff] %v1274_v26  ;;  %v1022_v36 = vadd.f32 %v1578_v3, %v1971_v13  ;;  %v1306_v39 = vmul.f32 1.4142135, %v1242_v33  ;;  %v1209_v40 = vsel %vm1081_vm7, %v1017_v12, %v1145_v28  ;;  %vm1084_vm9 = vcmp.ge.f32.partialorder %v1020_v30, 0.0  ;;  %v2155_v42 = vpop.f32.mrb[27].mxu0  ;;  %v2157_v43 = vpop.f32.mrb[27].mxu1 }
 0x11f   :  { %v1241_v41 = vsel %vm1113_vm8, %v1049_v19, %v1177_v29  ;;  %v1273_v44 = vmul.f32 1.4142135, %v1209_v40  ;;  %v1148_v46 = vmul.f32 0.2, %v1020_v30  ;;  %v1054_v47 = vadd.f32 %v1626_v4, %v1971_v13 }
 0x120   :  { %v1305_v45 = vmul.f32 1.4142135, %v1241_v41  ;;  %1370 = vst [vmem:[%s2296_s3 + $0x198] sm:$0xff] %v1306_v39  ;;  %vm1116_vm10 = vcmp.ge.f32.partialorder %v1052_v31, 0.0  ;;  %v1180_v48 = vmul.f32 0.2, %v1052_v31  ;;  %v1021_v2 = vadd.f32 %v1971_v13, %v2118_v14 }
 0x121   :  { %vm1083_vm11 = vcmp.ge.f32.partialorder %v1019_v34, 0.0  ;;  %v1147_v49 = vmul.f32 0.2, %v1019_v34  ;;  %1337 = vst [vmem:[%s2296_s3 + $0x90] sm:$0xff] %v1273_v44  ;;  %v1212_v50 = vsel %vm1084_vm9, %v1020_v30, %v1148_v46  ;;  %vm1115_vm12 = vcmp.ge.f32.partialorder %v1051_v35, 0.0  ;;  %v2169_v52 = vpop.f32.mrb[28].mxu0 }
 0x122   :  { %1369 = vst [vmem:[%s2296_s3 + $0x190] sm:$0xff] %v1305_v45  ;;  %v1179_v51 = vmul.f32 0.2, %v1051_v35  ;;  %vm1086_vm13 = vcmp.ge.f32.partialorder %v1022_v36, 0.0  ;;  %v2171_v53 = vpop.f32.mrb[28].mxu1  ;;  %v1244_v55 = vsel %vm1116_vm10, %v1052_v31, %v1180_v48  ;;  %v2173_v58 = vpop.f32.mrb[29].mxu0  ;;  %v1053_v4 = vadd.f32 %v1971_v13, %v2120_v15 }
 0x123   :  { %v1276_v54 = vmul.f32 1.4142135, %v1212_v50  ;;  %v1211_v56 = vsel %vm1083_vm11, %v1019_v34, %v1147_v49  ;;  %v1150_v57 = vmul.f32 0.2, %v1022_v36  ;;  %v2175_v59 = vpop.f32.mrb[29].mxu1  ;;  %vm1118_vm14 = vcmp.ge.f32.partialorder %v1054_v47, 0.0 }
 0x124   :  { %v1308_v60 = vmul.f32 1.4142135, %v1244_v55  ;;  %v1275_v61 = vmul.f32 1.4142135, %v1211_v56  ;;  %v1243_v62 = vsel %vm1115_vm12, %v1051_v35, %v1179_v51  ;;  %v1182_v1 = vmul.f32 0.2, %v1054_v47 }
 0x125   :  { %1340 = vst [vmem:[%s2296_s3 + $0xa8] sm:$0xff] %v1276_v54  ;;  %v1307_v63 = vmul.f32 1.4142135, %v1243_v62  ;;  %v1214_v0 = vsel %vm1086_vm13, %v1022_v36, %v1150_v57  ;;  %v1024_v5 = vadd.f32 %v2123_v20, %v1971_v13  ;;  %v1056_v6 = vadd.f32 %v2125_v21, %v1971_v13  ;;  %v2194_v7 = vpop.f32.mrb[30].mxu0  ;;  %v2196_v8 = vpop.f32.mrb[30].mxu1 }
 0x126   :  { %1372 = vst [vmem:[%s2296_s3 + $0x1a8] sm:$0xff] %v1308_v60  ;;  %1339 = vst [vmem:[%s2296_s3 + $0xa0] sm:$0xff] %v1275_v61  ;;  %v1278_v3 = vmul.f32 1.4142135, %v1214_v0  ;;  %v1246_v9 = vsel %vm1118_vm14, %v1054_v47, %v1182_v1  ;;  %vm1085_vm15 = vcmp.ge.f32.partialorder %v1021_v2, 0.0  ;;  %v1023_v11 = vadd.f32 %v1971_v13, %v2128_v25  ;;  %v2203_v12 = vpop.f32.mrb[31].mxu0 }
 0x127   :  { %1371 = vst [vmem:[%s2296_s3 + $0x1a0] sm:$0xff] %v1307_v63  ;;  %v1149_v10 = vmul.f32 0.2, %v1021_v2  ;;  %v2205_v14 = vpop.f32.mrb[31].mxu1  ;;  %v1310_v15 = vmul.f32 1.4142135, %v1246_v9  ;;  %v1055_v26 = vadd.f32 %v1971_v13, %v2141_v32  ;;  %v1026_v30 = vadd.f32 %v2149_v37, %v1971_v13 }
 0x128   :  { %1342 = vst [vmem:[%s2296_s3 + $0xb8] sm:$0xff] %v1278_v3  ;;  %vm1117_vm0 = vcmp.ge.f32.partialorder %v1053_v4, 0.0  ;;  %v1181_v16 = vmul.f32 0.2, %v1053_v4  ;;  %vm1088_vm1 = vcmp.ge.f32.partialorder %v1024_v5, 0.0  ;;  %vm1120_vm2 = vcmp.ge.f32.partialorder %v1056_v6, 0.0 }
 0x129   :  { %v1213_v17 = vsel %vm1085_vm15, %v1021_v2, %v1149_v10  ;;  %v1152_v18 = vmul.f32 0.2, %v1024_v5  ;;  %v1184_v19 = vmul.f32 0.2, %v1056_v6  ;;  %1374 = vst [vmem:[%s2296_s3 + $0x1b8] sm:$0xff] %v1310_v15  ;;  %vm1087_vm3 = vcmp.ge.f32.partialorder %v1023_v11, 0.0 }
 0x12a   :  { %v1277_v20 = vmul.f32 1.4142135, %v1213_v17  ;;  %v1245_v21 = vsel %vm1117_vm0, %v1053_v4, %v1181_v16  ;;  %v1151_v22 = vmul.f32 0.2, %v1023_v11  ;;  %vm1119_vm4 = vcmp.ge.f32.partialorder %v1055_v26, 0.0 }
 0x12b   :  { %v1309_v23 = vmul.f32 1.4142135, %v1245_v21  ;;  %v1216_v24 = vsel %vm1088_vm1, %v1024_v5, %v1152_v18  ;;  %v1248_v25 = vsel %vm1120_vm2, %v1056_v6, %v1184_v19  ;;  %v1183_v33 = vmul.f32 0.2, %v1055_v26 }
 0x12c   :  { %1341 = vst [vmem:[%s2296_s3 + $0xb0] sm:$0xff] %v1277_v20  ;;  %v1280_v27 = vmul.f32 1.4142135, %v1216_v24  ;;  %v1312_v28 = vmul.f32 1.4142135, %v1248_v25  ;;  %v1215_v29 = vsel %vm1087_vm3, %v1023_v11, %v1151_v22  ;;  %v1058_v32 = vadd.f32 %v2151_v38, %v1971_v13 }
 0x12d   :  { %1373 = vst [vmem:[%s2296_s3 + $0x1b0] sm:$0xff] %v1309_v23  ;;  %v1279_v31 = vmul.f32 1.4142135, %v1215_v29  ;;  %vm1090_vm5 = vcmp.ge.f32.partialorder %v1026_v30, 0.0  ;;  %v1154_v34 = vmul.f32 0.2, %v1026_v30  ;;  %v1025_v35 = vadd.f32 %v1971_v13, %v2155_v42 }
 0x12e   :  { %1344 = vst [vmem:[%s2296_s3 + $0xc8] sm:$0xff] %v1280_v27  ;;  %1376 = vst [vmem:[%s2296_s3 + $0x1c8] sm:$0xff] %v1312_v28  ;;  %v1057_v36 = vadd.f32 %v1971_v13, %v2157_v43  ;;  %v1247_v37 = vsel %vm1119_vm4, %v1055_v26, %v1183_v33  ;;  %vm1122_vm6 = vcmp.ge.f32.partialorder %v1058_v32, 0.0  ;;  %v1186_v38 = vmul.f32 0.2, %v1058_v32 }
 0x12f   :  { %1343 = vst [vmem:[%s2296_s3 + $0xc0] sm:$0xff] %v1279_v31  ;;  %v1028_v39 = vadd.f32 %v2169_v52, %v1971_v13  ;;  %v1311_v40 = vmul.f32 1.4142135, %v1247_v37  ;;  %v1218_v41 = vsel %vm1090_vm5, %v1026_v30, %v1154_v34  ;;  %vm1089_vm7 = vcmp.ge.f32.partialorder %v1025_v35, 0.0 }
 0x130   :  { %v1153_v44 = vmul.f32 0.2, %v1025_v35  ;;  %v1282_v45 = vmul.f32 1.4142135, %v1218_v41  ;;  %v1250_v46 = vsel %vm1122_vm6, %v1058_v32, %v1186_v38  ;;  %vm1121_vm8 = vcmp.ge.f32.partialorder %v1057_v36, 0.0 }
 0x131   :  { %v1185_v42 = vmul.f32 0.2, %v1057_v36  ;;  %1375 = vst [vmem:[%s2296_s3 + $0x1c0] sm:$0xff] %v1311_v40  ;;  %v1314_v43 = vmul.f32 1.4142135, %v1250_v46  ;;  %vm1092_vm9 = vcmp.ge.f32.partialorder %v1028_v39, 0.0  ;;  %v1060_v51 = vadd.f32 %v2171_v53, %v1971_v13 }
 0x132   :  { %v1217_v47 = vsel %vm1089_vm7, %v1025_v35, %v1153_v44  ;;  %v1156_v48 = vmul.f32 0.2, %v1028_v39  ;;  %1346 = vst [vmem:[%s2296_s3 + $0xd8] sm:$0xff] %v1282_v45  ;;  %v1027_v52 = vadd.f32 %v1971_v13, %v2173_v58  ;;  %v1059_v56 = vadd.f32 %v1971_v13, %v2175_v59 }
 0x133   :  { %v1281_v49 = vmul.f32 1.4142135, %v1217_v47  ;;  %v1249_v50 = vsel %vm1121_vm8, %v1057_v36, %v1185_v42  ;;  %1378 = vst [vmem:[%s2296_s3 + $0x1d8] sm:$0xff] %v1314_v43  ;;  %v1030_v57 = vadd.f32 %v2194_v7, %v1971_v13  ;;  %vm1124_vm10 = vcmp.ge.f32.partialorder %v1060_v51, 0.0 }
 0x134   :  { %v1313_v54 = vmul.f32 1.4142135, %v1249_v50  ;;  %v1220_v55 = vsel %vm1092_vm9, %v1028_v39, %v1156_v48  ;;  %v1188_v60 = vmul.f32 0.2, %v1060_v51  ;;  %vm1091_vm11 = vcmp.ge.f32.partialorder %v1027_v52, 0.0 }
 0x135   :  { %1345 = vst [vmem:[%s2296_s3 + $0xd0] sm:$0xff] %v1281_v49  ;;  %v1284_v53 = vmul.f32 1.4142135, %v1220_v55  ;;  %v1155_v58 = vmul.f32 0.2, %v1027_v52  ;;  %vm1123_vm12 = vcmp.ge.f32.partialorder %v1059_v56, 0.0  ;;  %v1062_v63 = vadd.f32 %v2196_v8, %v1971_v13 }
 0x136   :  { %1377 = vst [vmem:[%s2296_s3 + $0x1d0] sm:$0xff] %v1313_v54  ;;  %v1187_v61 = vmul.f32 0.2, %v1059_v56  ;;  %vm1094_vm13 = vcmp.ge.f32.partialorder %v1030_v57, 0.0  ;;  %v1252_v59 = vsel %vm1124_vm10, %v1060_v51, %v1188_v60  ;;  %v1158_v62 = vmul.f32 0.2, %v1030_v57 }
 0x137   :  { %1348 = vst [vmem:[%s2296_s3 + $0xe8] sm:$0xff] %v1284_v53  ;;  %v1029_v0 = vadd.f32 %v1971_v13, %v2203_v12  ;;  %v1316_v1 = vmul.f32 1.4142135, %v1252_v59  ;;  %v1219_v2 = vsel %vm1091_vm11, %v1027_v52, %v1155_v58  ;;  %v1061_v4 = vadd.f32 %v1971_v13, %v2205_v14 }
 0x138   :  { %v1251_v3 = vsel %vm1123_vm12, %v1059_v56, %v1187_v61  ;;  %v1283_v5 = vmul.f32 1.4142135, %v1219_v2  ;;  %v1222_v7 = vsel %vm1094_vm13, %v1030_v57, %v1158_v62  ;;  %vm1126_vm14 = vcmp.ge.f32.partialorder %v1062_v63, 0.0 }
 0x139   :  { %v1315_v6 = vmul.f32 1.4142135, %v1251_v3  ;;  %1380 = vst [vmem:[%s2296_s3 + $0x1e8] sm:$0xff] %v1316_v1  ;;  %v1286_v9 = vmul.f32 1.4142135, %v1222_v7  ;;  %vm1093_vm15 = vcmp.ge.f32.partialorder %v1029_v0, 0.0 }
 0x13a   :  { %v1190_v10 = vmul.f32 0.2, %v1062_v63  ;;  %vm1125_vm0 = vcmp.ge.f32.partialorder %v1061_v4, 0.0  ;;  %1347 = vst [vmem:[%s2296_s3 + $0xe0] sm:$0xff] %v1283_v5  ;;  %v1157_v13 = vmul.f32 0.2, %v1029_v0 }
 0x13b   :  { %1379 = vst [vmem:[%s2296_s3 + $0x1e0] sm:$0xff] %v1315_v6  ;;  %v1189_v8 = vmul.f32 0.2, %v1061_v4  ;;  %1350 = vst [vmem:[%s2296_s3 + $0xf8] sm:$0xff] %v1286_v9 }
 0x13c   :  { %v1254_v11 = vsel %vm1126_vm14, %v1062_v63, %v1190_v10  ;;  %v1221_v14 = vsel %vm1093_vm15, %v1029_v0, %v1157_v13 }
 0x13d   :  { %v1318_v12 = vmul.f32 1.4142135, %v1254_v11  ;;  %v1253_v15 = vsel %vm1125_vm0, %v1061_v4, %v1189_v8  ;;  %v1285_v16 = vmul.f32 1.4142135, %v1221_v14 }
 0x13e   :  { %v1317_v17 = vmul.f32 1.4142135, %v1253_v15 }
 0x13f   :  { %1382 = vst [vmem:[%s2296_s3 + $0x1f8] sm:$0xff] %v1318_v12  ;;  %1349 = vst [vmem:[%s2296_s3 + $0xf0] sm:$0xff] %v1285_v16 }
 0x140   :  { %1381 = vst [vmem:[%s2296_s3 + $0x1f0] sm:$0xff] %v1317_v17 }

// kernel: decoder_block_forward.7
= control target key start
LH: loop header
LB: loop body
LE: loop exit
PB: predicated region body
PF: predicated region fallthrough
CT: control target
= control target key end

     0   :  { %s878_s9 = smov 0   ;;  %s1254_s0 = inlined_call_operand.vmem [shape: f32[2,10,10,3], index: 0, kind: input, shape index: {}]   ;;  %s1255_s1 = inlined_call_operand.vmem [shape: f32[2,4,8,8,3], index: 1, kind: input, shape index: {}]   ;;  %s1256_s2 = inlined_call_operand.vmem [shape: f32[2,4,8,8,3], index: 2, kind: output, shape index: {}]  }
   0x1 LB: > { %s688_s10 = sadd.s32 4294967295, %s861_s9   ;;  %p692_p0 = scmp.ge.s32.totalorder %s861_s9, 1  ;;  %s861_s9 = sphi %s878_s9, %s12_s9  }
   0x2   : > { %p122_p1 = scmp.lt.s32.totalorder %s861_s9, 3 }
   0x4   : > { %p123_p2 = pnand %p692_p0, %p122_p1 }
   0x5   : > { %p149_p3 = scmp.lt.s32.totalorder (!%p123_p2), %s688_s10, 1  ;;  %vm269_vm0 = vcmask (!%p123_p2), 23552  }
   0x6   : > { %126 = sbr.rel (%p123_p2) target bundleno = 70 (0x46), region = 28 }
   0xd   : > { %s1258_s10 = smov (!%p149_p3, %s688_s10), 1 }
   0xe   : > { %s846_s11 = smul.u32 160, %s1258_s10  ;;  %s844_s15 = sshll.u32 %s1258_s10, 8 }
   0xf   : > { %s919_s18 = scalar_lea.vmem %s1255_s1, %s844_s15  ;;  %s969_s21 = scalar_lea.vmem %s1256_s2, %s844_s15 }
  0x10   : > { %s892_s14 = scalar_lea.vmem %s1254_s0, %s846_s11  ;;  %v253_v32 = vld [vmem:[%s919_s18] sm:$0xff]  ;;  %v254_v39 = vld [vmem:[%s919_s18 + $0x8] sm:$0xff]  ;;  %v255_v45 = vld [vmem:[%s919_s18 + $0x10] sm:$0xff] }
  0x11   : > { %v164_v0 = vld [vmem:[%s892_s14] sm:$0xff]  ;;  %v698_v2 = vld [vmem:[%s892_s14 + $0x10] sm:$0xff]  ;;  %v256_v51 = vld [vmem:[%s919_s18 + $0x18] sm:$0xff] }
  0x12   : > { %v180_v1 = vld [vmem:[%s892_s14 + $0x1] sm:$0xff]  ;;  %v172_v3 = vmul.f32 0.0625, %v164_v0  ;;  %v900_v5 = vmul.f32 0.1875, %v698_v2  ;;  %v706_v6 = vld [vmem:[%s892_s14 + $0x11] sm:$0xff]  ;;  %v173_v7 = vmul.f32 0.0625, %v698_v2 }
  0x13   : > { %v898_v4 = vmul.f32 0.1875, %v180_v1  ;;  %v699_v8 = vld [vmem:[%s892_s14 + $0x20] sm:$0xff]  ;;  %v904_v9 = vmul.f32 0.5625, %v706_v6  ;;  %v906_v10 = vmul.f32 0.1875, %v706_v6  ;;  %v700_v14 = vld [vmem:[%s892_s14 + $0x30] sm:$0xff] }
  0x14   : > { %v908_v11 = vmul.f32 0.1875, %v699_v8  ;;  %v707_v12 = vld [vmem:[%s892_s14 + $0x21] sm:$0xff]  ;;  %v911_v13 = vmul.f32 0.0625, %v699_v8  ;;  %v926_v18 = vmul.f32 0.1875, %v700_v14  ;;  %v708_v19 = vld [vmem:[%s892_s14 + $0x31] sm:$0xff]  ;;  %v934_v24 = vmul.f32 0.0625, %v700_v14 }
  0x15   : > { %v196_v15 = vadd.f32 %v898_v4, %v172_v3  ;;  %v922_v16 = vmul.f32 0.5625, %v707_v12  ;;  %v924_v17 = vmul.f32 0.1875, %v707_v12  ;;  %v701_v20 = vld [vmem:[%s892_s14 + $0x40] sm:$0xff]  ;;  %v197_v22 = vadd.f32 %v906_v10, %v173_v7  ;;  %v702_v26 = vld [vmem:[%s892_s14 + $0x50] sm:$0xff] }
  0x16   : > { %v709_v21 = vld [vmem:[%s892_s14 + $0x41] sm:$0xff]  ;;  %v932_v23 = vmul.f32 0.5625, %v708_v19  ;;  %v936_v25 = vmul.f32 0.1875, %v708_v19  ;;  %v710_v27 = vld [vmem:[%s892_s14 + $0x51] sm:$0xff]  ;;  %v943_v30 = vmul.f32 0.1875, %v701_v20  ;;  %v951_v35 = vmul.f32 0.0625, %v701_v20 }
  0x17   : > { %v221_v28 = vadd.f32 %v900_v5, %v196_v15  ;;  %v198_v29 = vadd.f32 %v924_v17, %v911_v13  ;;  %v945_v31 = vmul.f32 0.5625, %v709_v21  ;;  %v222_v33 = vadd.f32 %v908_v11, %v197_v22  ;;  %v703_v37 = vld [vmem:[%s892_s14 + $0x60] sm:$0xff]  ;;  %v704_v54 = vld [vmem:[%s892_s14 + $0x70] sm:$0xff] }
  0x18   : > { %v199_v34 = vadd.f32 %v936_v25, %v934_v24  ;;  %v953_v36 = vmul.f32 0.1875, %v709_v21  ;;  %v959_v41 = vmul.f32 0.1875, %v702_v26  ;;  %v961_v42 = vmul.f32 0.5625, %v710_v27  ;;  %v711_v43 = vld [vmem:[%s892_s14 + $0x61] sm:$0xff]  ;;  %v712_v55 = vld [vmem:[%s892_s14 + $0x71] sm:$0xff] }
  0x19   : > { %v245_v38 = vadd.f32 %v904_v9, %v221_v28  ;;  %v223_v40 = vadd.f32 %v926_v18, %v198_v29  ;;  %v246_v44 = vadd.f32 %v922_v16, %v222_v33  ;;  %v976_v48 = vmul.f32 0.0625, %v702_v26  ;;  %v257_v59 = vld [vmem:[%s919_s18 + $0x20] sm:$0xff]  ;;  %v722_v14 = vld [vmem:[%s892_s14 + $0x12] sm:$0xff] }
  0x1a   : > { %v224_v46 = vadd.f32 %v943_v30, %v199_v34  ;;  %v200_v47 = vadd.f32 %v953_v36, %v951_v35  ;;  %v980_v52 = vmul.f32 0.1875, %v710_v27  ;;  %v982_v53 = vmul.f32 0.1875, %v703_v37  ;;  %v1000_v1 = vld [vmem:[%s892_s14 + $0x80] sm:$0xff]  ;;  %v258_v27 = vld [vmem:[%s919_s18 + $0x28] sm:$0xff]  ;;  %v724_v33 = vld [vmem:[%s892_s14 + $0x32] sm:$0xff] }
  0x1b   : > { %v261_v49 = vadd.f32 %v253_v32, %v245_v38  ;;  %v247_v50 = vadd.f32 %v932_v23, %v223_v40  ;;  %v262_v56 = vadd.f32 %v254_v39, %v246_v44  ;;  %v989_v60 = vmul.f32 0.5625, %v711_v43  ;;  %v1003_v2 = vld [vmem:[%s892_s14 + $0x81] sm:$0xff]  ;;  %v259_v40 = vld [vmem:[%s919_s18 + $0x30] sm:$0xff] }
  0x1c   : > { %v248_v57 = vadd.f32 %v945_v31, %v224_v46  ;;  %v225_v58 = vadd.f32 %v959_v41, %v200_v47  ;;  %v201_v62 = vadd.f32 %v980_v52, %v976_v48  ;;  %v995_v63 = vmul.f32 0.0625, %v703_v37  ;;  %v294_v3 = vld [vmem:[%s892_s14 + $0x2] sm:$0xff] }
  0x1d   : > { %270 = vst.msk [vmem:[%s969_s21] sm:$0xff] %vm269_vm0, %v261_v49  ;;  %v263_v61 = vadd.f32 %v255_v45, %v247_v50  ;;  %v997_v0 = vmul.f32 0.1875, %v711_v43  ;;  %271 = vst.msk [vmem:[%s969_s21 + $0x8] sm:$0xff] %vm269_vm0, %v262_v56  ;;  %v1009_v8 = vmul.f32 0.1875, %v704_v54  ;;  %v1011_v12 = vmul.f32 0.5625, %v712_v55  ;;  %v723_v22 = vld [vmem:[%s892_s14 + $0x22] sm:$0xff] }
  0x1e   : > { %v264_v6 = vadd.f32 %v256_v51, %v248_v57  ;;  %v249_v7 = vadd.f32 %v961_v42, %v225_v58  ;;  %v226_v15 = vadd.f32 %v982_v53, %v201_v62  ;;  %v1019_v20 = vmul.f32 0.0625, %v704_v54  ;;  %v725_v47 = vld [vmem:[%s892_s14 + $0x42] sm:$0xff] }
  0x1f   : > { %272 = vst.msk [vmem:[%s969_s21 + $0x10] sm:$0xff] %vm269_vm0, %v263_v61  ;;  %v202_v19 = vadd.f32 %v997_v0, %v995_v63  ;;  %v1021_v21 = vmul.f32 0.1875, %v712_v55  ;;  %v1028_v28 = vmul.f32 0.1875, %v1000_v1  ;;  %v1031_v29 = vmul.f32 0.5625, %v1003_v2  ;;  %v260_v55 = vld [vmem:[%s919_s18 + $0x38] sm:$0xff] }
  0x20   : > { %273 = vst.msk [vmem:[%s969_s21 + $0x18] sm:$0xff] %vm269_vm0, %v264_v6  ;;  %v265_v26 = vadd.f32 %v257_v59, %v249_v7  ;;  %v302_v32 = vmul.f32 0.0625, %v294_v3  ;;  %v250_v34 = vadd.f32 %v989_v60, %v226_v15  ;;  %v1038_v39 = vmul.f32 0.1875, %v722_v14  ;;  %v726_v59 = vld [vmem:[%s892_s14 + $0x52] sm:$0xff]  ;;  %v730_v3 = vld [vmem:[%s919_s18 + $0x40] sm:$0xff] }
  0x21   : > { %v227_v37 = vadd.f32 %v1009_v8, %v202_v19  ;;  %v203_v38 = vadd.f32 %v1021_v21, %v1019_v20  ;;  %v303_v44 = vmul.f32 0.0625, %v722_v14  ;;  %v1044_v45 = vmul.f32 0.1875, %v723_v22 }
  0x22   : > { %274 = vst.msk [vmem:[%s969_s21 + $0x20] sm:$0xff] %vm269_vm0, %v265_v26  ;;  %v310_v43 = vadd.f32 %v302_v32, %v898_v4  ;;  %v1046_v46 = vmul.f32 0.0625, %v723_v22  ;;  %v266_v49 = vadd.f32 %v258_v27, %v250_v34  ;;  %v1051_v54 = vmul.f32 0.1875, %v724_v33  ;;  %v727_v22 = vld [vmem:[%s892_s14 + $0x62] sm:$0xff]  ;;  %v732_v32 = vld [vmem:[%s919_s18 + $0x50] sm:$0xff] }
  0x23   : > { %v251_v50 = vadd.f32 %v1011_v12, %v227_v37  ;;  %v228_v51 = vadd.f32 %v1028_v28, %v203_v38  ;;  %v311_v4 = vadd.f32 %v303_v44, %v906_v10  ;;  %v1058_v58 = vmul.f32 0.0625, %v724_v33  ;;  %v731_v27 = vld [vmem:[%s919_s18 + $0x48] sm:$0xff]  ;;  %v728_v38 = vld [vmem:[%s892_s14 + $0x72] sm:$0xff] }
  0x24   : > { %v334_v56 = vadd.f32 %v310_v43, %v904_v9  ;;  %v312_v57 = vadd.f32 %v1046_v46, %v924_v17  ;;  %275 = vst.msk [vmem:[%s969_s21 + $0x28] sm:$0xff] %vm269_vm0, %v266_v49  ;;  %v1065_v6 = vmul.f32 0.1875, %v725_v47  ;;  %v1067_v7 = vmul.f32 0.0625, %v725_v47  ;;  %v733_v49 = vld [vmem:[%s919_s18 + $0x58] sm:$0xff] }
  0x25   : > { %v267_v61 = vadd.f32 %v259_v40, %v251_v50  ;;  %v252_v62 = vadd.f32 %v1031_v29, %v228_v51  ;;  %v335_v14 = vadd.f32 %v311_v4, %v922_v16  ;;  %v313_v19 = vadd.f32 %v1058_v58, %v936_v25  ;;  %v1100_v4 = vld [vmem:[%s892_s14 + $0x82] sm:$0xff] }
  0x26   : > { %v358_v10 = vadd.f32 %v1038_v39, %v334_v56  ;;  %v336_v15 = vadd.f32 %v312_v57, %v932_v23  ;;  %v314_v33 = vadd.f32 %v1067_v7, %v953_v36  ;;  %v1081_v34 = vmul.f32 0.1875, %v726_v59 }
  0x27   : > { %276 = vst.msk [vmem:[%s969_s21 + $0x30] sm:$0xff] %vm269_vm0, %v267_v61  ;;  %v268_v26 = vadd.f32 %v260_v55, %v252_v62  ;;  %v1083_v37 = vmul.f32 0.0625, %v726_v59  ;;  %v359_v43 = vadd.f32 %v1044_v45, %v335_v14  ;;  %v337_v47 = vadd.f32 %v313_v19, %v945_v31  ;;  %v734_v62 = vld [vmem:[%s919_s18 + $0x60] sm:$0xff] }
  0x28   : > { %v375_v40 = vadd.f32 %v730_v3, %v358_v10  ;;  %v360_v44 = vadd.f32 %v1051_v54, %v336_v15  ;;  %v338_v50 = vadd.f32 %v314_v33, %v961_v42  ;;  %v1095_v55 = vmul.f32 0.1875, %v727_v22 }
  0x29   : > { %277 = vst.msk [vmem:[%s969_s21 + $0x38] sm:$0xff] %vm269_vm0, %v268_v26  ;;  %v315_v51 = vadd.f32 %v1083_v37, %v980_v52  ;;  %v1097_v56 = vmul.f32 0.0625, %v727_v22  ;;  %v376_v57 = vadd.f32 %v731_v27, %v359_v43  ;;  %v361_v61 = vadd.f32 %v1065_v6, %v337_v47  ;;  %v735_v26 = vld [vmem:[%s919_s18 + $0x68] sm:$0xff]  ;;  %v736_v47 = vld [vmem:[%s919_s18 + $0x70] sm:$0xff] }
  0x2a   : > { %738 = vst.msk [vmem:[%s969_s21 + $0x40] sm:$0xff] %vm269_vm0, %v375_v40  ;;  %v377_v59 = vadd.f32 %v732_v32, %v360_v44  ;;  %v1106_v3 = vmul.f32 0.1875, %v728_v38  ;;  %v362_v10 = vadd.f32 %v1081_v34, %v338_v50  ;;  %v1112_v19 = vmul.f32 0.0625, %v728_v38 }
  0x2b   : > { %v339_v14 = vadd.f32 %v315_v51, %v989_v60  ;;  %v316_v15 = vadd.f32 %v1097_v56, %v997_v0  ;;  %739 = vst.msk [vmem:[%s969_s21 + $0x48] sm:$0xff] %vm269_vm0, %v376_v57  ;;  %v378_v22 = vadd.f32 %v733_v49, %v361_v61  ;;  %v1120_v27 = vmul.f32 0.1875, %v1100_v4  ;;  %v778_v61 = vld [vmem:[%s919_s18 + $0x80] sm:$0xff] }
  0x2c   : > { %740 = vst.msk [vmem:[%s969_s21 + $0x50] sm:$0xff] %vm269_vm0, %v377_v59  ;;  %v424_v32 = vadd.f32 %v904_v9, %v900_v5  ;;  %v425_v33 = vadd.f32 %v922_v16, %v908_v11  ;;  %v379_v38 = vadd.f32 %v734_v62, %v362_v10  ;;  %v317_v44 = vadd.f32 %v1112_v19, %v1021_v21  ;;  %v737_v62 = vld [vmem:[%s919_s18 + $0x78] sm:$0xff] }
  0x2d   : > { %v363_v40 = vadd.f32 %v1095_v55, %v339_v14  ;;  %v340_v43 = vadd.f32 %v316_v15, %v1011_v12  ;;  %741 = vst.msk [vmem:[%s969_s21 + $0x58] sm:$0xff] %vm269_vm0, %v378_v22  ;;  %v426_v11 = vadd.f32 %v932_v23, %v926_v18  ;;  %v427_v50 = vadd.f32 %v945_v31, %v943_v30 }
  0x2e   : > { %v449_v49 = vadd.f32 %v424_v32, %v911_v13  ;;  %v450_v5 = vadd.f32 %v425_v33, %v934_v24  ;;  %742 = vst.msk [vmem:[%s969_s21 + $0x60] sm:$0xff] %vm269_vm0, %v379_v38  ;;  %v341_v59 = vadd.f32 %v317_v44, %v1031_v29  ;;  %v779_v13 = vld [vmem:[%s919_s18 + $0x88] sm:$0xff]  ;;  %v428_v24 = vadd.f32 %v961_v42, %v959_v41  ;;  %v781_v41 = vld [vmem:[%s919_s18 + $0x98] sm:$0xff]  ;;  %v769_v44 = vld [vmem:[%s892_s14 + $0x90] sm:$0xff] }
  0x2f   : > { %v380_v51 = vadd.f32 %v735_v26, %v363_v40  ;;  %v364_v57 = vadd.f32 %v1106_v3, %v340_v43  ;;  %v451_v10 = vadd.f32 %v426_v11, %v951_v35  ;;  %v452_v14 = vadd.f32 %v427_v50, %v976_v48  ;;  %v780_v26 = vld [vmem:[%s919_s18 + $0x90] sm:$0xff]  ;;  %v782_v43 = vld [vmem:[%s919_s18 + $0xa0] sm:$0xff] }
  0x30   : > { %v473_v18 = vadd.f32 %v449_v49, %v924_v17  ;;  %v474_v30 = vadd.f32 %v450_v5, %v936_v25  ;;  %v365_v22 = vadd.f32 %v1120_v27, %v341_v59  ;;  %v453_v32 = vadd.f32 %v428_v24, %v995_v63  ;;  %v777_v5 = vld [vmem:[%s892_s14 + $0x91] sm:$0xff] }
  0x31   : > { %743 = vst.msk [vmem:[%s969_s21 + $0x68] sm:$0xff] %vm269_vm0, %v380_v51  ;;  %v381_v15 = vadd.f32 %v736_v47, %v364_v57  ;;  %v429_v33 = vadd.f32 %v989_v60, %v982_v53  ;;  %v475_v48 = vadd.f32 %v451_v10, %v953_v36  ;;  %v476_v40 = vadd.f32 %v452_v14, %v980_v52  ;;  %v783_v51 = vld [vmem:[%s919_s18 + $0xa8] sm:$0xff] }
  0x32   : > { %v490_v38 = vadd.f32 %v778_v61, %v473_v18  ;;  %v491_v35 = vadd.f32 %v779_v13, %v474_v30  ;;  %v382_v47 = vadd.f32 %v737_v62, %v365_v22  ;;  %v477_v49 = vadd.f32 %v453_v32, %v997_v0  ;;  %v785_v22 = vld [vmem:[%s919_s18 + $0xb8] sm:$0xff] }
  0x33   : > { %744 = vst.msk [vmem:[%s969_s21 + $0x70] sm:$0xff] %vm269_vm0, %v381_v15  ;;  %v454_v63 = vadd.f32 %v429_v33, %v1019_v20  ;;  %v430_v53 = vadd.f32 %v1011_v12, %v1009_v8  ;;  %v492_v11 = vadd.f32 %v780_v26, %v475_v48  ;;  %v493_v50 = vadd.f32 %v781_v41, %v476_v40  ;;  %v826_v26 = vld [vmem:[%s919_s18 + $0xc0] sm:$0xff]  ;;  %v829_v41 = vld [vmem:[%s919_s18 + $0xd8] sm:$0xff] }
  0x34   : > { %786 = vst.msk [vmem:[%s969_s21 + $0x80] sm:$0xff] %vm269_vm0, %v490_v38  ;;  %787 = vst.msk [vmem:[%s969_s21 + $0x88] sm:$0xff] %vm269_vm0, %v491_v35  ;;  %v447_v57 = vmul.f32 0.0625, %v1000_v1  ;;  %v471_v59 = vmul.f32 0.1875, %v1003_v2  ;;  %v494_v20 = vadd.f32 %v782_v43, %v477_v49  ;;  %v431_v8 = vadd.f32 %v1031_v29, %v1028_v28  ;;  %v784_v28 = vld [vmem:[%s919_s18 + $0xb0] sm:$0xff]  ;;  %v833_v49 = vld [vmem:[%s919_s18 + $0xf8] sm:$0xff] }
  0x35   : > { %745 = vst.msk [vmem:[%s969_s21 + $0x78] sm:$0xff] %vm269_vm0, %v382_v47  ;;  %v478_v61 = vadd.f32 %v454_v63, %v1021_v21  ;;  %v448_v13 = vmul.f32 0.0625, %v769_v44  ;;  %788 = vst.msk [vmem:[%s969_s21 + $0x90] sm:$0xff] %vm269_vm0, %v492_v11  ;;  %v472_v62 = vmul.f32 0.1875, %v777_v5  ;;  %v539_v1 = vadd.f32 %v1038_v39, %v904_v9  ;;  %v832_v44 = vld [vmem:[%s919_s18 + $0xf0] sm:$0xff] }
  0x36   : > { %789 = vst.msk [vmem:[%s969_s21 + $0x98] sm:$0xff] %vm269_vm0, %v493_v50  ;;  %v455_v24 = vadd.f32 %v447_v57, %v430_v53  ;;  %v540_v2 = vadd.f32 %v1044_v45, %v922_v16  ;;  %790 = vst.msk [vmem:[%s969_s21 + $0xa0] sm:$0xff] %vm269_vm0, %v494_v20  ;;  %v541_v10 = vadd.f32 %v1051_v54, %v932_v23  ;;  %v827_v23 = vld [vmem:[%s919_s18 + $0xc8] sm:$0xff]  ;;  %v585_v40 = vmul.f32 0.0625, %v1100_v4 }
  0x37   : > { %v495_v18 = vadd.f32 %v783_v51, %v478_v61  ;;  %v456_v30 = vadd.f32 %v448_v13, %v431_v8  ;;  %v542_v14 = vadd.f32 %v1065_v6, %v945_v31  ;;  %v563_v9 = vadd.f32 %v539_v1, %v924_v17 }
  0x38   : > { %v479_v15 = vadd.f32 %v471_v59, %v455_v24  ;;  %v564_v39 = vadd.f32 %v540_v2, %v936_v25  ;;  %v543_v16 = vadd.f32 %v1081_v34, %v961_v42  ;;  %v565_v31 = vadd.f32 %v541_v10, %v953_v36  ;;  %v828_v34 = vld [vmem:[%s919_s18 + $0xd0] sm:$0xff] }
  0x39   : > { %791 = vst.msk [vmem:[%s969_s21 + $0xa8] sm:$0xff] %vm269_vm0, %v495_v18  ;;  %v480_v45 = vadd.f32 %v472_v62, %v456_v30  ;;  %v566_v54 = vadd.f32 %v542_v14, %v980_v52  ;;  %v544_v17 = vadd.f32 %v1095_v55, %v989_v60  ;;  %v587_v25 = vadd.f32 %v563_v9, %v1046_v46  ;;  %v830_v52 = vld [vmem:[%s919_s18 + $0xe0] sm:$0xff]  ;;  %v825_v55 = vld [vmem:[%s892_s14 + $0x92] sm:$0xff] }
  0x3a   : > { %v496_v6 = vadd.f32 %v784_v28, %v479_v15  ;;  %v588_v42 = vadd.f32 %v564_v39, %v1058_v58  ;;  %v567_v32 = vadd.f32 %v543_v16, %v997_v0  ;;  %v589_v38 = vadd.f32 %v565_v31, %v1067_v7  ;;  %v831_v0 = vld [vmem:[%s919_s18 + $0xe8] sm:$0xff] }
  0x3b   : > { %v497_v33 = vadd.f32 %v785_v22, %v480_v45  ;;  %v590_v36 = vadd.f32 %v566_v54, %v1083_v37  ;;  %v568_v60 = vadd.f32 %v544_v17, %v1021_v21  ;;  %v604_v46 = vadd.f32 %v826_v26, %v587_v25 }
  0x3c   : > { %792 = vst.msk [vmem:[%s969_s21 + $0xb0] sm:$0xff] %vm269_vm0, %v496_v6  ;;  %v605_v58 = vadd.f32 %v827_v23, %v588_v42  ;;  %v591_v35 = vadd.f32 %v567_v32, %v1097_v56  ;;  %v545_v7 = vadd.f32 %v1106_v3, %v1011_v12  ;;  %v606_v37 = vadd.f32 %v828_v34, %v589_v38 }
  0x3d   : > { %793 = vst.msk [vmem:[%s969_s21 + $0xb8] sm:$0xff] %vm269_vm0, %v497_v33  ;;  %v607_v48 = vadd.f32 %v829_v41, %v590_v36  ;;  %v592_v21 = vadd.f32 %v568_v60, %v1112_v19  ;;  %834 = vst.msk [vmem:[%s969_s21 + $0xc0] sm:$0xff] %vm269_vm0, %v604_v46  ;;  %v546_v12 = vadd.f32 %v1120_v27, %v1031_v29  ;;  %v586_v3 = vmul.f32 0.0625, %v825_v55 }
  0x3e   : > { %835 = vst.msk [vmem:[%s969_s21 + $0xc8] sm:$0xff] %vm269_vm0, %v605_v58  ;;  %v608_v56 = vadd.f32 %v830_v52, %v591_v35  ;;  %v569_v43 = vadd.f32 %v545_v7, %v471_v59  ;;  %836 = vst.msk [vmem:[%s969_s21 + $0xd0] sm:$0xff] %vm269_vm0, %v606_v37 }
  0x3f   : > { %837 = vst.msk [vmem:[%s969_s21 + $0xd8] sm:$0xff] %vm269_vm0, %v607_v48  ;;  %v609_v19 = vadd.f32 %v831_v0, %v592_v21  ;;  %v570_v47 = vadd.f32 %v546_v12, %v472_v62 }
  0x40   : > { %838 = vst.msk [vmem:[%s969_s21 + $0xe0] sm:$0xff] %vm269_vm0, %v608_v56  ;;  %v593_v4 = vadd.f32 %v585_v40, %v569_v43 }
  0x41   : > { %839 = vst.msk [vmem:[%s969_s21 + $0xe8] sm:$0xff] %vm269_vm0, %v609_v19  ;;  %v594_v53 = vadd.f32 %v586_v3, %v570_v47 }
  0x42   : > { %v610_v63 = vadd.f32 %v832_v44, %v593_v4 }
  0x43   : > { %v611_v5 = vadd.f32 %v833_v49, %v594_v53 }
  0x44   : > { %840 = vst.msk [vmem:[%s969_s21 + $0xf0] sm:$0xff] %vm269_vm0, %v610_v63 }
  0x45   : > { %841 = vst.msk [vmem:[%s969_s21 + $0xf8] sm:$0xff] %vm269_vm0, %v611_v5 }
  0x46 PF: > { %s12_s9 = sadd.s32 1, %s861_s9  }
  0x47   : > { %p9_p4 = scmp.ge.s32.totalorder %s12_s9, 4  }
  0x49   :  { %11 = sbr.rel (!%p9_p4) target bundleno = 1 (0x1), region = 69 }

</bundles_post_ra>
